<compile_context>
chip_gen: v7x
topology: tpu7x:2x2x1
jax: 0.10.0
libtpu: 0.0.40
codegen_flags: <defaults>
</compile_context>

<pallas_src>
import functools

import numpy as np
import jax
import jax.numpy as jnp
from jax import lax
from jax.experimental import pallas as pl
from jax.experimental.pallas import tpu as pltpu


# ----------------------------------------------------------------------------
# Fused kernel: one batch element per grid step.
#   x_ref : (C, H*W)  VMEM   rows [0, c1) = x1 channels, rows [c1, C) = x2
#   fw/gw : flat (3*3*Cin*Cout,) SMEM conv weights, row-major (dy, dx, ci, co)
#   fb/gb : (Cout,) SMEM biases
#   scal  : (4,) SMEM  = [alpha1*beta2, alpha1, beta1, alpha2]
#   y_ref : (C, H*W)  VMEM   rows [0, c1) = y1, rows [c1, C) = y2
# ----------------------------------------------------------------------------
def _inv_zip_kernel(x_ref, fw_ref, fb_ref, gw_ref, gb_ref, scal_ref, y_ref,
                    *, H, W, c1, c2):
    HW = H * W
    # left/right zero pad (in lanes) so every 3x3 tap shift is a static slice
    PAD = max(128, ((W + 1 + 127) // 128) * 128)

    a1b2 = scal_ref[0]
    a1 = scal_ref[1]
    b1 = scal_ref[2]
    a2 = scal_ref[3]

    # Column-validity masks for the horizontal conv taps (built once).
    col = lax.broadcasted_iota(jnp.int32, (1, HW), 1) % W
    mask_l = (col != 0).astype(jnp.float32)        # tap dx = 0 (reads w-1)
    mask_r = (col != (W - 1)).astype(jnp.float32)  # tap dx = 2 (reads w+1)
    dx_masks = (mask_l, None, mask_r)
    zpad = jnp.zeros((1, PAD), jnp.float32)

    def conv3x3(chans, w_ref, b_ref, cin, cout):
        # chans: list of cin (1, HW) f32 planes -> list of cout (1, HW) planes.
        padded = [jnp.concatenate([zpad, ch, zpad], axis=1) for ch in chans]
        accs = [jnp.zeros((1, HW), jnp.float32) for _ in range(cout)]
        for dy in range(3):
            for dx in range(3):
                start = PAD + (dy - 1) * W + (dx - 1)
                m = dx_masks[dx]
                for ci in range(cin):
                    tap = padded[ci][:, start:start + HW]   # (1, HW) shifted plane
                    if m is not None:
                        tap = tap * m                       # zero out-of-row cols
                    base = ((dy * 3 + dx) * cin + ci) * cout
                    for co in range(cout):
                        accs[co] = accs[co] + w_ref[base + co] * tap
        return [accs[co] + b_ref[co] for co in range(cout)]

    x1 = [x_ref[i:i + 1, :] for i in range(c1)]
    x2 = [x_ref[c1 + i:c1 + i + 1, :] for i in range(c2)]

    # F branch:  s = x1 + F(x2),  y1 = alpha1*beta2*s,  z = y1/beta2 = alpha1*s
    f_out = conv3x3(x2, fw_ref, fb_ref, c2, c1)
    s = [x1[i] + f_out[i] for i in range(c1)]
    z = [a1 * si for si in s]

    # G branch: y2 = beta1*x2 + alpha2*G(z)
    g_out = conv3x3(z, gw_ref, gb_ref, c1, c2)

    for i in range(c1):
        y_ref[i:i + 1, :] = a1b2 * s[i]
    for i in range(c2):
        y_ref[c1 + i:c1 + i + 1, :] = b1 * x2[i] + a2 * g_out[i]


# ----------------------------------------------------------------------------
# Forward wrapper: only free reshapes + parameter flattening on the host.
# ----------------------------------------------------------------------------
def inv_zip_block_forward(x, params, split_len1):
    """x: (N, C, H, W) float32 (NCHW, as in PyTorch). Returns (N, C, H, W)."""
    N, C, H, W = x.shape
    c1 = split_len1
    c2 = C - split_len1
    HW = H * W

    x2d = x.reshape(N, C, HW).astype(jnp.float32)          # free, contiguous
    fw = params["F_w"].reshape(-1).astype(jnp.float32)      # (3*3*c2*c1,)
    fb = params["F_b"].reshape(-1).astype(jnp.float32)      # (c1,)
    gw = params["G_w"].reshape(-1).astype(jnp.float32)      # (3*3*c1*c2,)
    gb = params["G_b"].reshape(-1).astype(jnp.float32)      # (c2,)
    a1, a2 = params["alpha1"], params["alpha2"]
    b1, b2 = params["beta1"], params["beta2"]
    scal = jnp.array([a1 * b2, a1, b1, a2], jnp.float32)    # precombined scalars

    kernel = functools.partial(_inv_zip_kernel, H=H, W=W, c1=c1, c2=c2)
    grid_spec = pl.GridSpec(
        grid=(N,),
        in_specs=[
            pl.BlockSpec((None, C, HW), lambda n: (n, 0, 0)),
            pl.BlockSpec(memory_space=pltpu.MemorySpace.SMEM),
            pl.BlockSpec(memory_space=pltpu.MemorySpace.SMEM),
            pl.BlockSpec(memory_space=pltpu.MemorySpace.SMEM),
            pl.BlockSpec(memory_space=pltpu.MemorySpace.SMEM),
            pl.BlockSpec(memory_space=pltpu.MemorySpace.SMEM),
        ],
        out_specs=pl.BlockSpec((None, C, HW), lambda n: (n, 0, 0)),
    )
    y2d = pl.pallas_call(
        kernel,
        out_shape=jax.ShapeDtypeStruct((N, C, HW), jnp.float32),
        grid_spec=grid_spec,
        compiler_params=pltpu.CompilerParams(
            dimension_semantics=("parallel",)),
    )(x2d, fw, fb, gw, gb, scal)
    return y2d.reshape(N, C, H, W)

# TODO(synk): rev=True inverse path and calc_jac=True (JacobianReg, autograd
# based) are not implemented; only the default forward path is reproduced.


# ----------------------------------------------------------------------------
# Deterministic parameter init (subnet = one 3x3 conv with bias, HWIO weights)
# ----------------------------------------------------------------------------
def init_params(key, channel_num, channel_split_num):
    c1 = channel_split_num
    c2 = channel_num - channel_split_num
    k_fw, k_fb, k_gw, k_gb = jax.random.split(key, 4)
    fw = 0.1 * jax.random.normal(k_fw, (3, 3, c2, c1), jnp.float32)  # F: c2 -> c1
    fb = 0.1 * jax.random.normal(k_fb, (c1,), jnp.float32)
    gw = 0.1 * jax.random.normal(k_gw, (3, 3, c1, c2), jnp.float32)  # G: c1 -> c2
    gb = 0.1 * jax.random.normal(k_gb, (c2,), jnp.float32)
    return dict(F_w=fw, F_b=fb, G_w=gw, G_b=gb,
                alpha1=1.0, alpha2=1.0, beta1=1.0, beta2=1.0)  # as nn.Parameter([1.0])


# ----------------------------------------------------------------------------
# Pure-JAX reference (NCHW end to end) for correctness check
# ----------------------------------------------------------------------------
def _ref_conv(x_nchw, w_hwio, b):
    out = lax.conv_general_dilated(
        x_nchw, w_hwio, window_strides=(1, 1), padding="SAME",
        dimension_numbers=("NCHW", "HWIO", "NCHW"),
        precision=lax.Precision.HIGHEST)
    return out + b.reshape(1, -1, 1, 1)


def ref_forward(x, params, split_len1):
    x1 = x[:, :split_len1]
    x2 = x[:, split_len1:]
    a1, a2 = params["alpha1"], params["alpha2"]
    b1, b2 = params["beta1"], params["beta2"]
    y1 = a1 * b2 * (x1 + _ref_conv(x2, params["F_w"], params["F_b"]))
    y2 = b1 * x2 + a2 * _ref_conv(y1 / b2, params["G_w"], params["G_b"])
    return jnp.concatenate([y1, y2], axis=1)


if __name__ == "__main__":
    key = jax.random.PRNGKey(0)
    k_x, k_p = jax.random.split(key)

    N, C, H, W = 2, 4, 16, 16          # channel_num=4
    split_len1 = 2                     # channel_split_num=2 -> split_len2=2

    x = jax.random.normal(k_x, (N, C, H, W), jnp.float32)
    params = init_params(k_p, C, split_len1)

    out = inv_zip_block_forward(x, params, split_len1)
    out = jax.block_until_ready(out)

    ref = ref_forward(x, params, split_len1)
    assert out.shape == (N, C, H, W)
    np.testing.assert_allclose(np.asarray(out), np.asarray(ref),
                               rtol=1e-4, atol=1e-4)
    print("KERNEL_OK")
</pallas_src>

<mosaic_0001>
module attributes {stable_mosaic.version = 11 : i64} {
  func.func @_inv_zip_kernel(%arg0: i32, %arg1: memref<1x4x256xf32, #tpu.memory_space<vmem>>, %arg2: memref<36xf32, #tpu.memory_space<smem>>, %arg3: memref<2xf32, #tpu.memory_space<smem>>, %arg4: memref<36xf32, #tpu.memory_space<smem>>, %arg5: memref<2xf32, #tpu.memory_space<smem>>, %arg6: memref<4xf32, #tpu.memory_space<smem>>, %arg7: memref<1x4x256xf32, #tpu.memory_space<vmem>>) attributes {dimension_semantics = [#tpu.dimension_semantics<parallel>], iteration_bounds = array<i64: 2>, scalar_prefetch = 0 : i64, scratch_operands = 0 : i64, tpu.core_type = #tpu.core_type<tc>, window_params = [{transform_indices = @transform_0, window_bounds = array<i64: 1, 4, 256>}, {transform_indices = @transform_1, window_bounds = array<i64: 36>}, {transform_indices = @transform_2, window_bounds = array<i64: 2>}, {transform_indices = @transform_3, window_bounds = array<i64: 36>}, {transform_indices = @transform_4, window_bounds = array<i64: 2>}, {transform_indices = @transform_5, window_bounds = array<i64: 4>}, {transform_indices = @transform_6, window_bounds = array<i64: 1, 4, 256>}]} {
    %c0 = arith.constant 0 : index
    %0 = memref.load %arg6[%c0] : memref<4xf32, #tpu.memory_space<smem>>
    %c1 = arith.constant 1 : index
    %1 = memref.load %arg6[%c1] : memref<4xf32, #tpu.memory_space<smem>>
    %c2 = arith.constant 2 : index
    %2 = memref.load %arg6[%c2] : memref<4xf32, #tpu.memory_space<smem>>
    %c3 = arith.constant 3 : index
    %3 = memref.load %arg6[%c3] : memref<4xf32, #tpu.memory_space<smem>>
    %4 = tpu.iota {dimensions = array<i32: 1>} : vector<1x256xi32>
    %c16_i32 = arith.constant 16 : i32
    %c0_i32 = arith.constant 0 : i32
    %5 = arith.cmpi eq, %c16_i32, %c0_i32 : i32
    %c1_i32 = arith.constant 1 : i32
    %6 = arith.select %5, %c1_i32, %c16_i32 : i32
    %7 = vector.broadcast %6 : i32 to vector<1x256xi32>
    %8 = arith.remsi %4, %7 : vector<1x256xi32>
    %c0_i32_0 = arith.constant 0 : i32
    %9 = vector.broadcast %c0_i32_0 : i32 to vector<1x256xi32>
    %10 = arith.cmpi ne, %8, %9 : vector<1x256xi32>
    %c0_i32_1 = arith.constant 0 : i32
    %11 = vector.broadcast %c0_i32_1 : i32 to vector<1x256xi32>
    %12 = arith.cmpi slt, %8, %11 : vector<1x256xi32>
    %c0_i32_2 = arith.constant 0 : i32
    %13 = arith.cmpi slt, %6, %c0_i32_2 : i32
    %14 = vector.broadcast %13 : i1 to vector<1x256xi1>
    %15 = vector.broadcast %14 : vector<1x256xi1> to vector<1x256xi1>
    %16 = arith.xori %12, %15 : vector<1x256xi1>
    %17 = arith.andi %16, %10 : vector<1x256xi1>
    %18 = vector.broadcast %6 : i32 to vector<1x256xi32>
    %19 = arith.addi %8, %18 : vector<1x256xi32>
    %20 = arith.select %17, %19, %8 : vector<1x256xi1>, vector<1x256xi32>
    %c0_i32_3 = arith.constant 0 : i32
    %21 = vector.broadcast %c0_i32_3 : i32 to vector<1x256xi32>
    %22 = arith.cmpi ne, %20, %21 : vector<1x256xi32>
    %23 = arith.extui %22 : vector<1x256xi1> to vector<1x256xi32>
    %24 = arith.sitofp %23 : vector<1x256xi32> to vector<1x256xf32>
    %c15_i32 = arith.constant 15 : i32
    %25 = vector.broadcast %c15_i32 : i32 to vector<1x256xi32>
    %26 = arith.cmpi ne, %20, %25 : vector<1x256xi32>
    %27 = arith.extui %26 : vector<1x256xi1> to vector<1x256xi32>
    %28 = arith.sitofp %27 : vector<1x256xi32> to vector<1x256xf32>
    %cst = arith.constant 0.000000e+00 : f32
    %29 = vector.broadcast %cst : f32 to vector<1x128xf32>
    %c0_4 = arith.constant 0 : index
    %c0_5 = arith.constant 0 : index
    %c0_6 = arith.constant 0 : index
    %30 = vector.load %arg1[%c0_4, %c0_5, %c0_6] : memref<1x4x256xf32, #tpu.memory_space<vmem>>, vector<1x1x256xf32>
    %31 = vector.shape_cast %30 : vector<1x1x256xf32> to vector<1x256xf32>
    %c0_7 = arith.constant 0 : index
    %c1_8 = arith.constant 1 : index
    %c0_9 = arith.constant 0 : index
    %32 = vector.load %arg1[%c0_7, %c1_8, %c0_9] : memref<1x4x256xf32, #tpu.memory_space<vmem>>, vector<1x1x256xf32>
    %33 = vector.shape_cast %32 : vector<1x1x256xf32> to vector<1x256xf32>
    %c0_10 = arith.constant 0 : index
    %c2_11 = arith.constant 2 : index
    %c0_12 = arith.constant 0 : index
    %34 = vector.load %arg1[%c0_10, %c2_11, %c0_12] : memref<1x4x256xf32, #tpu.memory_space<vmem>>, vector<1x1x256xf32>
    %35 = vector.shape_cast %34 : vector<1x1x256xf32> to vector<1x256xf32>
    %c0_13 = arith.constant 0 : index
    %c3_14 = arith.constant 3 : index
    %c0_15 = arith.constant 0 : index
    %36 = vector.load %arg1[%c0_13, %c3_14, %c0_15] : memref<1x4x256xf32, #tpu.memory_space<vmem>>, vector<1x1x256xf32>
    %37 = vector.shape_cast %36 : vector<1x1x256xf32> to vector<1x256xf32>
    %38 = tpu.concatenate %29, %35, %29 in 1 : vector<1x128xf32>, vector<1x256xf32>, vector<1x128xf32> -> vector<1x512xf32>
    %39 = tpu.concatenate %29, %37, %29 in 1 : vector<1x128xf32>, vector<1x256xf32>, vector<1x128xf32> -> vector<1x512xf32>
    %cst_16 = arith.constant 0.000000e+00 : f32
    %40 = vector.broadcast %cst_16 : f32 to vector<1x256xf32>
    %cst_17 = arith.constant 0.000000e+00 : f32
    %41 = vector.broadcast %cst_17 : f32 to vector<1x256xf32>
    %42 = vector.extract_strided_slice %38 {offsets = [0, 111], sizes = [1, 256], strides = [1, 1]} : vector<1x512xf32> to vector<1x256xf32>
    %43 = arith.mulf %42, %24 : vector<1x256xf32>
    %c0_18 = arith.constant 0 : index
    %44 = memref.load %arg2[%c0_18] : memref<36xf32, #tpu.memory_space<smem>>
    %45 = vector.broadcast %44 : f32 to vector<1x256xf32>
    %46 = arith.mulf %45, %43 : vector<1x256xf32>
    %47 = arith.addf %40, %46 : vector<1x256xf32>
    %c1_19 = arith.constant 1 : index
    %48 = memref.load %arg2[%c1_19] : memref<36xf32, #tpu.memory_space<smem>>
    %49 = vector.broadcast %48 : f32 to vector<1x256xf32>
    %50 = arith.mulf %49, %43 : vector<1x256xf32>
    %51 = arith.addf %41, %50 : vector<1x256xf32>
    %52 = vector.extract_strided_slice %39 {offsets = [0, 111], sizes = [1, 256], strides = [1, 1]} : vector<1x512xf32> to vector<1x256xf32>
    %53 = arith.mulf %52, %24 : vector<1x256xf32>
    %c2_20 = arith.constant 2 : index
    %54 = memref.load %arg2[%c2_20] : memref<36xf32, #tpu.memory_space<smem>>
    %55 = vector.broadcast %54 : f32 to vector<1x256xf32>
    %56 = arith.mulf %55, %53 : vector<1x256xf32>
    %57 = arith.addf %47, %56 : vector<1x256xf32>
    %c3_21 = arith.constant 3 : index
    %58 = memref.load %arg2[%c3_21] : memref<36xf32, #tpu.memory_space<smem>>
    %59 = vector.broadcast %58 : f32 to vector<1x256xf32>
    %60 = arith.mulf %59, %53 : vector<1x256xf32>
    %61 = arith.addf %51, %60 : vector<1x256xf32>
    %62 = vector.extract_strided_slice %38 {offsets = [0, 112], sizes = [1, 256], strides = [1, 1]} : vector<1x512xf32> to vector<1x256xf32>
    %c4 = arith.constant 4 : index
    %63 = memref.load %arg2[%c4] : memref<36xf32, #tpu.memory_space<smem>>
    %64 = vector.broadcast %63 : f32 to vector<1x256xf32>
    %65 = arith.mulf %64, %62 : vector<1x256xf32>
    %66 = arith.addf %57, %65 : vector<1x256xf32>
    %c5 = arith.constant 5 : index
    %67 = memref.load %arg2[%c5] : memref<36xf32, #tpu.memory_space<smem>>
    %68 = vector.broadcast %67 : f32 to vector<1x256xf32>
    %69 = arith.mulf %68, %62 : vector<1x256xf32>
    %70 = arith.addf %61, %69 : vector<1x256xf32>
    %71 = vector.extract_strided_slice %39 {offsets = [0, 112], sizes = [1, 256], strides = [1, 1]} : vector<1x512xf32> to vector<1x256xf32>
    %c6 = arith.constant 6 : index
    %72 = memref.load %arg2[%c6] : memref<36xf32, #tpu.memory_space<smem>>
    %73 = vector.broadcast %72 : f32 to vector<1x256xf32>
    %74 = arith.mulf %73, %71 : vector<1x256xf32>
    %75 = arith.addf %66, %74 : vector<1x256xf32>
    %c7 = arith.constant 7 : index
    %76 = memref.load %arg2[%c7] : memref<36xf32, #tpu.memory_space<smem>>
    %77 = vector.broadcast %76 : f32 to vector<1x256xf32>
    %78 = arith.mulf %77, %71 : vector<1x256xf32>
    %79 = arith.addf %70, %78 : vector<1x256xf32>
    %80 = vector.extract_strided_slice %38 {offsets = [0, 113], sizes = [1, 256], strides = [1, 1]} : vector<1x512xf32> to vector<1x256xf32>
    %81 = arith.mulf %80, %28 : vector<1x256xf32>
    %c8 = arith.constant 8 : index
    %82 = memref.load %arg2[%c8] : memref<36xf32, #tpu.memory_space<smem>>
    %83 = vector.broadcast %82 : f32 to vector<1x256xf32>
    %84 = arith.mulf %83, %81 : vector<1x256xf32>
    %85 = arith.addf %75, %84 : vector<1x256xf32>
    %c9 = arith.constant 9 : index
    %86 = memref.load %arg2[%c9] : memref<36xf32, #tpu.memory_space<smem>>
    %87 = vector.broadcast %86 : f32 to vector<1x256xf32>
    %88 = arith.mulf %87, %81 : vector<1x256xf32>
    %89 = arith.addf %79, %88 : vector<1x256xf32>
    %90 = vector.extract_strided_slice %39 {offsets = [0, 113], sizes = [1, 256], strides = [1, 1]} : vector<1x512xf32> to vector<1x256xf32>
    %91 = arith.mulf %90, %28 : vector<1x256xf32>
    %c10 = arith.constant 10 : index
    %92 = memref.load %arg2[%c10] : memref<36xf32, #tpu.memory_space<smem>>
    %93 = vector.broadcast %92 : f32 to vector<1x256xf32>
    %94 = arith.mulf %93, %91 : vector<1x256xf32>
    %95 = arith.addf %85, %94 : vector<1x256xf32>
    %c11 = arith.constant 11 : index
    %96 = memref.load %arg2[%c11] : memref<36xf32, #tpu.memory_space<smem>>
    %97 = vector.broadcast %96 : f32 to vector<1x256xf32>
    %98 = arith.mulf %97, %91 : vector<1x256xf32>
    %99 = arith.addf %89, %98 : vector<1x256xf32>
    %100 = vector.extract_strided_slice %38 {offsets = [0, 127], sizes = [1, 256], strides = [1, 1]} : vector<1x512xf32> to vector<1x256xf32>
    %101 = arith.mulf %100, %24 : vector<1x256xf32>
    %c12 = arith.constant 12 : index
    %102 = memref.load %arg2[%c12] : memref<36xf32, #tpu.memory_space<smem>>
    %103 = vector.broadcast %102 : f32 to vector<1x256xf32>
    %104 = arith.mulf %103, %101 : vector<1x256xf32>
    %105 = arith.addf %95, %104 : vector<1x256xf32>
    %c13 = arith.constant 13 : index
    %106 = memref.load %arg2[%c13] : memref<36xf32, #tpu.memory_space<smem>>
    %107 = vector.broadcast %106 : f32 to vector<1x256xf32>
    %108 = arith.mulf %107, %101 : vector<1x256xf32>
    %109 = arith.addf %99, %108 : vector<1x256xf32>
    %110 = vector.extract_strided_slice %39 {offsets = [0, 127], sizes = [1, 256], strides = [1, 1]} : vector<1x512xf32> to vector<1x256xf32>
    %111 = arith.mulf %110, %24 : vector<1x256xf32>
    %c14 = arith.constant 14 : index
    %112 = memref.load %arg2[%c14] : memref<36xf32, #tpu.memory_space<smem>>
    %113 = vector.broadcast %112 : f32 to vector<1x256xf32>
    %114 = arith.mulf %113, %111 : vector<1x256xf32>
    %115 = arith.addf %105, %114 : vector<1x256xf32>
    %c15 = arith.constant 15 : index
    %116 = memref.load %arg2[%c15] : memref<36xf32, #tpu.memory_space<smem>>
    %117 = vector.broadcast %116 : f32 to vector<1x256xf32>
    %118 = arith.mulf %117, %111 : vector<1x256xf32>
    %119 = arith.addf %109, %118 : vector<1x256xf32>
    %120 = vector.extract_strided_slice %38 {offsets = [0, 128], sizes = [1, 256], strides = [1, 1]} : vector<1x512xf32> to vector<1x256xf32>
    %c16 = arith.constant 16 : index
    %121 = memref.load %arg2[%c16] : memref<36xf32, #tpu.memory_space<smem>>
    %122 = vector.broadcast %121 : f32 to vector<1x256xf32>
    %123 = arith.mulf %122, %120 : vector<1x256xf32>
    %124 = arith.addf %115, %123 : vector<1x256xf32>
    %c17 = arith.constant 17 : index
    %125 = memref.load %arg2[%c17] : memref<36xf32, #tpu.memory_space<smem>>
    %126 = vector.broadcast %125 : f32 to vector<1x256xf32>
    %127 = arith.mulf %126, %120 : vector<1x256xf32>
    %128 = arith.addf %119, %127 : vector<1x256xf32>
    %129 = vector.extract_strided_slice %39 {offsets = [0, 128], sizes = [1, 256], strides = [1, 1]} : vector<1x512xf32> to vector<1x256xf32>
    %c18 = arith.constant 18 : index
    %130 = memref.load %arg2[%c18] : memref<36xf32, #tpu.memory_space<smem>>
    %131 = vector.broadcast %130 : f32 to vector<1x256xf32>
    %132 = arith.mulf %131, %129 : vector<1x256xf32>
    %133 = arith.addf %124, %132 : vector<1x256xf32>
    %c19 = arith.constant 19 : index
    %134 = memref.load %arg2[%c19] : memref<36xf32, #tpu.memory_space<smem>>
    %135 = vector.broadcast %134 : f32 to vector<1x256xf32>
    %136 = arith.mulf %135, %129 : vector<1x256xf32>
    %137 = arith.addf %128, %136 : vector<1x256xf32>
    %138 = vector.extract_strided_slice %38 {offsets = [0, 129], sizes = [1, 256], strides = [1, 1]} : vector<1x512xf32> to vector<1x256xf32>
    %139 = arith.mulf %138, %28 : vector<1x256xf32>
    %c20 = arith.constant 20 : index
    %140 = memref.load %arg2[%c20] : memref<36xf32, #tpu.memory_space<smem>>
    %141 = vector.broadcast %140 : f32 to vector<1x256xf32>
    %142 = arith.mulf %141, %139 : vector<1x256xf32>
    %143 = arith.addf %133, %142 : vector<1x256xf32>
    %c21 = arith.constant 21 : index
    %144 = memref.load %arg2[%c21] : memref<36xf32, #tpu.memory_space<smem>>
    %145 = vector.broadcast %144 : f32 to vector<1x256xf32>
    %146 = arith.mulf %145, %139 : vector<1x256xf32>
    %147 = arith.addf %137, %146 : vector<1x256xf32>
    %148 = vector.extract_strided_slice %39 {offsets = [0, 129], sizes = [1, 256], strides = [1, 1]} : vector<1x512xf32> to vector<1x256xf32>
    %149 = arith.mulf %148, %28 : vector<1x256xf32>
    %c22 = arith.constant 22 : index
    %150 = memref.load %arg2[%c22] : memref<36xf32, #tpu.memory_space<smem>>
    %151 = vector.broadcast %150 : f32 to vector<1x256xf32>
    %152 = arith.mulf %151, %149 : vector<1x256xf32>
    %153 = arith.addf %143, %152 : vector<1x256xf32>
    %c23 = arith.constant 23 : index
    %154 = memref.load %arg2[%c23] : memref<36xf32, #tpu.memory_space<smem>>
    %155 = vector.broadcast %154 : f32 to vector<1x256xf32>
    %156 = arith.mulf %155, %149 : vector<1x256xf32>
    %157 = arith.addf %147, %156 : vector<1x256xf32>
    %158 = vector.extract_strided_slice %38 {offsets = [0, 143], sizes = [1, 256], strides = [1, 1]} : vector<1x512xf32> to vector<1x256xf32>
    %159 = arith.mulf %158, %24 : vector<1x256xf32>
    %c24 = arith.constant 24 : index
    %160 = memref.load %arg2[%c24] : memref<36xf32, #tpu.memory_space<smem>>
    %161 = vector.broadcast %160 : f32 to vector<1x256xf32>
    %162 = arith.mulf %161, %159 : vector<1x256xf32>
    %163 = arith.addf %153, %162 : vector<1x256xf32>
    %c25 = arith.constant 25 : index
    %164 = memref.load %arg2[%c25] : memref<36xf32, #tpu.memory_space<smem>>
    %165 = vector.broadcast %164 : f32 to vector<1x256xf32>
    %166 = arith.mulf %165, %159 : vector<1x256xf32>
    %167 = arith.addf %157, %166 : vector<1x256xf32>
    %168 = vector.extract_strided_slice %39 {offsets = [0, 143], sizes = [1, 256], strides = [1, 1]} : vector<1x512xf32> to vector<1x256xf32>
    %169 = arith.mulf %168, %24 : vector<1x256xf32>
    %c26 = arith.constant 26 : index
    %170 = memref.load %arg2[%c26] : memref<36xf32, #tpu.memory_space<smem>>
    %171 = vector.broadcast %170 : f32 to vector<1x256xf32>
    %172 = arith.mulf %171, %169 : vector<1x256xf32>
    %173 = arith.addf %163, %172 : vector<1x256xf32>
    %c27 = arith.constant 27 : index
    %174 = memref.load %arg2[%c27] : memref<36xf32, #tpu.memory_space<smem>>
    %175 = vector.broadcast %174 : f32 to vector<1x256xf32>
    %176 = arith.mulf %175, %169 : vector<1x256xf32>
    %177 = arith.addf %167, %176 : vector<1x256xf32>
    %178 = vector.extract_strided_slice %38 {offsets = [0, 144], sizes = [1, 256], strides = [1, 1]} : vector<1x512xf32> to vector<1x256xf32>
    %c28 = arith.constant 28 : index
    %179 = memref.load %arg2[%c28] : memref<36xf32, #tpu.memory_space<smem>>
    %180 = vector.broadcast %179 : f32 to vector<1x256xf32>
    %181 = arith.mulf %180, %178 : vector<1x256xf32>
    %182 = arith.addf %173, %181 : vector<1x256xf32>
    %c29 = arith.constant 29 : index
    %183 = memref.load %arg2[%c29] : memref<36xf32, #tpu.memory_space<smem>>
    %184 = vector.broadcast %183 : f32 to vector<1x256xf32>
    %185 = arith.mulf %184, %178 : vector<1x256xf32>
    %186 = arith.addf %177, %185 : vector<1x256xf32>
    %187 = vector.extract_strided_slice %39 {offsets = [0, 144], sizes = [1, 256], strides = [1, 1]} : vector<1x512xf32> to vector<1x256xf32>
    %c30 = arith.constant 30 : index
    %188 = memref.load %arg2[%c30] : memref<36xf32, #tpu.memory_space<smem>>
    %189 = vector.broadcast %188 : f32 to vector<1x256xf32>
    %190 = arith.mulf %189, %187 : vector<1x256xf32>
    %191 = arith.addf %182, %190 : vector<1x256xf32>
    %c31 = arith.constant 31 : index
    %192 = memref.load %arg2[%c31] : memref<36xf32, #tpu.memory_space<smem>>
    %193 = vector.broadcast %192 : f32 to vector<1x256xf32>
    %194 = arith.mulf %193, %187 : vector<1x256xf32>
    %195 = arith.addf %186, %194 : vector<1x256xf32>
    %196 = vector.extract_strided_slice %38 {offsets = [0, 145], sizes = [1, 256], strides = [1, 1]} : vector<1x512xf32> to vector<1x256xf32>
    %197 = arith.mulf %196, %28 : vector<1x256xf32>
    %c32 = arith.constant 32 : index
    %198 = memref.load %arg2[%c32] : memref<36xf32, #tpu.memory_space<smem>>
    %199 = vector.broadcast %198 : f32 to vector<1x256xf32>
    %200 = arith.mulf %199, %197 : vector<1x256xf32>
    %201 = arith.addf %191, %200 : vector<1x256xf32>
    %c33 = arith.constant 33 : index
    %202 = memref.load %arg2[%c33] : memref<36xf32, #tpu.memory_space<smem>>
    %203 = vector.broadcast %202 : f32 to vector<1x256xf32>
    %204 = arith.mulf %203, %197 : vector<1x256xf32>
    %205 = arith.addf %195, %204 : vector<1x256xf32>
    %206 = vector.extract_strided_slice %39 {offsets = [0, 145], sizes = [1, 256], strides = [1, 1]} : vector<1x512xf32> to vector<1x256xf32>
    %207 = arith.mulf %206, %28 : vector<1x256xf32>
    %c34 = arith.constant 34 : index
    %208 = memref.load %arg2[%c34] : memref<36xf32, #tpu.memory_space<smem>>
    %209 = vector.broadcast %208 : f32 to vector<1x256xf32>
    %210 = arith.mulf %209, %207 : vector<1x256xf32>
    %211 = arith.addf %201, %210 : vector<1x256xf32>
    %c35 = arith.constant 35 : index
    %212 = memref.load %arg2[%c35] : memref<36xf32, #tpu.memory_space<smem>>
    %213 = vector.broadcast %212 : f32 to vector<1x256xf32>
    %214 = arith.mulf %213, %207 : vector<1x256xf32>
    %215 = arith.addf %205, %214 : vector<1x256xf32>
    %c0_22 = arith.constant 0 : index
    %216 = memref.load %arg3[%c0_22] : memref<2xf32, #tpu.memory_space<smem>>
    %217 = vector.broadcast %216 : f32 to vector<1x256xf32>
    %218 = arith.addf %211, %217 : vector<1x256xf32>
    %c1_23 = arith.constant 1 : index
    %219 = memref.load %arg3[%c1_23] : memref<2xf32, #tpu.memory_space<smem>>
    %220 = vector.broadcast %219 : f32 to vector<1x256xf32>
    %221 = arith.addf %215, %220 : vector<1x256xf32>
    %222 = arith.addf %31, %218 : vector<1x256xf32>
    %223 = arith.addf %33, %221 : vector<1x256xf32>
    %224 = vector.broadcast %1 : f32 to vector<1x256xf32>
    %225 = arith.mulf %224, %222 : vector<1x256xf32>
    %226 = vector.broadcast %1 : f32 to vector<1x256xf32>
    %227 = arith.mulf %226, %223 : vector<1x256xf32>
    %228 = tpu.concatenate %29, %225, %29 in 1 : vector<1x128xf32>, vector<1x256xf32>, vector<1x128xf32> -> vector<1x512xf32>
    %229 = tpu.concatenate %29, %227, %29 in 1 : vector<1x128xf32>, vector<1x256xf32>, vector<1x128xf32> -> vector<1x512xf32>
    %cst_24 = arith.constant 0.000000e+00 : f32
    %230 = vector.broadcast %cst_24 : f32 to vector<1x256xf32>
    %cst_25 = arith.constant 0.000000e+00 : f32
    %231 = vector.broadcast %cst_25 : f32 to vector<1x256xf32>
    %232 = vector.extract_strided_slice %228 {offsets = [0, 111], sizes = [1, 256], strides = [1, 1]} : vector<1x512xf32> to vector<1x256xf32>
    %233 = arith.mulf %232, %24 : vector<1x256xf32>
    %c0_26 = arith.constant 0 : index
    %234 = memref.load %arg4[%c0_26] : memref<36xf32, #tpu.memory_space<smem>>
    %235 = vector.broadcast %234 : f32 to vector<1x256xf32>
    %236 = arith.mulf %235, %233 : vector<1x256xf32>
    %237 = arith.addf %230, %236 : vector<1x256xf32>
    %c1_27 = arith.constant 1 : index
    %238 = memref.load %arg4[%c1_27] : memref<36xf32, #tpu.memory_space<smem>>
    %239 = vector.broadcast %238 : f32 to vector<1x256xf32>
    %240 = arith.mulf %239, %233 : vector<1x256xf32>
    %241 = arith.addf %231, %240 : vector<1x256xf32>
    %242 = vector.extract_strided_slice %229 {offsets = [0, 111], sizes = [1, 256], strides = [1, 1]} : vector<1x512xf32> to vector<1x256xf32>
    %243 = arith.mulf %242, %24 : vector<1x256xf32>
    %c2_28 = arith.constant 2 : index
    %244 = memref.load %arg4[%c2_28] : memref<36xf32, #tpu.memory_space<smem>>
    %245 = vector.broadcast %244 : f32 to vector<1x256xf32>
    %246 = arith.mulf %245, %243 : vector<1x256xf32>
    %247 = arith.addf %237, %246 : vector<1x256xf32>
    %c3_29 = arith.constant 3 : index
    %248 = memref.load %arg4[%c3_29] : memref<36xf32, #tpu.memory_space<smem>>
    %249 = vector.broadcast %248 : f32 to vector<1x256xf32>
    %250 = arith.mulf %249, %243 : vector<1x256xf32>
    %251 = arith.addf %241, %250 : vector<1x256xf32>
    %252 = vector.extract_strided_slice %228 {offsets = [0, 112], sizes = [1, 256], strides = [1, 1]} : vector<1x512xf32> to vector<1x256xf32>
    %c4_30 = arith.constant 4 : index
    %253 = memref.load %arg4[%c4_30] : memref<36xf32, #tpu.memory_space<smem>>
    %254 = vector.broadcast %253 : f32 to vector<1x256xf32>
    %255 = arith.mulf %254, %252 : vector<1x256xf32>
    %256 = arith.addf %247, %255 : vector<1x256xf32>
    %c5_31 = arith.constant 5 : index
    %257 = memref.load %arg4[%c5_31] : memref<36xf32, #tpu.memory_space<smem>>
    %258 = vector.broadcast %257 : f32 to vector<1x256xf32>
    %259 = arith.mulf %258, %252 : vector<1x256xf32>
    %260 = arith.addf %251, %259 : vector<1x256xf32>
    %261 = vector.extract_strided_slice %229 {offsets = [0, 112], sizes = [1, 256], strides = [1, 1]} : vector<1x512xf32> to vector<1x256xf32>
    %c6_32 = arith.constant 6 : index
    %262 = memref.load %arg4[%c6_32] : memref<36xf32, #tpu.memory_space<smem>>
    %263 = vector.broadcast %262 : f32 to vector<1x256xf32>
    %264 = arith.mulf %263, %261 : vector<1x256xf32>
    %265 = arith.addf %256, %264 : vector<1x256xf32>
    %c7_33 = arith.constant 7 : index
    %266 = memref.load %arg4[%c7_33] : memref<36xf32, #tpu.memory_space<smem>>
    %267 = vector.broadcast %266 : f32 to vector<1x256xf32>
    %268 = arith.mulf %267, %261 : vector<1x256xf32>
    %269 = arith.addf %260, %268 : vector<1x256xf32>
    %270 = vector.extract_strided_slice %228 {offsets = [0, 113], sizes = [1, 256], strides = [1, 1]} : vector<1x512xf32> to vector<1x256xf32>
    %271 = arith.mulf %270, %28 : vector<1x256xf32>
    %c8_34 = arith.constant 8 : index
    %272 = memref.load %arg4[%c8_34] : memref<36xf32, #tpu.memory_space<smem>>
    %273 = vector.broadcast %272 : f32 to vector<1x256xf32>
    %274 = arith.mulf %273, %271 : vector<1x256xf32>
    %275 = arith.addf %265, %274 : vector<1x256xf32>
    %c9_35 = arith.constant 9 : index
    %276 = memref.load %arg4[%c9_35] : memref<36xf32, #tpu.memory_space<smem>>
    %277 = vector.broadcast %276 : f32 to vector<1x256xf32>
    %278 = arith.mulf %277, %271 : vector<1x256xf32>
    %279 = arith.addf %269, %278 : vector<1x256xf32>
    %280 = vector.extract_strided_slice %229 {offsets = [0, 113], sizes = [1, 256], strides = [1, 1]} : vector<1x512xf32> to vector<1x256xf32>
    %281 = arith.mulf %280, %28 : vector<1x256xf32>
    %c10_36 = arith.constant 10 : index
    %282 = memref.load %arg4[%c10_36] : memref<36xf32, #tpu.memory_space<smem>>
    %283 = vector.broadcast %282 : f32 to vector<1x256xf32>
    %284 = arith.mulf %283, %281 : vector<1x256xf32>
    %285 = arith.addf %275, %284 : vector<1x256xf32>
    %c11_37 = arith.constant 11 : index
    %286 = memref.load %arg4[%c11_37] : memref<36xf32, #tpu.memory_space<smem>>
    %287 = vector.broadcast %286 : f32 to vector<1x256xf32>
    %288 = arith.mulf %287, %281 : vector<1x256xf32>
    %289 = arith.addf %279, %288 : vector<1x256xf32>
    %290 = vector.extract_strided_slice %228 {offsets = [0, 127], sizes = [1, 256], strides = [1, 1]} : vector<1x512xf32> to vector<1x256xf32>
    %291 = arith.mulf %290, %24 : vector<1x256xf32>
    %c12_38 = arith.constant 12 : index
    %292 = memref.load %arg4[%c12_38] : memref<36xf32, #tpu.memory_space<smem>>
    %293 = vector.broadcast %292 : f32 to vector<1x256xf32>
    %294 = arith.mulf %293, %291 : vector<1x256xf32>
    %295 = arith.addf %285, %294 : vector<1x256xf32>
    %c13_39 = arith.constant 13 : index
    %296 = memref.load %arg4[%c13_39] : memref<36xf32, #tpu.memory_space<smem>>
    %297 = vector.broadcast %296 : f32 to vector<1x256xf32>
    %298 = arith.mulf %297, %291 : vector<1x256xf32>
    %299 = arith.addf %289, %298 : vector<1x256xf32>
    %300 = vector.extract_strided_slice %229 {offsets = [0, 127], sizes = [1, 256], strides = [1, 1]} : vector<1x512xf32> to vector<1x256xf32>
    %301 = arith.mulf %300, %24 : vector<1x256xf32>
    %c14_40 = arith.constant 14 : index
    %302 = memref.load %arg4[%c14_40] : memref<36xf32, #tpu.memory_space<smem>>
    %303 = vector.broadcast %302 : f32 to vector<1x256xf32>
    %304 = arith.mulf %303, %301 : vector<1x256xf32>
    %305 = arith.addf %295, %304 : vector<1x256xf32>
    %c15_41 = arith.constant 15 : index
    %306 = memref.load %arg4[%c15_41] : memref<36xf32, #tpu.memory_space<smem>>
    %307 = vector.broadcast %306 : f32 to vector<1x256xf32>
    %308 = arith.mulf %307, %301 : vector<1x256xf32>
    %309 = arith.addf %299, %308 : vector<1x256xf32>
    %310 = vector.extract_strided_slice %228 {offsets = [0, 128], sizes = [1, 256], strides = [1, 1]} : vector<1x512xf32> to vector<1x256xf32>
    %c16_42 = arith.constant 16 : index
    %311 = memref.load %arg4[%c16_42] : memref<36xf32, #tpu.memory_space<smem>>
    %312 = vector.broadcast %311 : f32 to vector<1x256xf32>
    %313 = arith.mulf %312, %310 : vector<1x256xf32>
    %314 = arith.addf %305, %313 : vector<1x256xf32>
    %c17_43 = arith.constant 17 : index
    %315 = memref.load %arg4[%c17_43] : memref<36xf32, #tpu.memory_space<smem>>
    %316 = vector.broadcast %315 : f32 to vector<1x256xf32>
    %317 = arith.mulf %316, %310 : vector<1x256xf32>
    %318 = arith.addf %309, %317 : vector<1x256xf32>
    %319 = vector.extract_strided_slice %229 {offsets = [0, 128], sizes = [1, 256], strides = [1, 1]} : vector<1x512xf32> to vector<1x256xf32>
    %c18_44 = arith.constant 18 : index
    %320 = memref.load %arg4[%c18_44] : memref<36xf32, #tpu.memory_space<smem>>
    %321 = vector.broadcast %320 : f32 to vector<1x256xf32>
    %322 = arith.mulf %321, %319 : vector<1x256xf32>
    %323 = arith.addf %314, %322 : vector<1x256xf32>
    %c19_45 = arith.constant 19 : index
    %324 = memref.load %arg4[%c19_45] : memref<36xf32, #tpu.memory_space<smem>>
    %325 = vector.broadcast %324 : f32 to vector<1x256xf32>
    %326 = arith.mulf %325, %319 : vector<1x256xf32>
    %327 = arith.addf %318, %326 : vector<1x256xf32>
    %328 = vector.extract_strided_slice %228 {offsets = [0, 129], sizes = [1, 256], strides = [1, 1]} : vector<1x512xf32> to vector<1x256xf32>
    %329 = arith.mulf %328, %28 : vector<1x256xf32>
    %c20_46 = arith.constant 20 : index
    %330 = memref.load %arg4[%c20_46] : memref<36xf32, #tpu.memory_space<smem>>
    %331 = vector.broadcast %330 : f32 to vector<1x256xf32>
    %332 = arith.mulf %331, %329 : vector<1x256xf32>
    %333 = arith.addf %323, %332 : vector<1x256xf32>
    %c21_47 = arith.constant 21 : index
    %334 = memref.load %arg4[%c21_47] : memref<36xf32, #tpu.memory_space<smem>>
    %335 = vector.broadcast %334 : f32 to vector<1x256xf32>
    %336 = arith.mulf %335, %329 : vector<1x256xf32>
    %337 = arith.addf %327, %336 : vector<1x256xf32>
    %338 = vector.extract_strided_slice %229 {offsets = [0, 129], sizes = [1, 256], strides = [1, 1]} : vector<1x512xf32> to vector<1x256xf32>
    %339 = arith.mulf %338, %28 : vector<1x256xf32>
    %c22_48 = arith.constant 22 : index
    %340 = memref.load %arg4[%c22_48] : memref<36xf32, #tpu.memory_space<smem>>
    %341 = vector.broadcast %340 : f32 to vector<1x256xf32>
    %342 = arith.mulf %341, %339 : vector<1x256xf32>
    %343 = arith.addf %333, %342 : vector<1x256xf32>
    %c23_49 = arith.constant 23 : index
    %344 = memref.load %arg4[%c23_49] : memref<36xf32, #tpu.memory_space<smem>>
    %345 = vector.broadcast %344 : f32 to vector<1x256xf32>
    %346 = arith.mulf %345, %339 : vector<1x256xf32>
    %347 = arith.addf %337, %346 : vector<1x256xf32>
    %348 = vector.extract_strided_slice %228 {offsets = [0, 143], sizes = [1, 256], strides = [1, 1]} : vector<1x512xf32> to vector<1x256xf32>
    %349 = arith.mulf %348, %24 : vector<1x256xf32>
    %c24_50 = arith.constant 24 : index
    %350 = memref.load %arg4[%c24_50] : memref<36xf32, #tpu.memory_space<smem>>
    %351 = vector.broadcast %350 : f32 to vector<1x256xf32>
    %352 = arith.mulf %351, %349 : vector<1x256xf32>
    %353 = arith.addf %343, %352 : vector<1x256xf32>
    %c25_51 = arith.constant 25 : index
    %354 = memref.load %arg4[%c25_51] : memref<36xf32, #tpu.memory_space<smem>>
    %355 = vector.broadcast %354 : f32 to vector<1x256xf32>
    %356 = arith.mulf %355, %349 : vector<1x256xf32>
    %357 = arith.addf %347, %356 : vector<1x256xf32>
    %358 = vector.extract_strided_slice %229 {offsets = [0, 143], sizes = [1, 256], strides = [1, 1]} : vector<1x512xf32> to vector<1x256xf32>
    %359 = arith.mulf %358, %24 : vector<1x256xf32>
    %c26_52 = arith.constant 26 : index
    %360 = memref.load %arg4[%c26_52] : memref<36xf32, #tpu.memory_space<smem>>
    %361 = vector.broadcast %360 : f32 to vector<1x256xf32>
    %362 = arith.mulf %361, %359 : vector<1x256xf32>
    %363 = arith.addf %353, %362 : vector<1x256xf32>
    %c27_53 = arith.constant 27 : index
    %364 = memref.load %arg4[%c27_53] : memref<36xf32, #tpu.memory_space<smem>>
    %365 = vector.broadcast %364 : f32 to vector<1x256xf32>
    %366 = arith.mulf %365, %359 : vector<1x256xf32>
    %367 = arith.addf %357, %366 : vector<1x256xf32>
    %368 = vector.extract_strided_slice %228 {offsets = [0, 144], sizes = [1, 256], strides = [1, 1]} : vector<1x512xf32> to vector<1x256xf32>
    %c28_54 = arith.constant 28 : index
    %369 = memref.load %arg4[%c28_54] : memref<36xf32, #tpu.memory_space<smem>>
    %370 = vector.broadcast %369 : f32 to vector<1x256xf32>
    %371 = arith.mulf %370, %368 : vector<1x256xf32>
    %372 = arith.addf %363, %371 : vector<1x256xf32>
    %c29_55 = arith.constant 29 : index
    %373 = memref.load %arg4[%c29_55] : memref<36xf32, #tpu.memory_space<smem>>
    %374 = vector.broadcast %373 : f32 to vector<1x256xf32>
    %375 = arith.mulf %374, %368 : vector<1x256xf32>
    %376 = arith.addf %367, %375 : vector<1x256xf32>
    %377 = vector.extract_strided_slice %229 {offsets = [0, 144], sizes = [1, 256], strides = [1, 1]} : vector<1x512xf32> to vector<1x256xf32>
    %c30_56 = arith.constant 30 : index
    %378 = memref.load %arg4[%c30_56] : memref<36xf32, #tpu.memory_space<smem>>
    %379 = vector.broadcast %378 : f32 to vector<1x256xf32>
    %380 = arith.mulf %379, %377 : vector<1x256xf32>
    %381 = arith.addf %372, %380 : vector<1x256xf32>
    %c31_57 = arith.constant 31 : index
    %382 = memref.load %arg4[%c31_57] : memref<36xf32, #tpu.memory_space<smem>>
    %383 = vector.broadcast %382 : f32 to vector<1x256xf32>
    %384 = arith.mulf %383, %377 : vector<1x256xf32>
    %385 = arith.addf %376, %384 : vector<1x256xf32>
    %386 = vector.extract_strided_slice %228 {offsets = [0, 145], sizes = [1, 256], strides = [1, 1]} : vector<1x512xf32> to vector<1x256xf32>
    %387 = arith.mulf %386, %28 : vector<1x256xf32>
    %c32_58 = arith.constant 32 : index
    %388 = memref.load %arg4[%c32_58] : memref<36xf32, #tpu.memory_space<smem>>
    %389 = vector.broadcast %388 : f32 to vector<1x256xf32>
    %390 = arith.mulf %389, %387 : vector<1x256xf32>
    %391 = arith.addf %381, %390 : vector<1x256xf32>
    %c33_59 = arith.constant 33 : index
    %392 = memref.load %arg4[%c33_59] : memref<36xf32, #tpu.memory_space<smem>>
    %393 = vector.broadcast %392 : f32 to vector<1x256xf32>
    %394 = arith.mulf %393, %387 : vector<1x256xf32>
    %395 = arith.addf %385, %394 : vector<1x256xf32>
    %396 = vector.extract_strided_slice %229 {offsets = [0, 145], sizes = [1, 256], strides = [1, 1]} : vector<1x512xf32> to vector<1x256xf32>
    %397 = arith.mulf %396, %28 : vector<1x256xf32>
    %c34_60 = arith.constant 34 : index
    %398 = memref.load %arg4[%c34_60] : memref<36xf32, #tpu.memory_space<smem>>
    %399 = vector.broadcast %398 : f32 to vector<1x256xf32>
    %400 = arith.mulf %399, %397 : vector<1x256xf32>
    %401 = arith.addf %391, %400 : vector<1x256xf32>
    %c35_61 = arith.constant 35 : index
    %402 = memref.load %arg4[%c35_61] : memref<36xf32, #tpu.memory_space<smem>>
    %403 = vector.broadcast %402 : f32 to vector<1x256xf32>
    %404 = arith.mulf %403, %397 : vector<1x256xf32>
    %405 = arith.addf %395, %404 : vector<1x256xf32>
    %c0_62 = arith.constant 0 : index
    %406 = memref.load %arg5[%c0_62] : memref<2xf32, #tpu.memory_space<smem>>
    %407 = vector.broadcast %406 : f32 to vector<1x256xf32>
    %408 = arith.addf %401, %407 : vector<1x256xf32>
    %c1_63 = arith.constant 1 : index
    %409 = memref.load %arg5[%c1_63] : memref<2xf32, #tpu.memory_space<smem>>
    %410 = vector.broadcast %409 : f32 to vector<1x256xf32>
    %411 = arith.addf %405, %410 : vector<1x256xf32>
    %412 = vector.broadcast %0 : f32 to vector<1x256xf32>
    %413 = arith.mulf %412, %222 : vector<1x256xf32>
    %c0_64 = arith.constant 0 : index
    %c0_65 = arith.constant 0 : index
    %c0_66 = arith.constant 0 : index
    %414 = vector.load %arg7[%c0_64, %c0_65, %c0_66] : memref<1x4x256xf32, #tpu.memory_space<vmem>>, vector<1x1x256xf32>
    %415 = vector.shape_cast %414 : vector<1x1x256xf32> to vector<1x256xf32>
    %416 = vector.shape_cast %413 : vector<1x256xf32> to vector<1x1x256xf32>
    tpu.vector_store %arg7[%c0_64, %c0_65, %c0_66], %416 {strides = array<i32>} : memref<1x4x256xf32, #tpu.memory_space<vmem>>, vector<1x1x256xf32>,
    %417 = vector.broadcast %0 : f32 to vector<1x256xf32>
    %418 = arith.mulf %417, %223 : vector<1x256xf32>
    %c0_67 = arith.constant 0 : index
    %c1_68 = arith.constant 1 : index
    %c0_69 = arith.constant 0 : index
    %419 = vector.load %arg7[%c0_67, %c1_68, %c0_69] : memref<1x4x256xf32, #tpu.memory_space<vmem>>, vector<1x1x256xf32>
    %420 = vector.shape_cast %419 : vector<1x1x256xf32> to vector<1x256xf32>
    %421 = vector.shape_cast %418 : vector<1x256xf32> to vector<1x1x256xf32>
    tpu.vector_store %arg7[%c0_67, %c1_68, %c0_69], %421 {strides = array<i32>} : memref<1x4x256xf32, #tpu.memory_space<vmem>>, vector<1x1x256xf32>,
    %422 = vector.broadcast %2 : f32 to vector<1x256xf32>
    %423 = arith.mulf %422, %35 : vector<1x256xf32>
    %424 = vector.broadcast %3 : f32 to vector<1x256xf32>
    %425 = arith.mulf %424, %408 : vector<1x256xf32>
    %426 = arith.addf %423, %425 : vector<1x256xf32>
    %c0_70 = arith.constant 0 : index
    %c2_71 = arith.constant 2 : index
    %c0_72 = arith.constant 0 : index
    %427 = vector.load %arg7[%c0_70, %c2_71, %c0_72] : memref<1x4x256xf32, #tpu.memory_space<vmem>>, vector<1x1x256xf32>
    %428 = vector.shape_cast %427 : vector<1x1x256xf32> to vector<1x256xf32>
    %429 = vector.shape_cast %426 : vector<1x256xf32> to vector<1x1x256xf32>
    tpu.vector_store %arg7[%c0_70, %c2_71, %c0_72], %429 {strides = array<i32>} : memref<1x4x256xf32, #tpu.memory_space<vmem>>, vector<1x1x256xf32>,
    %430 = vector.broadcast %2 : f32 to vector<1x256xf32>
    %431 = arith.mulf %430, %37 : vector<1x256xf32>
    %432 = vector.broadcast %3 : f32 to vector<1x256xf32>
    %433 = arith.mulf %432, %411 : vector<1x256xf32>
    %434 = arith.addf %431, %433 : vector<1x256xf32>
    %c0_73 = arith.constant 0 : index
    %c3_74 = arith.constant 3 : index
    %c0_75 = arith.constant 0 : index
    %435 = vector.load %arg7[%c0_73, %c3_74, %c0_75] : memref<1x4x256xf32, #tpu.memory_space<vmem>>, vector<1x1x256xf32>
    %436 = vector.shape_cast %435 : vector<1x1x256xf32> to vector<1x256xf32>
    %437 = vector.shape_cast %434 : vector<1x256xf32> to vector<1x1x256xf32>
    tpu.vector_store %arg7[%c0_73, %c3_74, %c0_75], %437 {strides = array<i32>} : memref<1x4x256xf32, #tpu.memory_space<vmem>>, vector<1x1x256xf32>,
    return
  }
  func.func @transform_0(%arg0: i32) -> (i32, i32, i32) {
    %c0_i32 = arith.constant 0 : i32
    %c0_i32_0 = arith.constant 0 : i32
    %c0_i32_1 = arith.constant 0 : i32
    return %arg0, %c0_i32, %c0_i32_0 : i32, i32, i32
  }
  func.func @transform_1(%arg0: i32) -> i32 {
    %c0_i32 = arith.constant 0 : i32
    %c0_i32_0 = arith.constant 0 : i32
    return %c0_i32 : i32
  }
  func.func @transform_2(%arg0: i32) -> i32 {
    %c0_i32 = arith.constant 0 : i32
    %c0_i32_0 = arith.constant 0 : i32
    return %c0_i32 : i32
  }
  func.func @transform_3(%arg0: i32) -> i32 {
    %c0_i32 = arith.constant 0 : i32
    %c0_i32_0 = arith.constant 0 : i32
    return %c0_i32 : i32
  }
  func.func @transform_4(%arg0: i32) -> i32 {
    %c0_i32 = arith.constant 0 : i32
    %c0_i32_0 = arith.constant 0 : i32
    return %c0_i32 : i32
  }
  func.func @transform_5(%arg0: i32) -> i32 {
    %c0_i32 = arith.constant 0 : i32
    %c0_i32_0 = arith.constant 0 : i32
    return %c0_i32 : i32
  }
  func.func @transform_6(%arg0: i32) -> (i32, i32, i32) {
    %c0_i32 = arith.constant 0 : i32
    %c0_i32_0 = arith.constant 0 : i32
    %c0_i32_1 = arith.constant 0 : i32
    return %arg0, %c0_i32, %c0_i32_0 : i32, i32, i32
  }
}

</mosaic_0001>

<bundles_post_ra>
// kernel: tpu_custom_call.1
= control target key start
LH: loop header
LB: loop body
LE: loop exit
PB: predicated region body
PF: predicated region fallthrough
CT: control target
= control target key end

     0   :  { %11 = vsyncpa [#allocation3], 0  ;;  %s4378_s0 = inlined_call_operand.hbm [shape: f32[2,4,256], index: 0, kind: input, shape index: {}]   ;;  %s4379_s1 = inlined_call_operand.vmem [shape: f32[36], index: 1, kind: input, shape index: {}]   ;;  %s4380_s2 = inlined_call_operand.vmem [shape: f32[2], index: 2, kind: input, shape index: {}]   ;;  %s4381_s3 = inlined_call_operand.vmem [shape: f32[36], index: 3, kind: input, shape index: {}]   ;;  %s4382_s4 = inlined_call_operand.vmem [shape: f32[2], index: 4, kind: input, shape index: {}]   ;;  %s4383_s5 = inlined_call_operand.vmem [shape: f32[4], index: 5, kind: input, shape index: {}]   ;;  %s4384_s6 = inlined_call_operand.hbm [shape: f32[2,4,256], index: 6, kind: output, shape index: {}]  }
   0x1   :  { %13 = vsyncpa [#allocation3 + $0x1], 0 }
   0x2   :  { %14 = vsyncpa [#allocation5], 0 }
   0x3   :  { %15 = vsyncpa [#allocation8], 0 }
   0x4   :  { %16 = vsyncpa [#allocation11], 0 }
   0x5   :  { %17 = vsyncpa [#allocation4], 0 }
   0x6   :  { %19 = vsyncpa [#allocation4 + $0x1], 0  ;;  %s2781_s21 = smov 0   ;;  %s2783_s22 = smov 0  }
   0x7   :  { %s2785_s23 = smov 0   ;;  %s2787_s24 = smov 0  }
   0x8 LB: > { %s211_s27 = sshll.u32 %s4380_s2, 4  ;;  %s2805_s28 = sadd.s32 4294967295, %s2723_s24   ;;  %s2723_s24 = sphi %s2787_s24, %s4696_s24   ;;  %s2719_s23 = sphi %s2785_s23, %s4695_s23   ;;  %s2715_s22 = sphi %s2783_s22, %s4694_s22   ;;  %s2711_s21 = sphi %s2781_s21, %s4693_s21   ;;  %s212_s27 = int_to_ptr.vmem [resolvable:$true] %s211_s27 }
   0x9   : > { %p2287_p0 = scmp.ge.s32.totalorder %s2723_s24, 1  ;;  %p4385_p1 = scmp.eq.s32.totalorder %s2805_s28, 0 }
   0xa   : > { %p187_p2 = scmp.lt.s32.totalorder %s2723_s24, 3  ;;  %s233_s8 = sshll.u32 %s4382_s4, 4  ;;  %s234_s8 = int_to_ptr.vmem [resolvable:$true] %s233_s8 }
   0xb   : > { %s200_s11 = sshll.u32 %s4379_s1, 4  ;;  %s222_s15 = sshll.u32 %s4381_s3, 4  ;;  %s2829_s11 = int_to_ptr.vmem [resolvable:$true] %s200_s11  ;;  %s2834_s15 = int_to_ptr.vmem [resolvable:$true] %s222_s15 }
   0xc   : > { %p2810_p3 = pnand %p2287_p0, %p187_p2  ;;  %s2540_s16 = scalar_lea.vmem %s212_s27, 16 }
   0xd   : > { %p2541_p7 = scmp.ne.s32.totalorder %s212_s27, %s2540_s16  ;;  %p2548_p11 = scmp.lt.s32.totalorder %s212_s27, %s212_s27 }
   0xe   : > { %s4512_s29 = scalar_select %p2810_p3, 1, 0 }
   0xf   : > { %p2421_p5 = pneg %p2810_p3  ;;  %p2549_p12 = scmp.lt.s32.totalorder %s2540_s16, %s2540_s16 }
  0x11   : > { %p2825_p6 = pnand %p2421_p5, %p4385_p1  ;;  %p2550_p13 = por %p2549_p12, %p2548_p11 }
  0x13   : > { %p2838_p8 = pneg %p2825_p6 }
  0x15   : > { %p2543_p9 = pnand %p2838_p8, %p2541_p7 }
  0x17   : > { %p2544_p10 = pneg %p2543_p9 }
  0x19   : > { %p2551_p0 = pnand %p2550_p13, %p2544_p10 }
  0x1b   : > { %2554 = shalt.err (!%p2551_p0)
}
  0x1c   : > { %s2725_s18 = smov [#allocation7]   ;;  %s2555_s19 = scalar_lea.vmem %s234_s8, 16 }
  0x1d   : > { %2427 = dma.vmem_to_smem (!%p2825_p6), %s212_s27, 16, %s2725_s18, [#allocation8]  }
  0x1e   : > { %p2556_p2 = scmp.ne.s32.totalorder %s234_s8, %s2555_s19  ;;  %p2563_p1 = scmp.lt.s32.totalorder %s234_s8, %s234_s8 }
  0x1f   : > { %p2564_p3 = scmp.lt.s32.totalorder %s2555_s19, %s2555_s19 }
  0x20   : > { %p2558_p5 = pnand %p2556_p2, %p2838_p8 }
  0x21   : > { %p2565_p7 = por %p2564_p3, %p2563_p1 }
  0x22   : > { %p2559_p4 = pneg %p2558_p5 }
  0x24   : > { %p2566_p9 = pnand %p2565_p7, %p2559_p4 }
  0x26   : > { %2569 = shalt.err (!%p2566_p9)
}
  0x27   : > { %s2726_s20 = smov [#allocation10]   ;;  %s2570_s25 = scalar_lea.vmem %s2829_s11, 16 }
  0x28   : > { %2433 = dma.vmem_to_smem (!%p2825_p6), %s234_s8, 16, %s2726_s20, [#allocation11]  }
  0x29   : > { %p2571_p10 = scmp.ne.s32.totalorder %s2829_s11, %s2570_s25  ;;  %p2578_p13 = scmp.lt.s32.totalorder %s2829_s11, %s2829_s11 }
  0x2a   : > { %p2579_p0 = scmp.lt.s32.totalorder %s2570_s25, %s2570_s25 }
  0x2b   : > { %p2573_p11 = pnand %p2571_p10, %p2838_p8 }
  0x2c   : > { %p2580_p2 = por %p2579_p0, %p2578_p13 }
  0x2d   : > { %p2574_p12 = pneg %p2573_p11 }
  0x2f   : > { %p2581_p1 = pnand %p2580_p2, %p2574_p12 }
  0x31   : > { %2584 = shalt.err (!%p2581_p1)
}
  0x32   : > { %s2727_s26 = smov [#allocation6]   ;;  %s2585_s27 = scalar_lea.vmem %s2834_s15, 16 }
  0x33   : > { %2424 = dma.vmem_to_smem (!%p2825_p6), %s2829_s11, 16, %s2727_s26, [#allocation5]  }
  0x34   : > { %p2586_p3 = scmp.ne.s32.totalorder %s2834_s15, %s2585_s27  ;;  %p2593_p7 = scmp.lt.s32.totalorder %s2834_s15, %s2834_s15 }
  0x35   : > { %p2594_p9 = scmp.lt.s32.totalorder %s2585_s27, %s2585_s27 }
  0x36   : > { %p2588_p4 = pnand %p2586_p3, %p2838_p8 }
  0x37   : > { %p2595_p10 = por %p2594_p9, %p2593_p7 }
  0x38   : > { %p2589_p5 = pneg %p2588_p4 }
  0x3a   : > { %p2596_p11 = pnand %p2595_p10, %p2589_p5 }
  0x3c   : > { %2599 = shalt.err (!%p2596_p11)
}
  0x3d   : > { %s2728_s30 = smov [#allocation9]   ;;  %s244_s9 = sshll.u32 %s4383_s5, 4  ;;  %s245_s9 = int_to_ptr.vmem [resolvable:$true] %s244_s9 }
  0x3e   : > { %2430 = dma.vmem_to_smem (!%p2825_p6), %s2834_s15, 16, %s2728_s30, [#allocation8]  }
  0x3f   : > { %s2600_s10 = scalar_lea.vmem %s245_s9, 16  ;;  %p2608_p2 = scmp.lt.s32.totalorder %s245_s9, %s245_s9 }
  0x40   : > { %p2601_p12 = scmp.ne.s32.totalorder %s245_s9, %s2600_s10  ;;  %p2609_p1 = scmp.lt.s32.totalorder %s2600_s10, %s2600_s10 }
  0x42   : > { %p2603_p13 = pnand %p2601_p12, %p2838_p8  ;;  %p2610_p3 = por %p2609_p1, %p2608_p2 }
  0x44   : > { %p2604_p0 = pneg %p2603_p13 }
  0x46   : > { %p2611_p4 = pnand %p2610_p3, %p2604_p0 }
  0x48   : > { %2614 = shalt.err (!%p2611_p4)
}
  0x49   : > { %s2729_s11 = smov [#allocation12]   ;;  %s2286_s13 = sadd.s32 4294967294, %s2723_s24  }
  0x4a   : > { %2436 = dma.vmem_to_smem (!%p2825_p6), %s245_s9, 16, %s2729_s11, [#allocation11]  }
  0x4b   : > { %s2877_s14 = sadd.s32 1, %s2723_s24   ;;  %s32_s12 = sadd.s32 1, %s2719_s23 }
  0x4c   : > { %s29_s15 = ssub.s32 %s2723_s24, %s2877_s14  ;;  %p39_p8 = scmp.ne.s32.totalorder %s2719_s23, %s2715_s22 }
  0x4d   : > { %p30_p5 = scmp.eq.s32.totalorder %s29_s15, 0  ;;  %p40_p7 = scmp.eq.s32.totalorder %s2723_s24, 0 }
  0x4e   : > { %p45_p9 = scmp.ne.s32.totalorder %s2715_s22, %s2711_s21  ;;  %p174_p10 = scmp.eq.s32.totalorder %s2805_s28, 1 }
  0x4f   : > { %s2889_s16 = scalar_select %p30_p5, %s2719_s23, %s32_s12  }
  0x50   : > { %p41_p11 = por %p40_p7, %p39_p8  ;;  %p4515_p12 = scmp.eq.s32.totalorder %s2805_s28, 0 }
  0x51   : > { %p2897_p6 = por %p174_p10, %p39_p8  ;;  %p180_p0 = scmp.eq.s32.totalorder %s2286_s13, 1 }
  0x52   : > { %p2893_p13 = por %p4515_p12, %p45_p9  ;;  %p2450_p2 = scmp.lt.s32.totalorder %s2723_s24, 2 }
  0x53   : > { %s4517_s18 = scalar_select %p2897_p6, 1, 0 }
  0x54   : > { %s255_s19 = sand.u32 1, %s2719_s23   ;;  %p2903_p1 = por %p180_p0, %p45_p9 }
  0x55   : > { %s2294_s25 = sshll.u32 %s255_s19, 3  ;;  %s2395_s26 = sshll.u32 %s2723_s24, 7 }
  0x56   : > { %s4518_s20 = scalar_select %p2903_p1, 1, 0 }
  0x57   : > { %s2911_s7 = scalar_lea.hbm %s4378_s0, %s2395_s26  ;;  %s259_s8 = scalar_lea.vmem [#allocation2], %s2294_s25 }
  0x58   : > { %s267_s9 = sshll.u32 %s259_s8, 4  ;;  %p2913_p3 = pnand %p2450_p2, %p41_p11  ;;  %s2917_s9 = int_to_ptr.vmem [resolvable:$true] %s267_s9 }
  0x59   : > { %s256_s11 = scalar_lea.sflag [#allocation3], %s255_s19  ;;  %s2615_s13 = scalar_lea.hbm %s2911_s7, 128 }
  0x5a   : > { %p2616_p4 = scmp.ne.s32.totalorder %s2911_s7, %s2615_s13  ;;  %p2617_p8 = pneg %p2913_p3 }
  0x5b   : > { %s2620_s25 = scalar_lea.hbm %s4378_s0, 256  ;;  %p2621_p9 = scmp.lt.u32.totalorder %s2911_s7, %s4378_s0 }
  0x5c   : > { %p2618_p5 = pnand %p2617_p8, %p2616_p4  ;;  %p2622_p10 = scmp.lt.u32.totalorder %s2620_s25, %s2615_s13 }
  0x5d   : > { %p2624_p12 = scmp.lt.u32.totalorder %s2615_s13, %s2911_s7 }
  0x5e   : > { %p2619_p7 = pneg %p2618_p5  ;;  %p2623_p11 = por %p2622_p10, %p2621_p9 }
  0x60   : > { %p2625_p0 = por %p2624_p12, %p2623_p11 }
  0x62   : > { %p2626_p2 = pnand %p2625_p0, %p2619_p7 }
  0x64   : > { %2629 = shalt.err (!%p2626_p2)
}
  0x65   : > { %s2630_s19 = scalar_lea.vmem %s2917_s9, 128  ;;  %s2730_s30 = smov [#allocation2]  }
  0x66   : > { %p2631_p4 = scmp.ne.s32.totalorder %s2917_s9, %s2630_s19  ;;  %s2635_s8 = sshll.u32 %s2730_s30, 4  ;;  %s2636_s8 = int_to_ptr.vmem [resolvable:$false] %s2635_s8 }
  0x67   : > { %s2637_s12 = scalar_lea.vmem %s2636_s8, 256  ;;  %p2638_p6 = scmp.lt.s32.totalorder %s2917_s9, %s2636_s8 }
  0x68   : > { %p2633_p5 = pnand %p2631_p4, %p2617_p8  ;;  %p2639_p9 = scmp.lt.s32.totalorder %s2637_s12, %s2630_s19 }
  0x6a   : > { %p2634_p1 = pneg %p2633_p5  ;;  %p2640_p10 = por %p2639_p9, %p2638_p6 }
  0x6c   : > { %p2641_p11 = pnand %p2640_p10, %p2634_p1 }
  0x6e   : > { %2644 = shalt.err (!%p2641_p11)
}
  0x6f   : > { %2440 = dma.hbm_to_vmem [thread:$0]  (!%p2913_p3), %s2911_s7, 128, %s2917_s9, %s256_s11  }
  0x70   : > { %p4520_p7 = scmp.ne.s32.totalorder %s4512_s29, 0 }
  0x72   : > { %276 = sbr.rel (%p4520_p7) target bundleno = 1052 (0x41c), region = 44 }
  0x79   : > { %s2947_s13 = sand.u32 1, %s2715_s22  }
  0x7a   : > { %s4390_s15 = sshll.u32 %s2947_s13, 3  ;;  %s279_s25 = scalar_lea.sflag [#allocation3], %s2947_s13 }
  0x7b   : > { %s2953_s26 = scalar_lea.vmem [#allocation2], %s4390_s15 }
  0x7c   : > { %2690 = dma.done.wait (%p2893_p13), %s279_s25, 128  }
  0x7d   : > { %2692 = vsyncadd (%p2893_p13), %s279_s25, 4294967168  ;;  %p4521_p6 = scmp.eq.s32.totalorder %s2805_s28, 0 }
  0x7f   : > { %2694 = dma.done.wait (%p4521_p6), [#allocation5], 16   ;;  %p4522_p1 = pmov %p4521_p6 }
  0x81   : > { %2696 = vsyncadd (%p4522_p1), [#allocation5], 4294967280  ;;  %p4523_p3 = pmov %p4522_p1 }
  0x82   : > { %p4524_p8 = pmov %p4522_p1 }
  0x83   : > { %2698 = dma.done.wait (%p4523_p3), [#allocation8], 32  }
  0x84   : > { %2700 = vsyncadd (%p4524_p8), [#allocation8], 4294967264  ;;  %p4525_p12 = pmov %p4522_p1 }
  0x85   : > { %p4526_p0 = pmov %p4522_p1 }
  0x86   : > { %2702 = dma.done.wait (%p4525_p12), [#allocation11], 32  }
  0x87   : > { %2704 = vsyncadd (%p4526_p0), [#allocation11], 4294967264 }
  0x88   : > { %307 = sfence }
  0x89   : > { %s2318_s29 = sld [smem:[#allocation6 + $0x4]]  ;;  %v4391_v0 = vlaneseq  ;;  %v2731_v8 = vmov 0.0   ;;  %v2313_v10 = vld [vmem:[%s2953_s26 + $0x2] ss:$4 sm:$0x3]  ;;  %s2732_s17 = smov 127  }
  0x8a   : > { %s4388_s7 = smov 111   ;;  %s2319_s9 = sld [smem:[#allocation6 + $0x5]]  ;;  %v2314_v23 = vld [vmem:[%s2953_s26 + $0x3] ss:$4 sm:$0x3]  ;;  %vm547_vm4 = vcmask 924672  }
  0x8b   : > { %v337_v1 = vand.u32 127, %v4391_v0  ;;  %v2973_v4 = vshrl.u32 %v4391_v0, 7  ;;  %s2734_s10 = smov 113   ;;  %s2735_s11 = smov 1   ;;  %vm466_vm5 = vcmask 1039360   ;;  %vm820_vm6 = vcmask 7168  }
  0x8c   : > { %s2320_s27 = sld [smem:[#allocation6 + $0x6]]  ;;  %s2321_s19 = sld [smem:[#allocation6 + $0x7]]  ;;  %vm923_vm7 = vcmask 121856   ;;  %vm1115_vm8 = vcmask 138240   ;;  %vm410_vm9 = vcmask 908288   ;;  %vm569_vm10 = vcmask 1031168  }
  0x8d   : > { %v338_v2 = vadd.s32 128, %v337_v1  ;;  %v343_v3 = vand.u32 15, %v337_v1  ;;  %4527 = vst [vmem:[#allocation19_spill] sm:$0xff] %v2973_v4  ;;  %v2977_v11 = vsub.s32 0, %v2973_v4  ;;  %v2981_v13 = vsub.s32 1, %v2973_v4  ;;  %s2736_s30 = smov 15  }
  0x8e   : > { %s4398_s8 = smov 17   ;;  %s2330_s12 = sld [smem:[#allocation6 + $0x10]]  ;;  %vm671_vm11 = vcmask 916480   ;;  %vm842_vm12 = vcmask 900096   ;;  %vm945_vm13 = vcmask 785408   ;;  %vm1036_vm14 = vcmask 777216  }
  0x8f   : > { %v453_v5 = vstv %s2318_s29  ;;  %v350_v6 = vand.u32 15, %v338_v2  ;;  %vm363_vm0 = vcmp.ne.s32.totalorder %v343_v3, 0  ;;  %4528 = vst [vmem:[#allocation20_spill] sm:$0xff] %v2977_v11  ;;  %vm369_vm2 = vcmp.ne.s32.totalorder %v343_v3, 15  ;;  %4529 = vst [vmem:[#allocation21_spill] sm:$0xff] %v2981_v13  ;;  %s2331_s25 = sld [smem:[#allocation6 + $0x11]] }
  0x90   : > { %v454_v7 = vmul.f32 0.0, %v453_v5  ;;  %v2308_v9 = vsel %vm363_vm0, 1.0, %v2731_v8  ;;  %v2310_v14 = vsel %vm369_vm2, 1.0, %v2731_v8  ;;  %v2984_v17 = vrot.slane %v2313_v10, %v2977_v11  ;;  %s2332_s29 = sld [smem:[#allocation6 + $0x12]]  ;;  %s2357_s15 = sld [smem:[#allocation9 + $0x7]] }
  0x91   : > { %vm364_vm1 = vcmp.ne.s32.totalorder %v350_v6, 0  ;;  %vm370_vm3 = vcmp.ne.s32.totalorder %v350_v6, 15  ;;  %v2988_v19 = vrot.slane %v2313_v10, %v2981_v13  ;;  %v476_v22 = vstv %s2319_s9  ;;  %s2333_s9 = sld [smem:[#allocation6 + $0x13]]  ;;  %p4690_p2 = scmp.ne.s32.totalorder %s4517_s18, 0 }
  0x92   : > { %460 = vrot.lane.b32.xlu1 %v454_v7, %s2732_s17  ;;  %v2309_v12 = vsel %vm364_vm1, 1.0, %v2731_v8  ;;  %v2311_v15 = vsel %vm370_vm3, 1.0, %v2731_v8  ;;  %v455_v20 = vmul.f32 %v453_v5, %v2984_v17  ;;  %v477_v24 = vmul.f32 0.0, %v476_v22 }
  0x93   : > { %v2508_v16 = vpack.i.bf16 %v2309_v12, %v2308_v9  ;;  %v2513_v18 = vpack.i.bf16 %v2311_v15, %v2310_v14  ;;  %v456_v21 = vmul.f32 %v453_v5, %v2988_v19  ;;  %v2997_v25 = vrot.slane %v2314_v23, %v2977_v11 }
  0x94   : > { %v479_v26 = vmul.f32 %v476_v22, %v2988_v19  ;;  %v498_v27 = vstv %s2320_s27  ;;  %v478_v28 = vmul.f32 %v476_v22, %v2984_v17  ;;  %v520_v30 = vstv %s2321_s19  ;;  %s2325_s27 = sld [smem:[#allocation6 + $0xb]]  ;;  %s2324_s19 = sld [smem:[#allocation6 + $0xa]] }
  0x95   : > { %2509 = vrot.lane.b32.xlu0 %v2508_v16, %s4388_s7  ;;  %v500_v29 = vmul.f32 %v498_v27, %v2997_v25  ;;  %v3006_v31 = vrot.slane %v2314_v23, %v2981_v13  ;;  %v499_v32 = vmul.f32 0.0, %v498_v27  ;;  %v521_v33 = vmul.f32 0.0, %v520_v30 }
  0x96   : > { %2519 = vrot.lane.b32.xlu1 %v2508_v16, %s2732_s17  ;;  %v749_v36 = vstv %s2330_s12  ;;  %v522_v37 = vmul.f32 %v520_v30, %v2997_v25  ;;  %v766_v39 = vstv %s2331_s25  ;;  %v783_v42 = vstv %s2332_s29  ;;  %s2326_s12 = sld [smem:[#allocation6 + $0xc]]  ;;  %s2329_s25 = sld [smem:[#allocation6 + $0xf]] }
  0x97   : > { %v501_v34 = vmul.f32 %v498_v27, %v3006_v31  ;;  %v523_v35 = vmul.f32 %v520_v30, %v3006_v31  ;;  %v751_v38 = vmul.f32 %v749_v36, %v2988_v19  ;;  %v750_v40 = vmul.f32 %v749_v36, %v2984_v17  ;;  %s2328_s29 = sld [smem:[#allocation6 + $0xe]] }
  0x98   : > { %v768_v41 = vmul.f32 %v766_v39, %v2988_v19  ;;  %v767_v43 = vmul.f32 %v766_v39, %v2984_v17  ;;  %v785_v44 = vmul.f32 %v783_v42, %v3006_v31  ;;  %v800_v45 = vstv %s2333_s9  ;;  %s4452_s9 = smov 126  }
  0x99   : > { %2514 = vrot.lane.b32.xlu0 %v2513_v18, %s2734_s10  ;;  %v784_v46 = vmul.f32 %v783_v42, %v2997_v25  ;;  %v802_v47 = vmul.f32 %v800_v45, %v3006_v31  ;;  %v801_v48 = vmul.f32 %v800_v45, %v2997_v25  ;;  %s2323_s10 = sld [smem:[#allocation6 + $0x9]]  ;;  %vm1137_vm15 = vcmask 769024  }
  0x9a   : > { %2524 = vrot.lane.b32.xlu1 %v2513_v18, %s2735_s11  ;;  %s2322_s11 = sld [smem:[#allocation6 + $0x8]]  ;;  %v3056_v60 = vstv %s2325_s27  ;;  %v3058_v61 = vstv %s2324_s19  ;;  %s2336_s27 = sld [smem:[#allocation6 + $0x16]] }
  0x9b   : > { %s4443_s19 = smov 112  }
  0x9c   : > { %v3068_v1 = vstv %s2326_s12  ;;  %v3085_v9 = vstv %s2329_s25  ;;  %s2338_s12 = sld [smem:[#allocation6 + $0x18]]  ;;  %s4502_s25 = smov 110  }
  0x9d   : > { %462 = vrot.lane.b32.xlu0 %v455_v20, %s2732_s17  ;;  %v3087_v10 = vstv %s2328_s29  ;;  %s2339_s29 = sld [smem:[#allocation6 + $0x19]] }
  0x9e   : > { %464 = vrot.lane.b32.xlu1 %v456_v21, %s2732_s17 }
  0x9f   : > { %v3043_v54 = vstv %s2323_s10  ;;  %s2335_s10 = sld [smem:[#allocation6 + $0x15]] }
  0xa0   : > { %v3045_v55 = vstv %s2322_s11  ;;  %s2334_s11 = sld [smem:[#allocation6 + $0x14]] }
  0xa1   : > { %2529 = vrot.lane.b32.xlu0 %v2508_v16, %s2736_s30  ;;  %s2327_s30 = sld [smem:[#allocation6 + $0xd]] }
  0xa2   : > { %2534 = vrot.lane.b32.xlu1 %v2513_v18, %s4398_s8  ;;  %s2359_s8 = sld [smem:[#allocation9 + $0x9]] }
  0xa3   : > { %v3145_v42 = vstv %s2339_s29  ;;  %s2344_s29 = sld [smem:[#allocation6 + $0x1e]] }
  0xa5   : > { %483 = vrot.lane.b32.xlu0 %v477_v24, %s2732_s17  ;;  %v3095_v15 = vstv %s2335_s10  ;;  %s4500_s10 = smov 96  }
  0xa6   : > { %487 = vrot.lane.b32.xlu1 %v479_v26, %s2732_s17  ;;  %v3097_v16 = vstv %s2334_s11  ;;  %s2340_s11 = sld [smem:[#allocation6 + $0x1a]] }
  0xa7   : > { %v3066_v63 = vstv %s2327_s30  ;;  %s2337_s30 = sld [smem:[#allocation6 + $0x17]] }
  0xa9   : > { %485 = vrot.lane.b32.xlu0 %v478_v28, %s2732_s17  ;;  %v3116_v28 = vstv %s2336_s27  ;;  %s2341_s27 = sld [smem:[#allocation6 + $0x1b]] }
  0xaa   : > { %507 = vrot.lane.b32.xlu1 %v500_v29, %s2732_s17 }
  0xad   : > { %505 = vrot.lane.b32.xlu0 %v499_v32, %s2732_s17 }
  0xae   : > { %527 = vrot.lane.b32.xlu1 %v521_v33, %s2732_s17 }
  0xb1   : > { %509 = vrot.lane.b32.xlu0 %v501_v34, %s2732_s17 }
  0xb2   : > { %531 = vrot.lane.b32.xlu1 %v523_v35, %s2732_s17  ;;  %v3130_v35 = vstv %s2337_s30  ;;  %s2342_s30 = sld [smem:[#allocation6 + $0x1c]] }
  0xb5   : > { %529 = vrot.lane.b32.xlu0 %v522_v37, %s2732_s17  ;;  %v3136_v37 = vstv %s2338_s12  ;;  %s2343_s12 = sld [smem:[#allocation6 + $0x1d]] }
  0xb6   : > { %756 = vrot.lane.b32.xlu1 %v751_v38, %s4388_s7 }
  0xb9   : > { %754 = vrot.lane.b32.xlu0 %v750_v40, %s4388_s7 }
  0xba   : > { %773 = vrot.lane.b32.xlu1 %v768_v41, %s4388_s7 }
  0xbd   : > { %771 = vrot.lane.b32.xlu0 %v767_v43, %s4388_s7 }
  0xbe   : > { %790 = vrot.lane.b32.xlu1 %v785_v44, %s4388_s7 }
  0xc1   : > { %788 = vrot.lane.b32.xlu0 %v784_v46, %s4388_s7 }
  0xc2   : > { %807 = vrot.lane.b32.xlu1 %v802_v47, %s4388_s7 }
  0xc5   : > { %805 = vrot.lane.b32.xlu0 %v801_v48, %s4388_s7  ;;  %s2356_s7 = sld [smem:[#allocation9 + $0x6]] }
 0x104   : > { %v3034_v49 = vpop.permute.xlu1 %460 }
 0x107   : > { %v3036_v50 = vpop.permute.xlu0 %2509 }
 0x108   : > { %v3041_v53 = vpop.permute.xlu1 %2519 }
 0x109   : > { %v2521_v56 = vunpack.i.l.bf16 %v3041_v53  ;;  %v3124_v30 = vunpack.i.h.bf16 %v3041_v53 }
 0x10b   : > { %v3038_v51 = vpop.permute.xlu0 %2514  ;;  %v3062_v62 = vmul.f32 0.0, %v2521_v56  ;;  %4533 = vst [vmem:[#allocation25_spill] sm:$0xff] %v3124_v30  ;;  %v656_v40 = vmul.f32 %v3124_v30, %v2988_v19  ;;  %v703_v45 = vmul.f32 %v3124_v30, %v3006_v31 }
 0x10c   : > { %v2516_v52 = vunpack.i.l.bf16 %v3038_v51  ;;  %v3074_v5 = vpop.permute.xlu1 %2524  ;;  %v3100_v18 = vunpack.i.h.bf16 %v3038_v51 }
 0x10d   : > { %v3077_v6 = vunpack.i.l.bf16 %v3074_v5  ;;  %v682_v7 = vmul.f32 %v3066_v63, %v3062_v62  ;;  %v659_v8 = vmul.f32 %v3068_v1, %v3062_v62  ;;  %v728_v20 = vmul.f32 %v3085_v9, %v3062_v62 }
 0x10e   : > { %v3050_v57 = vmul.f32 0.0, %v2516_v52  ;;  %4531 = vst [vmem:[#allocation23_spill] sm:$0xff] %v3100_v18  ;;  %v706_v21 = vmul.f32 %v3087_v10, %v3062_v62  ;;  %v554_v26 = vmul.f32 %v3100_v18, %v2988_v19  ;;  %v601_v34 = vmul.f32 %v3100_v18, %v3006_v31 }
 0x10f   : > { %4530 = vst [vmem:[#allocation22_spill] sm:$0xff] %v3077_v6  ;;  %v825_v12 = vmul.f32 %v3077_v6, %v2984_v17  ;;  %v3093_v14 = vpop.permute.xlu0 %462  ;;  %v873_v24 = vmul.f32 %v3077_v6, %v2997_v25  ;;  %v2527_v43 = vunpack.i.h.bf16 %v3074_v5  ;;  %v661_v44 = vmul.f32 %v3068_v1, %v656_v40 }
 0x110   : > { %v580_v58 = vmul.f32 %v3043_v54, %v3050_v57  ;;  %v557_v59 = vmul.f32 %v3045_v55, %v3050_v57  ;;  %v626_v2 = vmul.f32 %v3056_v60, %v3050_v57  ;;  %v604_v3 = vmul.f32 %v3058_v61, %v3050_v57 }
 0x111   : > { %v853_v22 = vmul.f32 %v3095_v15, %v825_v12  ;;  %v830_v23 = vmul.f32 %v3097_v16, %v825_v12  ;;  %v877_v32 = vmul.f32 %v3116_v28, %v873_v24  ;;  %v559_v33 = vmul.f32 %v3045_v55, %v554_v26 }
 0x112   : > { %586 = vrot.lane.b32.xlu1 %v580_v58, %s4452_s9  ;;  %563 = vrot.lane.b32.xlu0 %v557_v59, %s4452_s9  ;;  %v899_v38 = vmul.f32 %v3130_v35, %v873_v24  ;;  %v606_v39 = vmul.f32 %v3058_v61, %v601_v34  ;;  %v3154_v47 = vmul.f32 0.0, %v2527_v43  ;;  %v708_v48 = vmul.f32 %v3087_v10, %v703_v45 }
 0x113   : > { %v3114_v27 = vpop.permute.xlu0 %2529  ;;  %v582_v59 = vmul.f32 %v3043_v54, %v554_v26  ;;  %v628_v5 = vmul.f32 %v3056_v60, %v601_v34  ;;  %v684_v12 = vmul.f32 %v3066_v63, %v656_v40  ;;  %v730_v51 = vmul.f32 %v3085_v9, %v703_v45 }
 0x114   : > { %v3119_v29 = vunpack.i.l.bf16 %v3114_v27  ;;  %v2532_v58 = vunpack.i.h.bf16 %v3114_v27  ;;  %v855_v24 = vmul.f32 %v3095_v15, %v3154_v47  ;;  %v901_v53 = vmul.f32 %v3130_v35, %v3154_v47 }
 0x116   : > { %632 = vrot.lane.b32.xlu1 %v626_v2, %s4452_s9  ;;  %610 = vrot.lane.b32.xlu0 %v604_v3, %s4452_s9  ;;  %4532 = vst [vmem:[#allocation24_spill] sm:$0xff] %v3119_v29  ;;  %v928_v36 = vmul.f32 %v3119_v29, %v2984_v17  ;;  %v832_v2 = vmul.f32 %v3097_v16, %v3154_v47  ;;  %v3165_v3 = vmul.f32 0.0, %v2532_v58 }
 0x118   : > { %v933_v41 = vmul.f32 %v3136_v37, %v928_v36  ;;  %v956_v46 = vmul.f32 %v3145_v42, %v928_v36 }
 0x11a   : > { %688 = vrot.lane.b32.xlu1 %v682_v7, %s4443_s19  ;;  %665 = vrot.lane.b32.xlu0 %v659_v8, %s4443_s19  ;;  %v879_v7 = vmul.f32 %v3116_v28, %v3154_v47  ;;  %v3173_v8 = vsel %vm547_vm4, %v2516_v52, %v3100_v18 }
 0x11b   : > { %4534 = vst [vmem:[#allocation26_spill] sm:$0xff] %v3173_v8 }
 0x11e   : > { %734 = vrot.lane.b32.xlu1 %v728_v20, %s4443_s19  ;;  %712 = vrot.lane.b32.xlu0 %v706_v21, %s4443_s19  ;;  %v935_v20 = vmul.f32 %v3136_v37, %v3165_v3  ;;  %v553_v21 = vmul.f32 %v3173_v8, %v2984_v17 }
 0x120   : > { %v581_v52 = vmul.f32 %v3043_v54, %v553_v21  ;;  %v558_v34 = vmul.f32 %v3045_v55, %v553_v21  ;;  %v1023_v21 = vstv %s2342_s30  ;;  %s2346_s30 = sld [smem:[#allocation6 + $0x20]] }
 0x122   : > { %859 = vrot.lane.b32.xlu1 %v853_v22, %s4502_s25  ;;  %836 = vrot.lane.b32.xlu0 %v830_v23, %s4502_s25  ;;  %v600_v22 = vmul.f32 %v3173_v8, %v2997_v25  ;;  %v3192_v23 = vsel %vm466_vm5, %v2521_v56, %v3124_v30 }
 0x123   : > { %4535 = vst [vmem:[#allocation27_spill] sm:$0xff] %v3192_v23  ;;  %v655_v54 = vmul.f32 %v3192_v23, %v2984_v17  ;;  %v702_v27 = vmul.f32 %v3192_v23, %v2997_v25  ;;  %v3403_v23 = vstv %s2359_s8  ;;  %s2364_s8 = sld [smem:[#allocation9 + $0xe]] }
 0x124   : > { %v627_v26 = vmul.f32 %v3056_v60, %v600_v22  ;;  %v3211_v60 = vpop.permute.xlu1 %464  ;;  %v605_v40 = vmul.f32 %v3058_v61, %v600_v22  ;;  %4555 = vst [vmem:[#allocation47_spill] sm:$0xff] %v3403_v23  ;;  %v1463_v8 = vmul.f32 %v3403_v23, %v3050_v57 }
 0x125   : > { %v683_v56 = vmul.f32 %v3066_v63, %v655_v54  ;;  %v707_v45 = vmul.f32 %v3087_v10, %v702_v27 }
 0x126   : > { %883 = vrot.lane.b32.xlu1 %v877_v32, %s4502_s25  ;;  %567 = vrot.lane.b32.xlu0 %v559_v33, %s4452_s9  ;;  %v3209_v32 = vsel %vm820_vm6, %v3077_v6, %v2527_v43  ;;  %v729_v33 = vmul.f32 %v3085_v9, %v702_v27  ;;  %v3234_v43 = vsel %vm923_vm7, %v3119_v29, %v2532_v58  ;;  %v1046_v27 = vstv %s2343_s12  ;;  %s2347_s12 = sld [smem:[#allocation6 + $0x21]] }
 0x127   : > { %4536 = vst [vmem:[#allocation28_spill] sm:$0xff] %v3209_v32  ;;  %v826_v36 = vmul.f32 %v3209_v32, %v2988_v19  ;;  %v874_v9 = vmul.f32 %v3209_v32, %v3006_v31  ;;  %4537 = vst [vmem:[#allocation29_spill] sm:$0xff] %v3234_v43 }
 0x128   : > { %v3221_v63 = vpop.permute.xlu1 %2534 }
 0x129   : > { %v878_v55 = vmul.f32 %v3116_v28, %v874_v9  ;;  %v900_v61 = vmul.f32 %v3130_v35, %v874_v9  ;;  %v929_v28 = vmul.f32 %v3234_v43, %v2988_v19  ;;  %v831_v58 = vmul.f32 %v3097_v16, %v826_v36 }
 0x12a   : > { %905 = vrot.lane.b32.xlu1 %v899_v38, %s4502_s25  ;;  %614 = vrot.lane.b32.xlu0 %v606_v39, %s4452_s9  ;;  %v3223_v38 = vpop.permute.xlu0 %483  ;;  %v854_v39 = vmul.f32 %v3095_v15, %v826_v36  ;;  %v976_v35 = vmul.f32 %v3119_v29, %v2997_v25  ;;  %v1047_v36 = vmul.f32 %v1046_v27, %v2984_v17  ;;  %v1068_v9 = vstv %s2344_s29  ;;  %s2348_s29 = sld [smem:[#allocation6 + $0x22]] }
 0x12b   : > { %v957_v10 = vmul.f32 %v3145_v42, %v929_v28 }
 0x12e   : > { %939 = vrot.lane.b32.xlu1 %v933_v41, %s4500_s10  ;;  %669 = vrot.lane.b32.xlu0 %v661_v44, %s4443_s19  ;;  %v660_v41 = vmul.f32 %v3068_v1, %v655_v54  ;;  %v3236_v44 = vpop.permute.xlu1 %487  ;;  %v3238_v15 = vpop.permute.xlu0 %485 }
 0x132   : > { %962 = vrot.lane.b32.xlu1 %v956_v46, %s4500_s10  ;;  %716 = vrot.lane.b32.xlu0 %v708_v48, %s4443_s19  ;;  %v3248_v1 = vpop.permute.xlu1 %507  ;;  %v3250_v46 = vpop.permute.xlu0 %505  ;;  %v934_v48 = vmul.f32 %v3136_v37, %v929_v28  ;;  %v1070_v28 = vmul.f32 %v1068_v9, %v3006_v31 }
 0x136   : > { %590 = vrot.lane.b32.xlu1 %v582_v59, %s4452_s9  ;;  %840 = vrot.lane.b32.xlu0 %v832_v2, %s4502_s25  ;;  %v979_v59 = vstv %s2340_s11  ;;  %v3263_v37 = vpop.permute.xlu0 %509  ;;  %s2742_s11 = smov 95  }
 0x137   : > { %v980_v2 = vmul.f32 %v979_v59, %v976_v35  ;;  %v982_v22 = vmul.f32 %v979_v59, %v3165_v3 }
 0x13a   : > { %636 = vrot.lane.b32.xlu1 %v628_v5, %s4452_s9  ;;  %887 = vrot.lane.b32.xlu0 %v879_v7, %s4502_s25  ;;  %v977_v5 = vmul.f32 %v3234_v43, %v3006_v31  ;;  %v3261_v7 = vpop.permute.xlu1 %527 }
 0x13c   : > { %v981_v16 = vmul.f32 %v979_v59, %v977_v5  ;;  %v2537_v59 = vunpack.i.h.bf16 %v3221_v63 }
 0x13e   : > { %692 = vrot.lane.b32.xlu1 %v684_v12, %s4443_s19  ;;  %943 = vrot.lane.b32.xlu0 %v935_v20, %s4500_s10  ;;  %v958_v12 = vmul.f32 %v3145_v42, %v3165_v3  ;;  %v1001_v20 = vstv %s2341_s27  ;;  %v1024_v42 = vmul.f32 %v1023_v21, %v2984_v17  ;;  %s2345_s27 = sld [smem:[#allocation6 + $0x1f]] }
 0x142   : > { %738 = vrot.lane.b32.xlu1 %v730_v51, %s4443_s19  ;;  %588 = vrot.lane.b32.xlu0 %v581_v52, %s4452_s9  ;;  %v3271_v51 = vpop.permute.xlu1 %531  ;;  %v3273_v52 = vpop.permute.xlu0 %529 }
 0x146   : > { %863 = vrot.lane.b32.xlu1 %v855_v24, %s4502_s25  ;;  %634 = vrot.lane.b32.xlu0 %v627_v26, %s4452_s9  ;;  %v1002_v24 = vmul.f32 %v1001_v20, %v976_v35  ;;  %v1003_v26 = vmul.f32 %v1001_v20, %v977_v5  ;;  %v3279_v54 = vpop.permute.xlu1 %756  ;;  %v3306_v35 = vunpack.i.l.bf16 %v3221_v63  ;;  %v1071_v5 = vmul.f32 0.0, %v1068_v9 }
 0x147   : > { %v1124_v63 = vstv %s2346_s30  ;;  %s2349_s30 = sld [smem:[#allocation6 + $0x23]] }
 0x148   : > { %4539 = vst [vmem:[#allocation31_spill] sm:$0xff] %v3306_v35 }
 0x14a   : > { %909 = vrot.lane.b32.xlu1 %v901_v53, %s4502_s25  ;;  %690 = vrot.lane.b32.xlu0 %v683_v56, %s4443_s19  ;;  %v3281_v53 = vpop.permute.xlu0 %754  ;;  %v1025_v56 = vmul.f32 %v1023_v21, %v2988_v19 }
 0x14e   : > { %736 = vrot.lane.b32.xlu0 %v729_v33, %s4443_s19  ;;  %565 = vrot.lane.b32.xlu1 %v558_v34, %s4452_s9  ;;  %v1004_v33 = vmul.f32 %v1001_v20, %v3165_v3  ;;  %v1026_v34 = vmul.f32 0.0, %v1023_v21  ;;  %v3320_v20 = vsel %vm1115_vm8, %v3306_v35, %v2537_v59 }
 0x14f   : > { %4542 = vst [vmem:[#allocation34_spill] sm:$0xff] %v3320_v20 }
 0x152   : > { %861 = vrot.lane.b32.xlu0 %v854_v39, %s4502_s25  ;;  %612 = vrot.lane.b32.xlu1 %v605_v40, %s4452_s9  ;;  %v3290_v39 = vpop.permute.xlu1 %773  ;;  %v3292_v40 = vpop.permute.xlu0 %771 }
 0x153   : > { %4538 = vst [vmem:[#allocation30_spill] sm:$0xff] %v3290_v39 }
 0x156   : > { %885 = vrot.lane.b32.xlu0 %v878_v55, %s4502_s25  ;;  %667 = vrot.lane.b32.xlu1 %v660_v41, %s4443_s19  ;;  %v1048_v55 = vmul.f32 %v1046_v27, %v2988_v19  ;;  %v1069_v41 = vmul.f32 %v1068_v9, %v2997_v25  ;;  %v1147_v9 = vstv %s2347_s12  ;;  %s2354_s12 = sld [smem:[#allocation9 + $0x4]] }
 0x15a   : > { %907 = vrot.lane.b32.xlu0 %v900_v61, %s4502_s25  ;;  %714 = vrot.lane.b32.xlu1 %v707_v45, %s4443_s19  ;;  %v3298_v61 = vpop.permute.xlu1 %790  ;;  %v3300_v45 = vpop.permute.xlu0 %788 }
 0x15e   : > { %941 = vrot.lane.b32.xlu0 %v934_v48, %s4500_s10  ;;  %838 = vrot.lane.b32.xlu1 %v831_v58, %s4502_s25  ;;  %v1049_v48 = vmul.f32 0.0, %v1046_v27  ;;  %v1090_v58 = vstv %s2345_s27  ;;  %s4498_s27 = smov 94   ;;  %v3333_v27 = vmul.f32 0.0, %v2537_v59  ;;  %v1171_v59 = vstv %s2348_s29  ;;  %s2355_s29 = sld [smem:[#allocation9 + $0x5]] }
 0x15f   : > { %v1092_v21 = vmul.f32 %v1090_v58, %v3006_v31 }
 0x160   : > { %4543 = vst [vmem:[#allocation35_spill] sm:$0xff] %v3333_v27 }
 0x162   : > { %964 = vrot.lane.b32.xlu0 %v957_v10, %s4500_s10  ;;  %986 = vrot.lane.b32.xlu1 %v980_v2, %s4500_s10  ;;  %v3311_v10 = vpop.permute.xlu1 %807  ;;  %v3313_v2 = vpop.permute.xlu0 %805 }
 0x163   : > { %4540 = vst [vmem:[#allocation32_spill] sm:$0xff] %v3311_v10  ;;  %4541 = vst [vmem:[#allocation33_spill] sm:$0xff] %v3313_v2 }
 0x166   : > { %988 = vrot.lane.b32.xlu0 %v981_v16, %s4500_s10  ;;  %966 = vrot.lane.b32.xlu1 %v958_v12, %s4500_s10  ;;  %v1091_v16 = vmul.f32 %v1090_v58, %v2997_v25  ;;  %v1120_v12 = vmul.f32 %v3306_v35, %v2984_v17 }
 0x16a   : > { %990 = vrot.lane.b32.xlu0 %v982_v22, %s4500_s10  ;;  %1008 = vrot.lane.b32.xlu1 %v1002_v24, %s4500_s10 }
 0x16e   : > { %1010 = vrot.lane.b32.xlu0 %v1003_v26, %s4500_s10  ;;  %1030 = vrot.lane.b32.xlu1 %v1024_v42, %s2742_s11  ;;  %v1125_v42 = vmul.f32 %v1124_v63, %v1120_v12  ;;  %v1121_v26 = vmul.f32 %v3320_v20, %v2988_v19 }
 0x172   : > { %1032 = vrot.lane.b32.xlu0 %v1025_v56, %s2742_s11  ;;  %1012 = vrot.lane.b32.xlu1 %v1004_v33, %s4500_s10  ;;  %v1093_v56 = vmul.f32 0.0, %v1090_v58  ;;  %v1168_v58 = vmul.f32 %v3306_v35, %v2997_v25 }
 0x176   : > { %1034 = vrot.lane.b32.xlu0 %v1026_v34, %s2742_s11  ;;  %1053 = vrot.lane.b32.xlu1 %v1047_v36, %s2742_s11  ;;  %v1126_v36 = vmul.f32 %v1124_v63, %v1121_v26 }
 0x17a   : > { %1055 = vrot.lane.b32.xlu0 %v1048_v55, %s2742_s11  ;;  %1075 = vrot.lane.b32.xlu1 %v1069_v41, %s2742_s11 }
 0x17e   : > { %1077 = vrot.lane.b32.xlu0 %v1070_v28, %s2742_s11  ;;  %1057 = vrot.lane.b32.xlu1 %v1049_v48, %s2742_s11  ;;  %v1127_v28 = vmul.f32 %v1124_v63, %v3333_v27  ;;  %v1148_v48 = vmul.f32 %v1147_v9, %v1120_v12 }
 0x182   : > { %1079 = vrot.lane.b32.xlu0 %v1071_v5, %s2742_s11  ;;  %1097 = vrot.lane.b32.xlu1 %v1091_v16, %s2742_s11 }
 0x184   : > { %v3325_v22 = vpop.permute.xlu1 %586  ;;  %v3327_v24 = vpop.permute.xlu0 %563 }
 0x186   : > { %1099 = vrot.lane.b32.xlu0 %v1092_v21, %s2742_s11  ;;  %1131 = vrot.lane.b32.xlu1 %v1125_v42, %s4498_s27  ;;  %v1149_v21 = vmul.f32 %v1147_v9, %v1121_v26  ;;  %v1172_v42 = vmul.f32 %v1171_v59, %v1168_v58 }
 0x188   : > { %v3335_v33 = vpop.permute.xlu1 %632  ;;  %v3337_v34 = vpop.permute.xlu0 %610 }
 0x18a   : > { %1133 = vrot.lane.b32.xlu0 %v1126_v36, %s4498_s27  ;;  %1101 = vrot.lane.b32.xlu1 %v1093_v56, %s2742_s11  ;;  %v1169_v56 = vmul.f32 %v3320_v20, %v3006_v31  ;;  %v3372_v20 = vstv %s2354_s12  ;;  %s2360_s12 = sld [smem:[#allocation9 + $0xa]] }
 0x18b   : > { %4547 = vst [vmem:[#allocation39_spill] sm:$0xff] %v3372_v20 }
 0x18c   : > { %v3341_v55 = vpop.permute.xlu1 %688  ;;  %v3343_v41 = vpop.permute.xlu0 %665  ;;  %v1173_v36 = vmul.f32 %v1171_v59, %v1169_v56 }
 0x18e   : > { %1135 = vrot.lane.b32.xlu0 %v1127_v28, %s4498_s27  ;;  %1154 = vrot.lane.b32.xlu1 %v1148_v48, %s4498_s27  ;;  %v1150_v28 = vmul.f32 %v1147_v9, %v3333_v27  ;;  %v1193_v48 = vstv %s2349_s30  ;;  %v3374_v9 = vstv %s2355_s29  ;;  %s2358_s30 = sld [smem:[#allocation9 + $0x8]]  ;;  %s2361_s29 = sld [smem:[#allocation9 + $0xb]] }
 0x18f   : > { %v1194_v0 = vmul.f32 %v1193_v48, %v1168_v58  ;;  %4548 = vst [vmem:[#allocation40_spill] sm:$0xff] %v3374_v9  ;;  %v1195_v35 = vmul.f32 %v1193_v48, %v1169_v56  ;;  %v1196_v43 = vmul.f32 %v1193_v48, %v3333_v27  ;;  %v1351_v58 = vmul.f32 0.0, %v3372_v20 }
 0x190   : > { %v3350_v5 = vpop.permute.xlu1 %734  ;;  %v3352_v16 = vpop.permute.xlu0 %712  ;;  %v3415_v18 = vstv %s2360_s12  ;;  %s2370_s12 = sld [smem:[#allocation9 + $0x14]] }
 0x191   : > { %4557 = vst [vmem:[#allocation49_spill] sm:$0xff] %v3415_v18 }
 0x192   : > { %1156 = vrot.lane.b32.xlu0 %v1149_v21, %s4498_s27  ;;  %1178 = vrot.lane.b32.xlu1 %v1172_v42, %s4498_s27  ;;  %v1174_v42 = vmul.f32 %v1171_v59, %v3333_v27  ;;  %v3385_v59 = vstv %s2356_s7  ;;  %s2363_s7 = sld [smem:[#allocation9 + $0xd]] }
 0x193   : > { %4550 = vst [vmem:[#allocation42_spill] sm:$0xff] %v3385_v59 }
 0x194   : > { %v3358_v12 = vpop.permute.xlu1 %859  ;;  %v3360_v63 = vpop.permute.xlu0 %836  ;;  %v3401_v6 = vstv %s2358_s30  ;;  %s2365_s30 = sld [smem:[#allocation9 + $0xf]] }
 0x195   : > { %4544 = vst [vmem:[#allocation36_spill] sm:$0xff] %v3358_v12  ;;  %4545 = vst [vmem:[#allocation37_spill] sm:$0xff] %v3360_v63  ;;  %v1441_v30 = vmul.f32 %v3401_v6, %v3050_v57 }
 0x196   : > { %1180 = vrot.lane.b32.xlu0 %v1173_v36, %s4498_s27  ;;  %1158 = vrot.lane.b32.xlu1 %v1150_v28, %s4498_s27  ;;  %4554 = vst [vmem:[#allocation46_spill] sm:$0xff] %v3401_v6  ;;  %v1487_v6 = vmul.f32 %v3415_v18, %v3050_v57  ;;  %v3457_v13 = vstv %s2370_s12  ;;  %s2376_s12 = sld [smem:[#allocation9 + $0x1a]] }
 0x197   : > { %4565 = vst [vmem:[#allocation57_spill] sm:$0xff] %v3457_v13 }
 0x198   : > { %v3365_v26 = vpop.permute.xlu1 %883  ;;  %v3367_v21 = vpop.permute.xlu0 %567 }
 0x199   : > { %4546 = vst [vmem:[#allocation38_spill] sm:$0xff] %v3365_v26 }
 0x19a   : > { %1182 = vrot.lane.b32.xlu0 %v1174_v42, %s4498_s27  ;;  %1200 = vrot.lane.b32.xlu1 %v1194_v0, %s4498_s27  ;;  %v1373_v0 = vmul.f32 0.0, %v3374_v9  ;;  %v3387_v42 = vstv %s2357_s15  ;;  %s2362_s15 = sld [smem:[#allocation9 + $0xc]]  ;;  %v3431_v9 = vstv %s2363_s7  ;;  %s2373_s7 = sld [smem:[#allocation9 + $0x17]] }
 0x19b   : > { %4551 = vst [vmem:[#allocation43_spill] sm:$0xff] %v3387_v42  ;;  %4561 = vst [vmem:[#allocation53_spill] sm:$0xff] %v3431_v9  ;;  %v3445_v20 = vstv %s2365_s30  ;;  %s2375_s30 = sld [smem:[#allocation9 + $0x19]] }
 0x19c   : > { %v3376_v36 = vpop.permute.xlu1 %905  ;;  %v3378_v28 = vpop.permute.xlu0 %614  ;;  %4564 = vst [vmem:[#allocation56_spill] sm:$0xff] %v3445_v20 }
 0x19d   : > { %4549 = vst [vmem:[#allocation41_spill] sm:$0xff] %v3376_v36 }
 0x19e   : > { %1202 = vrot.lane.b32.xlu0 %v1195_v35, %s4498_s27  ;;  %1204 = vrot.lane.b32.xlu1 %v1196_v43, %s4498_s27  ;;  %v1395_v43 = vmul.f32 0.0, %v3385_v59  ;;  %v1417_v35 = vmul.f32 0.0, %v3387_v42  ;;  %v3417_v42 = vstv %s2361_s29  ;;  %s2371_s29 = sld [smem:[#allocation9 + $0x15]] }
 0x19f   : > { %4558 = vst [vmem:[#allocation50_spill] sm:$0xff] %v3417_v42  ;;  %v1509_v23 = vmul.f32 %v3417_v42, %v3050_v57  ;;  %v1555_v57 = vmul.f32 %v3431_v9, %v3062_v62  ;;  %v3443_v42 = vstv %s2364_s8  ;;  %v1601_v9 = vmul.f32 %v3445_v20, %v3062_v62  ;;  %s2374_s8 = sld [smem:[#allocation9 + $0x18]] }
 0x1a0   : > { %v3389_v29 = vpop.permute.xlu1 %939  ;;  %v3391_v32 = vpop.permute.xlu0 %669  ;;  %v3429_v59 = vstv %s2362_s15  ;;  %4563 = vst [vmem:[#allocation55_spill] sm:$0xff] %v3443_v42  ;;  %s2372_s15 = sld [smem:[#allocation9 + $0x16]]  ;;  %v3473_v4 = vstv %s2373_s7 }
 0x1a1   : > { %4552 = vst [vmem:[#allocation44_spill] sm:$0xff] %v3389_v29  ;;  %4560 = vst [vmem:[#allocation52_spill] sm:$0xff] %v3429_v59  ;;  %v1533_v18 = vmul.f32 %v3429_v59, %v3062_v62  ;;  %v1579_v59 = vmul.f32 %v3443_v42, %v3062_v62  ;;  %v1695_v42 = vmul.f32 %v3457_v13, %v3154_v47  ;;  %s2380_s7 = sld [smem:[#allocation9 + $0x1e]] }
 0x1a2   : > { %1357 = vrot.lane.b32.xlu0 %v1351_v58, %s2732_s17  ;;  %1379 = vrot.lane.b32.xlu1 %v1373_v0, %s2732_s17  ;;  %4569 = vst [vmem:[#allocation61_spill] sm:$0xff] %v3473_v4 }
 0x1a4   : > { %v3397_v56 = vpop.permute.xlu1 %962  ;;  %v3399_v48 = vpop.permute.xlu0 %716  ;;  %v3459_v11 = vstv %s2371_s29  ;;  %s2377_s29 = sld [smem:[#allocation9 + $0x1b]] }
 0x1a5   : > { %4553 = vst [vmem:[#allocation45_spill] sm:$0xff] %v3397_v56  ;;  %4566 = vst [vmem:[#allocation58_spill] sm:$0xff] %v3459_v11  ;;  %v1717_v62 = vmul.f32 %v3459_v11, %v3154_v47  ;;  %v1763_v11 = vmul.f32 %v3473_v4, %v3154_v47  ;;  %v3485_v56 = vstv %s2374_s8  ;;  %v3499_v4 = vstv %s2376_s12  ;;  %s2382_s8 = sld [smem:[#allocation9 + $0x20]]  ;;  %s2316_s12 = sld [smem:[#allocation6 + $0x2]] }
 0x1a6   : > { %1401 = vrot.lane.b32.xlu0 %v1395_v43, %s2732_s17  ;;  %1423 = vrot.lane.b32.xlu1 %v1417_v35, %s2732_s17  ;;  %v3471_v20 = vstv %s2372_s15  ;;  %s2379_s15 = sld [smem:[#allocation9 + $0x1d]]  ;;  %4571 = vst [vmem:[#allocation63_spill] sm:$0xff] %v3485_v56  ;;  %4573 = vst [vmem:[#allocation65_spill] sm:$0xff] %v3499_v4 }
 0x1a7   : > { %4568 = vst [vmem:[#allocation60_spill] sm:$0xff] %v3471_v20  ;;  %v1741_v13 = vmul.f32 %v3471_v20, %v3154_v47  ;;  %v1787_v20 = vmul.f32 %v3485_v56, %v3165_v3  ;;  %v1833_v56 = vmul.f32 %v3499_v4, %v3165_v3 }
 0x1a8   : > { %v3407_v58 = vpop.permute.xlu1 %590  ;;  %v3409_v0 = vpop.permute.xlu0 %840 }
 0x1a9   : > { %4556 = vst [vmem:[#allocation48_spill] sm:$0xff] %v3409_v0 }
 0x1aa   : > { %1447 = vrot.lane.b32.xlu0 %v1441_v30, %s4452_s9  ;;  %1469 = vrot.lane.b32.xlu1 %v1463_v8, %s4452_s9 }
 0x1ab   : > { %v3541_v10 = vstv %s2382_s8  ;;  %s4619_s8 = smov 17  }
 0x1ac   : > { %v3421_v43 = vpop.permute.xlu1 %636  ;;  %v3423_v35 = vpop.permute.xlu0 %887  ;;  %4583 = vst [vmem:[#allocation75_spill] sm:$0xff] %v3541_v10 }
 0x1ad   : > { %4559 = vst [vmem:[#allocation51_spill] sm:$0xff] %v3423_v35  ;;  %v3513_v35 = vstv %s2379_s15  ;;  %s3710_s15 = sld [smem:[#allocation7]] }
 0x1ae   : > { %1493 = vrot.lane.b32.xlu0 %v1487_v6, %s4452_s9  ;;  %1515 = vrot.lane.b32.xlu1 %v1509_v23, %s4452_s9  ;;  %s2381_s9 = sld [smem:[#allocation9 + $0x1f]]  ;;  %4577 = vst [vmem:[#allocation69_spill] sm:$0xff] %v3513_v35 }
 0x1b0   : > { %v3435_v30 = vpop.permute.xlu1 %692  ;;  %v3437_v8 = vpop.permute.xlu0 %943 }
 0x1b1   : > { %4562 = vst [vmem:[#allocation54_spill] sm:$0xff] %v3437_v8 }
 0x1b2   : > { %1539 = vrot.lane.b32.xlu0 %v1533_v18, %s4443_s19  ;;  %1561 = vrot.lane.b32.xlu1 %v1555_v57, %s4443_s19 }
 0x1b4   : > { %v3449_v6 = vpop.permute.xlu1 %738  ;;  %v3451_v23 = vpop.permute.xlu0 %588  ;;  %v3527_v29 = vstv %s2381_s9  ;;  %s2315_s9 = sld [smem:[#allocation6 + $0x1]] }
 0x1b5   : > { %4580 = vst [vmem:[#allocation72_spill] sm:$0xff] %v3527_v29 }
 0x1b6   : > { %1585 = vrot.lane.b32.xlu0 %v1579_v59, %s4443_s19  ;;  %1607 = vrot.lane.b32.xlu1 %v1601_v9, %s4443_s19  ;;  %s2378_s19 = sld [smem:[#allocation9 + $0x1c]] }
 0x1b8   : > { %v3463_v18 = vpop.permute.xlu1 %863  ;;  %v3465_v57 = vpop.permute.xlu0 %634 }
 0x1b9   : > { %4567 = vst [vmem:[#allocation59_spill] sm:$0xff] %v3463_v18 }
 0x1ba   : > { %1703 = vrot.lane.b32.xlu0 %v1695_v42, %s4502_s25  ;;  %1725 = vrot.lane.b32.xlu1 %v1717_v62, %s4502_s25  ;;  %v3489_v42 = vstv %s2375_s30  ;;  %s2383_s30 = sld [smem:[#allocation9 + $0x21]]  ;;  %v427_v39 = vstv %s2315_s9 }
 0x1bb   : > { %4572 = vst [vmem:[#allocation64_spill] sm:$0xff] %v3489_v42  ;;  %v1809_v47 = vmul.f32 %v3489_v42, %v3165_v3 }
 0x1bc   : > { %v3477_v9 = vpop.permute.xlu1 %909  ;;  %v3479_v59 = vpop.permute.xlu0 %690 }
 0x1bd   : > { %4570 = vst [vmem:[#allocation62_spill] sm:$0xff] %v3477_v9 }
 0x1be   : > { %1749 = vrot.lane.b32.xlu0 %v1741_v13, %s4502_s25  ;;  %1771 = vrot.lane.b32.xlu1 %v1763_v11, %s4502_s25  ;;  %v3502_v13 = vstv %s2377_s29  ;;  %v3505_v11 = vstv %s2378_s19  ;;  %s418_s19 = sld [smem:[#allocation6]]  ;;  %s2317_s29 = sld [smem:[#allocation6 + $0x3]] }
 0x1bf   : > { %4574 = vst [vmem:[#allocation66_spill] sm:$0xff] %v3502_v13  ;;  %4575 = vst [vmem:[#allocation67_spill] sm:$0xff] %v3505_v11  ;;  %v1855_v42 = vmul.f32 %v3502_v13, %v3165_v3  ;;  %s4635_s25 = smov 111  }
 0x1c0   : > { %v3491_v62 = vpop.permute.xlu0 %736  ;;  %v3493_v8 = vpop.permute.xlu1 %565 }
 0x1c2   : > { %1795 = vrot.lane.b32.xlu0 %v1787_v20, %s4500_s10  ;;  %1817 = vrot.lane.b32.xlu1 %v1809_v47, %s4500_s10  ;;  %v1877_v20 = vmul.f32 0.0, %v3505_v11  ;;  %v1899_v47 = vmul.f32 0.0, %v3513_v35  ;;  %v3538_v35 = vunpack.i.h.bf16 %v3036_v50  ;;  %v2511_v11 = vunpack.i.l.bf16 %v3036_v50 }
 0x1c4   : > { %v3507_v9 = vpop.permute.xlu0 %861  ;;  %v3509_v36 = vpop.permute.xlu1 %612  ;;  %4582 = vst [vmem:[#allocation74_spill] sm:$0xff] %v3538_v35  ;;  %v3559_v12 = vmul.f32 0.0, %v2511_v11  ;;  %v445_v2 = vstv %s2317_s29  ;;  %s2366_s29 = sld [smem:[#allocation9 + $0x10]] }
 0x1c5   : > { %4576 = vst [vmem:[#allocation68_spill] sm:$0xff] %v3507_v9  ;;  %v3521_v9 = vstv %s2380_s7  ;;  %s2350_s7 = sld [smem:[#allocation7 + $0x1]] }
 0x1c6   : > { %1841 = vrot.lane.b32.xlu0 %v1833_v56, %s4500_s10  ;;  %1863 = vrot.lane.b32.xlu1 %v1855_v42, %s4500_s10  ;;  %4578 = vst [vmem:[#allocation70_spill] sm:$0xff] %v3521_v9  ;;  %v1921_v3 = vmul.f32 0.0, %v3521_v9  ;;  %v1943_v56 = vmul.f32 0.0, %v3527_v29  ;;  %v1967_v9 = vmul.f32 %v3541_v10, %v3333_v27  ;;  %s3942_s10 = sld [smem:[#allocation9 + $0x13]] }
 0x1c8   : > { %v3523_v18 = vpop.permute.xlu0 %885  ;;  %v3525_v4 = vpop.permute.xlu1 %667 }
 0x1c9   : > { %4579 = vst [vmem:[#allocation71_spill] sm:$0xff] %v3523_v18 }
 0x1ca   : > { %1885 = vrot.lane.b32.xlu0 %v1877_v20, %s2742_s11  ;;  %1907 = vrot.lane.b32.xlu1 %v1899_v47, %s2742_s11  ;;  %v3544_v20 = vstv %s2383_s30  ;;  %s332_s30 = sld [smem:[#allocation12]] }
 0x1cb   : > { %4584 = vst [vmem:[#allocation76_spill] sm:$0xff] %v3544_v20  ;;  %v1989_v50 = vmul.f32 %v3544_v20, %v3333_v27 }
 0x1cc   : > { %v3533_v42 = vpop.permute.xlu0 %907  ;;  %v3535_v13 = vpop.permute.xlu1 %714 }
 0x1cd   : > { %4581 = vst [vmem:[#allocation73_spill] sm:$0xff] %v3533_v42  ;;  %v3555_v42 = vsel %vm410_vm9, %v2511_v11, %v3538_v35 }
 0x1ce   : > { %1929 = vrot.lane.b32.xlu0 %v1921_v3, %s2742_s11  ;;  %1951 = vrot.lane.b32.xlu1 %v1943_v56, %s2742_s11  ;;  %4587 = vst [vmem:[#allocation79_spill] sm:$0xff] %v3555_v42  ;;  %v419_v3 = vstv %s418_s19  ;;  %v437_v56 = vstv %s2316_s12  ;;  %v434_v10 = vmul.f32 %v3555_v42, %v2997_v25  ;;  %v417_v25 = vmul.f32 %v3538_v35, %v2988_v19  ;;  %s2305_s19 = sld [smem:[#allocation12 + $0x1]]  ;;  %s4630_s12 = sshll.u32 %s2947_s13, 3 }
 0x1cf   : > { %v420_v11 = vmul.f32 %v419_v3, %v3559_v12  ;;  %v511_v19 = vsel %vm466_vm5, %v3250_v46, %v3248_v1  ;;  %s3903_s9 = scalar_lea.vmem [#allocation13], %s4630_s12  ;;  %s2351_s12 = sld [smem:[#allocation9 + $0x1]] }
 0x1d0   : > { %v3547_v47 = vpop.permute.xlu0 %941  ;;  %v3549_v29 = vpop.permute.xlu1 %838  ;;  %v439_v20 = vmul.f32 %v437_v56, %v434_v10 }
 0x1d1   : > { %4585 = vst [vmem:[#allocation77_spill] sm:$0xff] %v3547_v47  ;;  %4586 = vst [vmem:[#allocation78_spill] sm:$0xff] %v3549_v29  ;;  %v416_v47 = vmul.f32 %v3555_v42, %v2984_v17  ;;  %v435_v42 = vmul.f32 %v3538_v35, %v3006_v31 }
 0x1d2   : > { %1975 = vrot.lane.b32.xlu0 %v1967_v9, %s4498_s27  ;;  %1997 = vrot.lane.b32.xlu1 %v1989_v50, %s4498_s27  ;;  %v438_v9 = vmul.f32 %v437_v56, %v3559_v12  ;;  %s2353_s27 = sld [smem:[#allocation9 + $0x3]] }
 0x1d3   : > { %v421_v27 = vmul.f32 %v419_v3, %v416_v47  ;;  %v440_v35 = vmul.f32 %v437_v56, %v435_v42  ;;  %v616_v56 = vsel %vm569_vm10, %v3337_v34, %v3509_v36  ;;  %v533_v34 = vsel %vm466_vm5, %v3261_v7, %v3273_v52 }
 0x1d4   : > { %v3567_v18 = vpop.permute.xlu0 %964  ;;  %v3569_v26 = vpop.permute.xlu1 %986  ;;  %v441_v17 = vadd.f32 %v438_v9, %v420_v11  ;;  %v468_v11 = vsel %vm466_vm5, %v3093_v14, %v3211_v60  ;;  %v422_v9 = vmul.f32 %v419_v3, %v417_v25  ;;  %v571_v3 = vsel %vm569_vm10, %v3493_v8, %v3367_v21 }
 0x1d5   : > { %4588 = vst [vmem:[#allocation80_spill] sm:$0xff] %v3567_v18  ;;  %4589 = vst [vmem:[#allocation81_spill] sm:$0xff] %v3569_v26  ;;  %v467_v18 = vsel %vm466_vm5, %v3034_v49, %v3093_v14  ;;  %v442_v26 = vadd.f32 %v439_v20, %v421_v27  ;;  %v428_v49 = vmul.f32 %v427_v39, %v3559_v12 }
 0x1d6   : > { %v472_v31 = vadd.f32 %v467_v18, %v441_v17  ;;  %v446_v27 = vmul.f32 %v445_v2, %v3559_v12  ;;  %v512_v20 = vsel %vm466_vm5, %v3248_v1, %v3263_v37  ;;  %v570_v14 = vsel %vm569_vm10, %v3327_v24, %v3493_v8 }
 0x1d7   : > { %v430_v18 = vmul.f32 %v427_v39, %v417_v25  ;;  %v489_v1 = vsel %vm466_vm5, %v3223_v38, %v3238_v15  ;;  %v443_v17 = vadd.f32 %v440_v35, %v422_v9  ;;  %v617_v25 = vsel %vm569_vm10, %v3509_v36, %v3378_v28 }
 0x1d8   : > { %v3573_v0 = vpop.permute.xlu0 %988  ;;  %v3575_v50 = vpop.permute.xlu1 %966  ;;  %v672_v8 = vsel %vm671_vm11, %v3343_v41, %v3525_v4  ;;  %v447_v35 = vmul.f32 %v445_v2, %v434_v10  ;;  %v673_v36 = vsel %vm671_vm11, %v3525_v4, %v3391_v32  ;;  %v448_v41 = vmul.f32 %v445_v2, %v435_v42 }
 0x1d9   : > { %4590 = vst [vmem:[#allocation82_spill] sm:$0xff] %v3575_v50  ;;  %v516_v50 = vadd.f32 %v511_v19, %v472_v31  ;;  %v429_v19 = vmul.f32 %v427_v39, %v416_v47  ;;  %v718_v39 = vsel %vm671_vm11, %v3352_v16, %v3535_v13  ;;  %v592_v7 = vsel %vm569_vm10, %v3325_v22, %v3451_v23 }
 0x1da   : > { %v719_v10 = vsel %vm671_vm11, %v3535_v13, %v3399_v48  ;;  %v490_v4 = vsel %vm466_vm5, %v3238_v15, %v3236_v44  ;;  %v638_v2 = vsel %vm569_vm10, %v3335_v33, %v3465_v57  ;;  %v534_v13 = vsel %vm466_vm5, %v3273_v52, %v3271_v51 }
 0x1db   : > { %v694_v15 = vsel %vm671_vm11, %v3341_v55, %v3479_v59 }
 0x1dc   : > { %v3584_v29 = vpop.permute.xlu0 %990  ;;  %v3586_v63 = vpop.permute.xlu1 %1008 }
 0x1dd   : > { %4591 = vst [vmem:[#allocation83_spill] sm:$0xff] %v3584_v29  ;;  %4592 = vst [vmem:[#allocation84_spill] sm:$0xff] %v3586_v63  ;;  %v473_v63 = vadd.f32 %v468_v11, %v442_v26  ;;  %v575_v26 = vadd.f32 %v570_v14, %v516_v50  ;;  %v449_v11 = vadd.f32 %v446_v27, %v428_v49 }
 0x1de   : > { %v474_v27 = vadd.f32 %v3211_v60, %v443_v17  ;;  %v450_v60 = vadd.f32 %v447_v35, %v429_v19 }
 0x1df   : > { %v517_v24 = vadd.f32 %v512_v20, %v473_v63  ;;  %v621_v38 = vadd.f32 %v616_v56, %v575_v26  ;;  %v494_v9 = vadd.f32 %v489_v1, %v449_v11  ;;  %v451_v1 = vadd.f32 %v448_v41, %v430_v18 }
 0x1e0   : > { %v3602_v29 = vpop.permute.xlu0 %1010  ;;  %v3604_v46 = vpop.permute.xlu1 %1030  ;;  %v740_v18 = vsel %vm671_vm11, %v3350_v5, %v3491_v62  ;;  %v639_v5 = vsel %vm569_vm10, %v3465_v57, %v3421_v43  ;;  %v792_v57 = vsel %vm410_vm9, %v3300_v45, %v3298_v61 }
 0x1e1   : > { %v576_v31 = vadd.f32 %v571_v3, %v517_v24  ;;  %v677_v49 = vadd.f32 %v672_v8, %v621_v38  ;;  %v538_v20 = vadd.f32 %v533_v34, %v494_v9  ;;  %v518_v3 = vadd.f32 %v3263_v37, %v474_v27  ;;  %v4593_v27 = vld [vmem:[#allocation37_spill] sm:$0xff] }
 0x1e2   : > { %v495_v24 = vadd.f32 %v490_v4, %v450_v60  ;;  %v496_v11 = vadd.f32 %v3236_v44, %v451_v1  ;;  %v593_v37 = vsel %vm569_vm10, %v3451_v23, %v3407_v58  ;;  %v4594_v4 = vld [vmem:[#allocation78_spill] sm:$0xff] }
 0x1e3   : > { %v622_v47 = vadd.f32 %v617_v25, %v576_v31  ;;  %v723_v42 = vadd.f32 %v718_v39, %v677_v49  ;;  %v597_v56 = vadd.f32 %v592_v7, %v538_v20  ;;  %v577_v26 = vadd.f32 %v3367_v21, %v518_v3 }
 0x1e4   : > { %v3624_v63 = vpop.permute.xlu0 %1032  ;;  %v3626_v50 = vpop.permute.xlu1 %1012  ;;  %v539_v8 = vadd.f32 %v534_v13, %v495_v24  ;;  %v758_v21 = vsel %vm410_vm9, %v3281_v53, %v3279_v54  ;;  %v540_v23 = vadd.f32 %v3271_v51, %v496_v11 }
 0x1e5   : > { %v678_v16 = vadd.f32 %v673_v36, %v622_v47  ;;  %v643_v17 = vadd.f32 %v638_v2, %v597_v56  ;;  %v762_v52 = vadd.f32 %v3281_v53, %v723_v42  ;;  %v623_v44 = vadd.f32 %v3378_v28, %v577_v26  ;;  %v4595_v42 = vld [vmem:[#allocation33_spill] sm:$0xff]  ;;  %v4596_v56 = vld [vmem:[#allocation30_spill] sm:$0xff] }
 0x1e6   : > { %v598_v38 = vadd.f32 %v593_v37, %v539_v8  ;;  %v599_v9 = vadd.f32 %v3407_v58, %v540_v23  ;;  %v695_v53 = vsel %vm671_vm11, %v3479_v59, %v3435_v30  ;;  %v741_v58 = vsel %vm671_vm11, %v3491_v62, %v3449_v6  ;;  %v4600_v8 = vld [vmem:[#allocation36_spill] sm:$0xff] }
 0x1e7   : > { %v724_v33 = vadd.f32 %v719_v10, %v678_v16  ;;  %v699_v19 = vadd.f32 %v694_v15, %v643_v17  ;;  %v679_v31 = vadd.f32 %v3391_v32, %v623_v44  ;;  %v796_v28 = vadd.f32 %v3300_v45, %v762_v52  ;;  %v4598_v15 = vld [vmem:[#allocation38_spill] sm:$0xff]  ;;  %v4599_v17 = vld [vmem:[#allocation71_spill] sm:$0xff] }
 0x1e8   : > { %v3647_v22 = vpop.permute.xlu0 %1034  ;;  %v3649_v14 = vpop.permute.xlu1 %1053  ;;  %v644_v39 = vadd.f32 %v639_v5, %v598_v38  ;;  %v645_v41 = vadd.f32 %v3421_v43, %v599_v9  ;;  %v843_v62 = vsel %vm842_vm12, %v4593_v27, %v4594_v4  ;;  %v775_v1 = vsel %vm410_vm9, %v3292_v40, %v4596_v56  ;;  %v4602_v5 = vld [vmem:[#allocation44_spill] sm:$0xff] }
 0x1e9   : > { %v763_v34 = vadd.f32 %v758_v21, %v724_v33  ;;  %v745_v35 = vadd.f32 %v740_v18, %v699_v19  ;;  %v725_v32 = vadd.f32 %v3399_v48, %v679_v31  ;;  %v848_v20 = vadd.f32 %v4593_v27, %v796_v28  ;;  %v4601_v19 = vld [vmem:[#allocation32_spill] sm:$0xff]  ;;  %v4605_v28 = vld [vmem:[#allocation77_spill] sm:$0xff] }
 0x1ea   : > { %v700_v7 = vadd.f32 %v695_v53, %v644_v39  ;;  %v701_v49 = vadd.f32 %v3435_v30, %v645_v41  ;;  %v2744_v30 = vmov 1966171168   ;;  %v889_v11 = vsel %vm842_vm12, %v4598_v15, %v4599_v17  ;;  %v4604_v9 = vld [vmem:[#allocation68_spill] sm:$0xff]  ;;  %v4606_v39 = vld [vmem:[#allocation51_spill] sm:$0xff] }
 0x1eb   : > { %v797_v59 = vadd.f32 %v792_v57, %v763_v34  ;;  %v779_v47 = vadd.f32 %v3292_v40, %v745_v35  ;;  %v764_v48 = vadd.f32 %v3279_v54, %v725_v32  ;;  %v3712_v3 = vunpack.c.l.s4 %v2744_v30  ;;  %v4597_v54 = vld [vmem:[#allocation48_spill] sm:$0xff]  ;;  %v4603_v35 = vld [vmem:[#allocation59_spill] sm:$0xff]  ;;  %v4610_v30 = vld [vmem:[#allocation62_spill] sm:$0xff] }
 0x1ec   : > { %v3667_v25 = vpop.permute.xlu0 %1055  ;;  %v3669_v55 = vpop.permute.xlu1 %1075  ;;  %v746_v43 = vadd.f32 %v741_v58, %v700_v7  ;;  %v747_v2 = vadd.f32 %v3449_v6, %v701_v49  ;;  %v844_v13 = vsel %vm842_vm12, %v4594_v4, %v4597_v54  ;;  %v894_v33 = vadd.f32 %v4598_v15, %v848_v20  ;;  %v4607_v7 = vld [vmem:[#allocation81_spill] sm:$0xff]  ;;  %v4612_v15 = vld [vmem:[#allocation80_spill] sm:$0xff] }
 0x1ed   : > { %v849_v16 = vadd.f32 %v843_v62, %v797_v59  ;;  %v813_v60 = vadd.f32 %v4595_v42, %v779_v47  ;;  %v798_v37 = vadd.f32 %v3298_v61, %v764_v48  ;;  %v1230_v44 = vunpack.c.0.s8 %v3712_v3  ;;  %v4608_v49 = vld [vmem:[#allocation41_spill] sm:$0xff] }
 0x1ee   : > { %v780_v26 = vadd.f32 %v775_v1, %v746_v43  ;;  %v781_v18 = vadd.f32 %v4596_v56, %v747_v2  ;;  %v809_v23 = vsel %vm410_vm9, %v4595_v42, %v4601_v19  ;;  %v951_v34 = vadd.f32 %v4602_v5, %v894_v33  ;;  %v4609_v4 = vld [vmem:[#allocation73_spill] sm:$0xff]  ;;  %v4611_v1 = vld [vmem:[#allocation54_spill] sm:$0xff] }
 0x1ef   : > { %v895_v40 = vadd.f32 %v889_v11, %v849_v16  ;;  %v850_v52 = vadd.f32 %v844_v13, %v798_v37  ;;  %v870_v21 = vadd.f32 %v4600_v8, %v813_v60  ;;  %v866_v53 = vsel %vm842_vm12, %v4604_v9, %v4603_v35  ;;  %v4613_v33 = vld [vmem:[#allocation45_spill] sm:$0xff]  ;;  %v4614_v11 = vld [vmem:[#allocation83_spill] sm:$0xff] }
 0x1f0   : > { %v3685_v36 = vpop.permute.xlu0 %1077  ;;  %v3687_v51 = vpop.permute.xlu1 %1057  ;;  %v814_v61 = vadd.f32 %v809_v23, %v780_v26  ;;  %v946_v57 = vsel %vm945_vm13, %v4602_v5, %v4605_v28  ;;  %v815_v32 = vadd.f32 %v4601_v19, %v781_v18  ;;  %v890_v41 = vsel %vm842_vm12, %v4599_v17, %v4606_v39  ;;  %v4615_v19 = vld [vmem:[#allocation82_spill] sm:$0xff] }
 0x1f1   : > { %v952_v58 = vadd.f32 %v946_v57, %v895_v40  ;;  %v896_v59 = vadd.f32 %v890_v41, %v850_v52  ;;  %v992_v47 = vsel %vm945_vm13, %v4607_v7, %v3573_v0  ;;  %v916_v27 = vadd.f32 %v4608_v49, %v870_v21  ;;  %v4616_v57 = vld [vmem:[#allocation84_spill] sm:$0xff] }
 0x1f2   : > { %v3751_v20 = vstv %s3710_s15  ;;  %v865_v48 = vsel %vm842_vm12, %v4600_v8, %v4604_v9  ;;  %v872_v43 = vadd.f32 %v866_v53, %v815_v32  ;;  %v911_v62 = vsel %vm842_vm12, %v4608_v49, %v4609_v4  ;;  %s2367_s15 = sld [smem:[#allocation9 + $0x11]] }
 0x1f3   : > { %v997_v2 = vadd.f32 %v4607_v7, %v951_v34  ;;  %v871_v60 = vadd.f32 %v865_v48, %v814_v61  ;;  %v912_v56 = vsel %vm842_vm12, %v4609_v4, %v4610_v30  ;;  %v947_v54 = vsel %vm945_vm13, %v4605_v28, %v4611_v1 }
 0x1f4   : > { %v3700_v10 = vpop.permute.xlu0 %1079  ;;  %v3702_v45 = vpop.permute.xlu1 %1097  ;;  %v1037_v13 = vsel %vm1036_vm14, %v3604_v46, %v3624_v63  ;;  %v968_v26 = vsel %vm945_vm13, %v4613_v33, %v4612_v15  ;;  %v998_v17 = vadd.f32 %v992_v47, %v952_v58  ;;  %v993_v37 = vsel %vm945_vm13, %v3573_v0, %v4614_v11 }
 0x1f5   : > { %v1042_v18 = vadd.f32 %v3604_v46, %v997_v2  ;;  %v917_v40 = vadd.f32 %v911_v62, %v871_v60  ;;  %v953_v52 = vadd.f32 %v947_v54, %v896_v59  ;;  %v973_v8 = vadd.f32 %v4613_v33, %v916_v27 }
 0x1f6   : > { %v1081_v21 = vsel %vm1036_vm14, %v3669_v55, %v3685_v36  ;;  %v969_v23 = vsel %vm945_vm13, %v4612_v15, %v4615_v19  ;;  %v1043_v5 = vadd.f32 %v1037_v13, %v998_v17  ;;  %v1038_v34 = vsel %vm1036_vm14, %v3624_v63, %v3647_v22 }
 0x1f7   : > { %v1086_v0 = vadd.f32 %v3669_v55, %v1042_v18  ;;  %v918_v35 = vadd.f32 %v912_v56, %v872_v43  ;;  %v974_v9 = vadd.f32 %v968_v26, %v917_v40  ;;  %v999_v53 = vadd.f32 %v993_v37, %v953_v52 }
 0x1f8   : > { %v3721_v24 = vpop.permute.xlu0 %1099  ;;  %v1132_v6 = vpop.permute.xlu1 %1131  ;;  %v1014_v32 = vsel %vm945_vm13, %v4616_v57, %v3602_v29  ;;  %v1015_v39 = vsel %vm945_vm13, %v3602_v29, %v3626_v50  ;;  %v1087_v41 = vadd.f32 %v1081_v21, %v1043_v5  ;;  %v1019_v22 = vadd.f32 %v4616_v57, %v973_v8 }
 0x1f9   : > { %v1143_v58 = vadd.f32 %v1132_v6, %v1086_v0  ;;  %v975_v63 = vadd.f32 %v969_v23, %v918_v35  ;;  %v1044_v55 = vadd.f32 %v1038_v34, %v999_v53  ;;  %v1082_v59 = vsel %vm1036_vm14, %v3685_v36, %v3700_v10 }
 0x1fa   : > { %v1059_v7 = vsel %vm1036_vm14, %v3649_v14, %v3667_v25  ;;  %v1060_v47 = vsel %vm1036_vm14, %v3667_v25, %v3687_v51  ;;  %v1020_v27 = vadd.f32 %v1014_v32, %v974_v9  ;;  %v1064_v36 = vadd.f32 %v3649_v14, %v1019_v22  ;;  %v4617_v25 = vld [vmem:[#allocation19_spill] sm:$0xff] }
 0x1fb   : > { %v1021_v48 = vadd.f32 %v1015_v39, %v975_v63  ;;  %v1088_v10 = vadd.f32 %v1082_v59, %v1044_v55  ;;  %v1103_v62 = vsel %vm1036_vm14, %v3702_v45, %v3721_v24  ;;  %v3813_v51 = vsub.s32 %v1230_v44, %v4617_v25 }
 0x1fc   : > { %v1134_v31 = vpop.permute.xlu0 %1133  ;;  %v3734_v38 = vpop.permute.xlu1 %1101  ;;  %v1065_v60 = vadd.f32 %v1059_v7, %v1020_v27  ;;  %v1220_v8 = vstv %s2350_s7  ;;  %s1315_s7 = sld [smem:[#allocation9]] }
 0x1fd   : > { %v1138_v28 = vsel %vm1137_vm15, %v1132_v6, %v1134_v31  ;;  %4618 = vst [vmem:[#allocation37_spill] sm:$0xff] %v3813_v51  ;;  %v1066_v30 = vadd.f32 %v1060_v47, %v1021_v48 }
 0x1fe   : > { %v1144_v49 = vadd.f32 %v1138_v28, %v1087_v41  ;;  %v1109_v15 = vadd.f32 %v1103_v62, %v1065_v60 }
 0x200   : > { %v1136_v16 = vpop.permute.xlu0 %1135  ;;  %v1155_v42 = vpop.permute.xlu1 %1154 }
 0x201   : > { %v1139_v43 = vsel %vm1137_vm15, %v1134_v31, %v1136_v16  ;;  %v1104_v31 = vsel %vm1036_vm14, %v3721_v24, %v3734_v38  ;;  %v1108_v16 = vadd.f32 %v3702_v45, %v1064_v36 }
 0x202   : > { %v1145_v14 = vadd.f32 %v1139_v43, %v1088_v10  ;;  %v1110_v26 = vadd.f32 %v1104_v31, %v1066_v30 }
 0x203   : > { %v1165_v17 = vadd.f32 %v1155_v42, %v1108_v16 }
 0x204   : > { %v1157_v46 = vpop.permute.xlu0 %1156  ;;  %v1179_v61 = vpop.permute.xlu1 %1178 }
 0x205   : > { %v1189_v29 = vadd.f32 %v1179_v61, %v1143_v58  ;;  %v1160_v3 = vsel %vm1137_vm15, %v1155_v42, %v1157_v46 }
 0x206   : > { %v1166_v38 = vadd.f32 %v1160_v3, %v1109_v15  ;;  %v2063_v15 = vstv %s332_s30  ;;  %s2352_s30 = sld [smem:[#allocation9 + $0x2]] }
 0x207   : > { %v1216_v56 = vadd.f32 %v3751_v20, %v1189_v29 }
 0x208   : > { %v1181_v50 = vpop.permute.xlu0 %1180  ;;  %v1159_v6 = vpop.permute.xlu1 %1158 }
 0x209   : > { %v1184_v4 = vsel %vm1137_vm15, %v1179_v61, %v1181_v50  ;;  %v1161_v44 = vsel %vm1137_vm15, %v1157_v46, %v1159_v6 }
 0x20a   : > { %v1190_v2 = vadd.f32 %v1184_v4, %v1144_v49  ;;  %v1167_v45 = vadd.f32 %v1161_v44, %v1110_v26  ;;  %v4624_v44 = vlaneseq }
 0x20c   : > { %v1217_v1 = vadd.f32 %v3751_v20, %v1190_v2  ;;  %v1183_v54 = vpop.permute.xlu0 %1182  ;;  %v1201_v13 = vpop.permute.xlu1 %1200  ;;  %vm3890_vm0 = vcmp.lt.s32.totalorder %v4624_v44, 256  ;;  %v3952_v44 = vstv %s2352_s30  ;;  %s2307_s30 = sld [smem:[#allocation12 + $0x3]] }
 0x20d   : > { %v1185_v33 = vsel %vm1137_vm15, %v1181_v50, %v1183_v54  ;;  %v1211_v18 = vadd.f32 %v1201_v13, %v1165_v17 }
 0x20e   : > { %v1227_v11 = vcombine.low %v1216_v56, %v1217_v1  ;;  %v1191_v24 = vadd.f32 %v1185_v33, %v1145_v14  ;;  %v375_v14 = vld [vmem:[%s2953_s26] ss:$4 sm:$0x3]  ;;  %v4625_v33 = vmov 0 }
 0x20f   : > { %v1221_v46 = vadd.f32 %v1220_v8, %v1211_v18  ;;  %v4626_v33 = vsel %vm3890_vm0, 4294967295, %v4625_v33  ;;  %v4629_v18 = vld [vmem:[#allocation21_spill] sm:$0xff] }
 0x210   : > { %v1218_v37 = vadd.f32 %v3751_v20, %v1191_v24  ;;  %v1203_v40 = vpop.permute.xlu0 %1202  ;;  %v1205_v52 = vpop.permute.xlu1 %1204  ;;  %v1234_v23 = vrot.slane %v1227_v11, %v3813_v51  ;;  %4627 = vst [vmem:[#allocation38_spill] sm:$0xff] %v4626_v33  ;;  %v2312_v24 = vld [vmem:[%s2953_s26 + $0x1] ss:$4 sm:$0x3] }
 0x211   : > { %v1206_v21 = vsel %vm1137_vm15, %v1201_v13, %v1203_v40  ;;  %v1207_v19 = vsel %vm1137_vm15, %v1203_v40, %v1205_v52  ;;  %v1288_v13 = vstv %s2305_s19  ;;  %s2368_s19 = sld [smem:[#allocation9 + $0x12]] }
 0x212   : > { %v1241_v5 = vrot.slane %v1218_v37, %v3813_v51  ;;  %v1212_v34 = vadd.f32 %v1206_v21, %v1166_v38  ;;  %v1213_v42 = vadd.f32 %v1207_v19, %v1167_v45  ;;  %v4628_v45 = vld [vmem:[#allocation20_spill] sm:$0xff]  ;;  %v4631_v21 = vld [vmem:[#allocation39_spill] sm:$0xff] }
 0x214   : > { %v1242_v0 = vcombine.low %v1234_v23, %v1241_v5  ;;  %v1222_v61 = vadd.f32 %v1220_v8, %v1212_v34  ;;  %v1223_v35 = vadd.f32 %v1220_v8, %v1213_v42  ;;  %v3835_v39 = vpop.permute.xlu0 %1357  ;;  %v3837_v41 = vpop.permute.xlu1 %1379 }
 0x216   : > { %v1259_v9 = vcombine.low %v1221_v46, %v1222_v61  ;;  %v1249_v20 = vrot.slane %v1242_v0, %v3813_v51  ;;  %v1273_v28 = vrot.slane %v1223_v35, %v3813_v51  ;;  %v4632_v46 = vld [vmem:[#allocation40_spill] sm:$0xff] }
 0x218   : > { %v1266_v53 = vrot.slane %v1259_v9, %v3813_v51  ;;  %1250 = vrot.lane.b32.xlu0 %v1249_v20, %s4619_s8  ;;  %v3839_v58 = vpop.permute.xlu0 %1401  ;;  %v3841_v63 = vpop.permute.xlu1 %1423  ;;  %v4633_v9 = vld [vmem:[#allocation42_spill] sm:$0xff] }
 0x21a   : > { %v1274_v57 = vcombine.low %v1266_v53, %v1273_v28  ;;  %v4634_v28 = vld [vmem:[#allocation43_spill] sm:$0xff] }
 0x21c   : > { %v1281_v32 = vrot.slane %v1274_v57, %v3813_v51  ;;  %v3843_v22 = vpop.permute.xlu0 %1447  ;;  %v3845_v55 = vpop.permute.xlu1 %1469 }
 0x21e   : > { %1282 = vrot.lane.b32.xlu1 %v1281_v32, %s4619_s8 }
 0x220   : > { %v3847_v59 = vpop.permute.xlu0 %1493  ;;  %v3849_v7 = vpop.permute.xlu1 %1515 }
 0x224   : > { %v3851_v47 = vpop.permute.xlu0 %1539  ;;  %v3853_v49 = vpop.permute.xlu1 %1561 }
 0x228   : > { %v3855_v29 = vpop.permute.xlu0 %1585  ;;  %v3857_v50 = vpop.permute.xlu1 %1607 }
 0x22c   : > { %v3859_v6 = vpop.permute.xlu0 %1703  ;;  %v3861_v27 = vpop.permute.xlu1 %1725 }
 0x230   : > { %v3863_v48 = vpop.permute.xlu0 %1749  ;;  %v3865_v43 = vpop.permute.xlu1 %1771 }
 0x234   : > { %v3867_v4 = vpop.permute.xlu0 %1795  ;;  %v3869_v36 = vpop.permute.xlu1 %1817 }
 0x238   : > { %v3871_v10 = vpop.permute.xlu0 %1841  ;;  %v3873_v62 = vpop.permute.xlu1 %1863 }
 0x23c   : > { %v3875_v2 = vpop.permute.xlu0 %1885  ;;  %v3877_v25 = vpop.permute.xlu1 %1907 }
 0x23d   : > { %4620 = vst [vmem:[#allocation78_spill] sm:$0xff] %v3877_v25 }
 0x240   : > { %v3879_v60 = vpop.permute.xlu0 %1929  ;;  %v3881_v30 = vpop.permute.xlu1 %1951 }
 0x241   : > { %4621 = vst [vmem:[#allocation33_spill] sm:$0xff] %v3881_v30 }
 0x244   : > { %v3883_v31 = vpop.permute.xlu0 %1975  ;;  %v3886_v1 = vpop.permute.xlu1 %1997 }
 0x245   : > { %4622 = vst [vmem:[#allocation30_spill] sm:$0xff] %v3883_v31  ;;  %4623 = vst [vmem:[#allocation48_spill] sm:$0xff] %v3886_v1 }
 0x28a   : > { %v1251_v16 = vpop.permute.xlu0 %1250 }
 0x28b   : > { %v1252_v56 = vrot.slane %v1251_v16, 1 }
 0x28d   : > { %v1253_v54 = vsel %vm1115_vm8, %v1251_v16, %v1252_v56  ;;  %v1622_v16 = vstv %s2366_s29  ;;  %s4673_s29 = smov 94  }
 0x28e   : > { %v1255_v3 = vadd.f32 %v1253_v54, %v375_v14  ;;  %v1639_v54 = vstv %s2367_s15  ;;  %s2385_s15 = sld [smem:[#allocation9 + $0x23]] }
 0x290   : > { %v1289_v26 = vmul.f32 %v1288_v13, %v1255_v3  ;;  %v2064_v17 = vmul.f32 %v2063_v15, %v1255_v3  ;;  %v1283_v11 = vpop.permute.xlu1 %1282  ;;  %v3950_v3 = vstv %s1315_s7  ;;  %s2053_s7 = sld [smem:[#allocation10]] }
 0x291   : > { %v1284_v38 = vrot.slane %v1283_v11, 1 }
 0x292   : > { %v3896_v37 = vrot.slane %v1289_v26, %v4628_v45  ;;  %v3899_v40 = vrot.slane %v1289_v26, %v4629_v18  ;;  %2069 = vst.msk [vmem:[%s3903_s9] ss:$4 sm:$0x3] %vm3890_vm0, %v2064_v17  ;;  %v1656_v26 = vstv %s2368_s19  ;;  %v4636_v17 = vld [vmem:[#allocation74_spill] sm:$0xff]  ;;  %s2386_s19 = sld [smem:[#allocation10 + $0x1]] }
 0x293   : > { %v1285_v52 = vsel %vm1115_vm8, %v1283_v11, %v1284_v38  ;;  %v4637_v38 = vld [vmem:[#allocation79_spill] sm:$0xff] }
 0x294   : > { %v1287_v8 = vadd.f32 %v2312_v24, %v1285_v52  ;;  %v1353_v19 = vmul.f32 %v4631_v21, %v3899_v40  ;;  %v1352_v23 = vmul.f32 %v4631_v21, %v3896_v37  ;;  %v1374_v61 = vmul.f32 %v4632_v46, %v3896_v37 }
 0x295   : > { %v1375_v35 = vmul.f32 %v4632_v46, %v3899_v40  ;;  %v1623_v14 = vmul.f32 %v1622_v16, %v3896_v37  ;;  %v1624_v56 = vmul.f32 %v1622_v16, %v3899_v40  ;;  %v1314_v24 = vmul.f32 %v4636_v17, %v3899_v40 }
 0x296   : > { %v1290_v5 = vmul.f32 %v1288_v13, %v1287_v8  ;;  %v2070_v34 = vmul.f32 %v2063_v15, %v1287_v8  ;;  %1361 = vrot.lane.b32.xlu0 %v1353_v19, %s2732_s17  ;;  %1359 = vrot.lane.b32.xlu1 %v1352_v23, %s2732_s17  ;;  %v1640_v13 = vmul.f32 %v1639_v54, %v3896_v37  ;;  %v3964_v52 = vstv %s2351_s12  ;;  %s2306_s12 = sld [smem:[#allocation12 + $0x2]] }
 0x297   : > { %v1641_v15 = vmul.f32 %v1639_v54, %v3899_v40  ;;  %v3966_v8 = vstv %s2353_s27  ;;  %v1673_v21 = vstv %s3942_s10  ;;  %v1319_v23 = vmul.f32 %v3950_v3, %v1314_v24  ;;  %v4638_v54 = vld [vmem:[#allocation67_spill] sm:$0xff]  ;;  %s4659_s10 = smov 110   ;;  %s2384_s27 = sld [smem:[#allocation9 + $0x22]] }
 0x298   : > { %v3916_v42 = vrot.slane %v1290_v5, %v4628_v45  ;;  %v3919_v0 = vrot.slane %v1290_v5, %v4629_v18  ;;  %2387 = vst.msk [vmem:[%s3903_s9 + $0x1] ss:$4 sm:$0x3] %vm3890_vm0, %v2070_v34  ;;  %v1313_v18 = vmul.f32 %v3896_v37, %v4637_v38 }
 0x29a   : > { %1381 = vrot.lane.b32.xlu0 %v1374_v61, %s2732_s17  ;;  %1383 = vrot.lane.b32.xlu1 %v1375_v35, %s2732_s17  ;;  %v1397_v20 = vmul.f32 %v4633_v9, %v3919_v0  ;;  %v1396_v53 = vmul.f32 %v4633_v9, %v3916_v42  ;;  %v1418_v57 = vmul.f32 %v4634_v28, %v3916_v42 }
 0x29b   : > { %v1419_v32 = vmul.f32 %v4634_v28, %v3919_v0  ;;  %v1332_v11 = vmul.f32 %v4636_v17, %v3919_v0  ;;  %v1331_v45 = vmul.f32 %v3916_v42, %v4637_v38  ;;  %v1657_v34 = vmul.f32 %v1656_v26, %v3916_v42 }
 0x29c   : > { %v1658_v46 = vmul.f32 %v1656_v26, %v3919_v0  ;;  %v1318_v61 = vmul.f32 %v3950_v3, %v1313_v18  ;;  %v1326_v28 = vmul.f32 %v3964_v52, %v1313_v18  ;;  %v4639_v26 = vld [vmem:[#allocation69_spill] sm:$0xff]  ;;  %v4641_v18 = vld [vmem:[#allocation72_spill] sm:$0xff] }
 0x29d   : > { %v1337_v19 = vmul.f32 %v3952_v44, %v1332_v11  ;;  %v1336_v5 = vmul.f32 %v3952_v44, %v1331_v45  ;;  %v1344_v35 = vmul.f32 %v3966_v8, %v1331_v45  ;;  %v1897_v17 = vmul.f32 %v4639_v26, %v3896_v37 }
 0x29e   : > { %1405 = vrot.lane.b32.xlu0 %v1397_v20, %s2732_s17  ;;  %1403 = vrot.lane.b32.xlu1 %v1396_v53, %s2732_s17  ;;  %v1327_v20 = vmul.f32 %v3964_v52, %v1314_v24  ;;  %v1345_v53 = vmul.f32 %v3966_v8, %v1332_v11  ;;  %v1898_v11 = vmul.f32 %v4639_v26, %v3899_v40  ;;  %v4640_v24 = vld [vmem:[#allocation70_spill] sm:$0xff] }
 0x29f   : > { %v3976_v9 = vadd.f32 %v1337_v19, %v1319_v23  ;;  %v3987_v16 = vadd.f32 %v1344_v35, %v1326_v28  ;;  %v1919_v38 = vmul.f32 %v4640_v24, %v3916_v42  ;;  %v1920_v45 = vmul.f32 %v4640_v24, %v3919_v0  ;;  %v4642_v23 = vld [vmem:[#allocation23_spill] sm:$0xff] }
 0x2a0   : > { %v1942_v19 = vmul.f32 %v4641_v18, %v3919_v0 }
 0x2a2   : > { %1425 = vrot.lane.b32.xlu0 %v1418_v57, %s2732_s17  ;;  %1427 = vrot.lane.b32.xlu1 %v1419_v32, %s2732_s17  ;;  %v3983_v57 = vadd.f32 %v1336_v5, %v1318_v61  ;;  %v3985_v32 = vadd.f32 %v1345_v53, %v1327_v20  ;;  %v1438_v5 = vmul.f32 %v4642_v23, %v3899_v40  ;;  %v4644_v61 = vld [vmem:[#allocation46_spill] sm:$0xff]  ;;  %s4645_s17 = smov 126   ;;  %v4646_v53 = vld [vmem:[#allocation47_spill] sm:$0xff] }
 0x2a4   : > { %v1443_v35 = vmul.f32 %v4644_v61, %v1438_v5 }
 0x2a6   : > { %1627 = vrot.lane.b32.xlu0 %v1623_v14, %s4635_s25  ;;  %1629 = vrot.lane.b32.xlu1 %v1624_v56, %s4635_s25  ;;  %v1674_v14 = vmul.f32 %v1673_v21, %v3916_v42  ;;  %v1675_v56 = vmul.f32 %v1673_v21, %v3919_v0  ;;  %v1941_v21 = vmul.f32 %v4641_v18, %v3916_v42  ;;  %v4650_v18 = vld [vmem:[#allocation27_spill] sm:$0xff] }
 0x2aa   : > { %1644 = vrot.lane.b32.xlu0 %v1640_v13, %s4635_s25  ;;  %1646 = vrot.lane.b32.xlu1 %v1641_v15, %s4635_s25  ;;  %v1875_v13 = vmul.f32 %v4638_v54, %v3896_v37  ;;  %v1876_v15 = vmul.f32 %v4638_v54, %v3899_v40 }
 0x2ae   : > { %1661 = vrot.lane.b32.xlu0 %v1657_v34, %s4635_s25  ;;  %1663 = vrot.lane.b32.xlu1 %v1658_v46, %s4635_s25  ;;  %v4643_v34 = vld [vmem:[#allocation26_spill] sm:$0xff] }
 0x2af   : > { %v1437_v46 = vmul.f32 %v3896_v37, %v4643_v34  ;;  %v1483_v54 = vmul.f32 %v3916_v42, %v4643_v34  ;;  %v4653_v34 = vld [vmem:[#allocation53_spill] sm:$0xff] }
 0x2b1   : > { %v1442_v20 = vmul.f32 %v4644_v61, %v1437_v46  ;;  %v1464_v28 = vmul.f32 %v4646_v53, %v1437_v46 }
 0x2b2   : > { %1678 = vrot.lane.b32.xlu0 %v1674_v14, %s4635_s25  ;;  %1680 = vrot.lane.b32.xlu1 %v1675_v56, %s4635_s25  ;;  %v1465_v14 = vmul.f32 %v4646_v53, %v1438_v5  ;;  %v1484_v56 = vmul.f32 %v4642_v23, %v3919_v0  ;;  %s4652_s25 = smov 112   ;;  %v4654_v53 = vld [vmem:[#allocation55_spill] sm:$0xff] }
 0x2b6   : > { %1881 = vrot.lane.b32.xlu0 %v1875_v13, %s2742_s11  ;;  %1883 = vrot.lane.b32.xlu1 %v1876_v15, %s2742_s11  ;;  %v4647_v13 = vld [vmem:[#allocation49_spill] sm:$0xff] }
 0x2b7   : > { %v1489_v15 = vmul.f32 %v4647_v13, %v1484_v56  ;;  %v1488_v26 = vmul.f32 %v4647_v13, %v1483_v54 }
 0x2ba   : > { %1903 = vrot.lane.b32.xlu0 %v1897_v17, %s2742_s11  ;;  %1905 = vrot.lane.b32.xlu1 %v1898_v11, %s2742_s11  ;;  %v4648_v17 = vld [vmem:[#allocation50_spill] sm:$0xff] }
 0x2bb   : > { %v1510_v11 = vmul.f32 %v4648_v17, %v1483_v54  ;;  %v1511_v24 = vmul.f32 %v4648_v17, %v1484_v56  ;;  %v4655_v56 = vld [vmem:[#allocation56_spill] sm:$0xff] }
 0x2bc   : > { %v4657_v17 = vld [vmem:[#allocation28_spill] sm:$0xff] }
 0x2be   : > { %1925 = vrot.lane.b32.xlu0 %v1919_v38, %s2742_s11  ;;  %1927 = vrot.lane.b32.xlu1 %v1920_v45, %s2742_s11  ;;  %v4649_v38 = vld [vmem:[#allocation25_spill] sm:$0xff] }
 0x2bf   : > { %v1530_v45 = vmul.f32 %v4649_v38, %v3899_v40 }
 0x2c1   : > { %v1557_v61 = vmul.f32 %v4653_v34, %v1530_v45 }
 0x2c2   : > { %1947 = vrot.lane.b32.xlu0 %v1941_v21, %s2742_s11  ;;  %1949 = vrot.lane.b32.xlu1 %v1942_v19, %s2742_s11  ;;  %v1529_v21 = vmul.f32 %v3896_v37, %v4650_v18  ;;  %v4651_v19 = vld [vmem:[#allocation52_spill] sm:$0xff]  ;;  %s4666_s11 = smov 96  }
 0x2c3   : > { %v1535_v23 = vmul.f32 %v4651_v19, %v1530_v45 }
 0x2c4   : > { %v1534_v5 = vmul.f32 %v4651_v19, %v1529_v21  ;;  %v1556_v46 = vmul.f32 %v4653_v34, %v1529_v21  ;;  %v4661_v34 = vld [vmem:[#allocation60_spill] sm:$0xff] }
 0x2c6   : > { %1451 = vrot.lane.b32.xlu0 %v1443_v35, %s4645_s17  ;;  %1449 = vrot.lane.b32.xlu1 %v1442_v20, %s4645_s17  ;;  %v1576_v35 = vmul.f32 %v4649_v38, %v3919_v0  ;;  %v1575_v20 = vmul.f32 %v3916_v42, %v4650_v18  ;;  %v4660_v18 = vld [vmem:[#allocation58_spill] sm:$0xff] }
 0x2c8   : > { %v1602_v54 = vmul.f32 %v4655_v56, %v1575_v20  ;;  %v1603_v13 = vmul.f32 %v4655_v56, %v1576_v35  ;;  %v4664_v56 = vld [vmem:[#allocation29_spill] sm:$0xff] }
 0x2ca   : > { %1471 = vrot.lane.b32.xlu0 %v1464_v28, %s4645_s17  ;;  %1473 = vrot.lane.b32.xlu1 %v1465_v14, %s4645_s17  ;;  %v1581_v28 = vmul.f32 %v4654_v53, %v1576_v35  ;;  %v1580_v14 = vmul.f32 %v4654_v53, %v1575_v20  ;;  %v4662_v35 = vld [vmem:[#allocation61_spill] sm:$0xff] }
 0x2ce   : > { %1497 = vrot.lane.b32.xlu0 %v1489_v15, %s4645_s17  ;;  %1495 = vrot.lane.b32.xlu1 %v1488_v26, %s4645_s17  ;;  %v4656_v15 = vld [vmem:[#allocation22_spill] sm:$0xff] }
 0x2cf   : > { %v1689_v26 = vmul.f32 %v4656_v15, %v3896_v37 }
 0x2d1   : > { %v1715_v21 = vmul.f32 %v4660_v18, %v1689_v26 }
 0x2d2   : > { %1517 = vrot.lane.b32.xlu0 %v1510_v11, %s4645_s17  ;;  %1519 = vrot.lane.b32.xlu1 %v1511_v24, %s4645_s17  ;;  %v1690_v11 = vmul.f32 %v3899_v40, %v4657_v17  ;;  %v4658_v24 = vld [vmem:[#allocation57_spill] sm:$0xff]  ;;  %s2396_s17 = sshll.u32 %s2805_s28, 7  ;;  %s2152_s28 = scalar_lea.sflag [#allocation4], %s2947_s13 }
 0x2d3   : > { %v1693_v38 = vmul.f32 %v4658_v24, %v1689_v26 }
 0x2d4   : > { %v1694_v45 = vmul.f32 %v4658_v24, %v1690_v11  ;;  %v1716_v19 = vmul.f32 %v4660_v18, %v1690_v11  ;;  %v4668_v18 = vld [vmem:[#allocation65_spill] sm:$0xff] }
 0x2d6   : > { %1543 = vrot.lane.b32.xlu0 %v1535_v23, %s4652_s25  ;;  %1541 = vrot.lane.b32.xlu1 %v1534_v5, %s4652_s25  ;;  %v1735_v23 = vmul.f32 %v4656_v15, %v3916_v42  ;;  %v1736_v5 = vmul.f32 %v3919_v0, %v4657_v17  ;;  %v4667_v17 = vld [vmem:[#allocation64_spill] sm:$0xff] }
 0x2d8   : > { %v1761_v20 = vmul.f32 %v4662_v35, %v1735_v23  ;;  %v1762_v53 = vmul.f32 %v4662_v35, %v1736_v5  ;;  %v4671_v35 = vld [vmem:[#allocation34_spill] sm:$0xff] }
 0x2da   : > { %1563 = vrot.lane.b32.xlu0 %v1556_v46, %s4652_s25  ;;  %1565 = vrot.lane.b32.xlu1 %v1557_v61, %s4652_s25  ;;  %v1739_v46 = vmul.f32 %v4661_v34, %v1735_v23  ;;  %v1740_v61 = vmul.f32 %v4661_v34, %v1736_v5  ;;  %v4669_v23 = vld [vmem:[#allocation66_spill] sm:$0xff] }
 0x2de   : > { %1589 = vrot.lane.b32.xlu0 %v1581_v28, %s4652_s25  ;;  %1587 = vrot.lane.b32.xlu1 %v1580_v14, %s4652_s25  ;;  %v4663_v28 = vld [vmem:[#allocation24_spill] sm:$0xff] }
 0x2df   : > { %v1781_v14 = vmul.f32 %v4663_v28, %v3896_v37 }
 0x2e1   : > { %v1807_v11 = vmul.f32 %v4667_v17, %v1781_v14 }
 0x2e2   : > { %1609 = vrot.lane.b32.xlu0 %v1602_v54, %s4652_s25  ;;  %1611 = vrot.lane.b32.xlu1 %v1603_v13, %s4652_s25  ;;  %v1782_v54 = vmul.f32 %v3899_v40, %v4664_v56  ;;  %v4665_v13 = vld [vmem:[#allocation63_spill] sm:$0xff]  ;;  %s2166_s25 = sshll.u32 %s3903_s9, 4  ;;  %s4330_s25 = int_to_ptr.vmem [resolvable:$true] %s2166_s25 }
 0x2e3   : > { %v1785_v15 = vmul.f32 %v4665_v13, %v1781_v14  ;;  %v4672_v14 = vld [vmem:[#allocation75_spill] sm:$0xff] }
 0x2e4   : > { %v1786_v26 = vmul.f32 %v4665_v13, %v1782_v54  ;;  %v1808_v24 = vmul.f32 %v4667_v17, %v1782_v54  ;;  %v1343_v13 = vmul.f32 %v3966_v8, %v3559_v12 }
 0x2e6   : > { %1699 = vrot.lane.b32.xlu0 %v1693_v38, %s4659_s10  ;;  %1701 = vrot.lane.b32.xlu1 %v1694_v45, %s4659_s10  ;;  %v1827_v38 = vmul.f32 %v4663_v28, %v3916_v42  ;;  %v1828_v45 = vmul.f32 %v3919_v0, %v4664_v56  ;;  %v1335_v28 = vmul.f32 %v3952_v44, %v3559_v12  ;;  %v4674_v44 = vld [vmem:[#allocation76_spill] sm:$0xff] }
 0x2e8   : > { %v1853_v5 = vmul.f32 %v4669_v23, %v1827_v38  ;;  %v1854_v34 = vmul.f32 %v4669_v23, %v1828_v45 }
 0x2ea   : > { %1721 = vrot.lane.b32.xlu0 %v1715_v21, %s4659_s10  ;;  %1723 = vrot.lane.b32.xlu1 %v1716_v19, %s4659_s10  ;;  %v1831_v21 = vmul.f32 %v4668_v18, %v1827_v38  ;;  %v1832_v19 = vmul.f32 %v4668_v18, %v1828_v45  ;;  %v2010_v18 = vstv %s2384_s27  ;;  %s2745_s27 = smov [#allocation13]  }
 0x2ee   : > { %1745 = vrot.lane.b32.xlu0 %v1739_v46, %s4659_s10  ;;  %1747 = vrot.lane.b32.xlu1 %v1740_v61, %s4659_s10  ;;  %v4670_v46 = vld [vmem:[#allocation31_spill] sm:$0xff] }
 0x2ef   : > { %v1961_v61 = vmul.f32 %v4670_v46, %v3896_v37 }
 0x2f1   : > { %v1965_v56 = vmul.f32 %v4672_v14, %v1961_v61 }
 0x2f2   : > { %1767 = vrot.lane.b32.xlu0 %v1761_v20, %s4659_s10  ;;  %1769 = vrot.lane.b32.xlu1 %v1762_v53, %s4659_s10  ;;  %v1962_v20 = vmul.f32 %v3899_v40, %v4671_v35  ;;  %v1317_v53 = vmul.f32 %v3950_v3, %v3559_v12  ;;  %v1325_v40 = vmul.f32 %v3964_v52, %v3559_v12 }
 0x2f4   : > { %v1966_v54 = vmul.f32 %v4672_v14, %v1962_v20  ;;  %v1338_v37 = vadd.f32 %v1335_v28, %v1317_v53  ;;  %v1988_v17 = vmul.f32 %v4674_v44, %v1962_v20 }
 0x2f6   : > { %1791 = vrot.lane.b32.xlu0 %v1785_v15, %s4666_s11  ;;  %1793 = vrot.lane.b32.xlu1 %v1786_v26, %s4666_s11  ;;  %v1987_v26 = vmul.f32 %v4674_v44, %v1961_v61 }
 0x2fa   : > { %1813 = vrot.lane.b32.xlu0 %v1807_v11, %s4666_s11  ;;  %1815 = vrot.lane.b32.xlu1 %v1808_v24, %s4666_s11  ;;  %v2007_v11 = vmul.f32 %v4670_v46, %v3916_v42  ;;  %v2008_v24 = vmul.f32 %v3919_v0, %v4671_v35  ;;  %v2032_v46 = vstv %s2385_s15 }
 0x2fc   : > { %v2011_v23 = vmul.f32 %v2010_v18, %v2007_v11  ;;  %v2012_v0 = vmul.f32 %v2010_v18, %v2008_v24  ;;  %v2033_v20 = vmul.f32 %v2032_v46, %v2007_v11  ;;  %v2034_v53 = vmul.f32 %v2032_v46, %v2008_v24 }
 0x2fe   : > { %1837 = vrot.lane.b32.xlu0 %v1831_v21, %s4666_s11  ;;  %1839 = vrot.lane.b32.xlu1 %v1832_v19, %s4666_s11  ;;  %v1346_v21 = vadd.f32 %v1343_v13, %v1325_v40 }
 0x302   : > { %1859 = vrot.lane.b32.xlu0 %v1853_v5, %s4666_s11  ;;  %1861 = vrot.lane.b32.xlu1 %v1854_v34, %s4666_s11  ;;  %s4328_s11 = scalar_lea.hbm %s4384_s6, %s2396_s17 }
 0x306   : > { %1971 = vrot.lane.b32.xlu0 %v1965_v56, %s4673_s29  ;;  %1973 = vrot.lane.b32.xlu1 %v1966_v54, %s4673_s29 }
 0x308   : > { %v1362_v3 = vpop.permute.xlu0 %1361  ;;  %v1360_v15 = vpop.permute.xlu1 %1359 }
 0x309   : > { %v1370_v38 = vadd.f32 %v1362_v3, %v3976_v9  ;;  %v1363_v52 = vsel %vm466_vm5, %v3835_v39, %v1360_v15  ;;  %v1364_v12 = vsel %vm466_vm5, %v1360_v15, %v1362_v3 }
 0x30a   : > { %v1368_v8 = vadd.f32 %v1363_v52, %v1338_v37  ;;  %v1369_v45 = vadd.f32 %v1364_v12, %v3983_v57  ;;  %1993 = vrot.lane.b32.xlu0 %v1987_v26, %s4673_s29  ;;  %1995 = vrot.lane.b32.xlu1 %v1988_v17, %s4673_s29  ;;  %v4675_v37 = vld [vmem:[#allocation35_spill] sm:$0xff] }
 0x30b   : > { %v2013_v40 = vmul.f32 %v2010_v18, %v4675_v37  ;;  %v2035_v13 = vmul.f32 %v2032_v46, %v4675_v37 }
 0x30c   : > { %v1382_v42 = vpop.permute.xlu0 %1381  ;;  %v1384_v19 = vpop.permute.xlu1 %1383 }
 0x30d   : > { %v1385_v9 = vsel %vm466_vm5, %v3837_v41, %v1382_v42  ;;  %v1386_v39 = vsel %vm466_vm5, %v1382_v42, %v1384_v19  ;;  %v1392_v5 = vadd.f32 %v1384_v19, %v3985_v32 }
 0x30e   : > { %v1390_v34 = vadd.f32 %v1385_v9, %v1346_v21  ;;  %v1391_v57 = vadd.f32 %v1386_v39, %v3987_v16  ;;  %2017 = vrot.lane.b32.xlu0 %v2011_v23, %s4673_s29  ;;  %2019 = vrot.lane.b32.xlu1 %v2012_v0, %s4673_s29 }
 0x310   : > { %v1406_v61 = vpop.permute.xlu0 %1405  ;;  %v1404_v35 = vpop.permute.xlu1 %1403 }
 0x311   : > { %v1414_v28 = vadd.f32 %v1406_v61, %v1370_v38  ;;  %v1407_v41 = vsel %vm466_vm5, %v3839_v58, %v1404_v35  ;;  %v1408_v14 = vsel %vm466_vm5, %v1404_v35, %v1406_v61 }
 0x312   : > { %v1412_v56 = vadd.f32 %v1407_v41, %v1368_v8  ;;  %v1413_v32 = vadd.f32 %v1408_v14, %v1369_v45  ;;  %2039 = vrot.lane.b32.xlu0 %v2033_v20, %s4673_s29  ;;  %2041 = vrot.lane.b32.xlu1 %v2034_v53, %s4673_s29 }
 0x314   : > { %v1426_v16 = vpop.permute.xlu0 %1425  ;;  %v1428_v54 = vpop.permute.xlu1 %1427 }
 0x315   : > { %v1429_v3 = vsel %vm466_vm5, %v3841_v63, %v1426_v16  ;;  %v1430_v15 = vsel %vm466_vm5, %v1426_v16, %v1428_v54  ;;  %v1436_v58 = vadd.f32 %v1428_v54, %v1392_v5 }
 0x316   : > { %v1434_v44 = vadd.f32 %v1429_v3, %v1390_v34  ;;  %v1435_v26 = vadd.f32 %v1430_v15, %v1391_v57  ;;  %2021 = vrot.lane.b32.xlu0 %v2013_v40, %s4673_s29  ;;  %2043 = vrot.lane.b32.xlu1 %v2035_v13, %s4673_s29  ;;  %s2649_s29 = sshll.u32 %s2745_s27, 4  ;;  %s2650_s29 = int_to_ptr.vmem [resolvable:$false] %s2649_s29 }
 0x317   : > { %s2651_s15 = scalar_lea.vmem %s2650_s29, 256  ;;  %p2652_p9 = scmp.lt.s32.totalorder %s4330_s25, %s2650_s29 }
 0x318   : > { %v4161_v17 = vpop.permute.xlu0 %1627  ;;  %v4163_v11 = vpop.permute.xlu1 %1629 }
 0x319   : > { %v4168_v24 = vsel %vm410_vm9, %v4161_v17, %v4163_v11 }
 0x31c   : > { %v4170_v38 = vpop.permute.xlu0 %1644  ;;  %v4172_v63 = vpop.permute.xlu1 %1646 }
 0x31d   : > { %v4177_v52 = vsel %vm410_vm9, %v4170_v38, %v4172_v63 }
 0x320   : > { %v4179_v12 = vpop.permute.xlu0 %1661  ;;  %v4181_v8 = vpop.permute.xlu1 %1663 }
 0x321   : > { %v4186_v45 = vsel %vm410_vm9, %v4179_v12, %v4181_v8 }
 0x324   : > { %v4188_v18 = vpop.permute.xlu0 %1678  ;;  %v4190_v21 = vpop.permute.xlu1 %1680 }
 0x325   : > { %v4195_v42 = vsel %vm410_vm9, %v4188_v18, %v4190_v21 }
 0x328   : > { %v4197_v19 = vpop.permute.xlu0 %1881  ;;  %v4199_v23 = vpop.permute.xlu1 %1883 }
 0x32c   : > { %v4201_v0 = vpop.permute.xlu0 %1903  ;;  %v4203_v9 = vpop.permute.xlu1 %1905 }
 0x32d   : > { %4676 = vst [vmem:[#allocation71_spill] sm:$0xff] %v4201_v0  ;;  %4677 = vst [vmem:[#allocation36_spill] sm:$0xff] %v4203_v9 }
 0x330   : > { %v4205_v39 = vpop.permute.xlu0 %1925  ;;  %v4207_v5 = vpop.permute.xlu1 %1927 }
 0x334   : > { %v4209_v34 = vpop.permute.xlu0 %1947  ;;  %v4211_v57 = vpop.permute.xlu1 %1949 }
 0x335   : > { %4678 = vst [vmem:[#allocation32_spill] sm:$0xff] %v4209_v34  ;;  %4679 = vst [vmem:[#allocation44_spill] sm:$0xff] %v4211_v57 }
 0x338   : > { %v1452_v46 = vpop.permute.xlu0 %1451  ;;  %v1450_v61 = vpop.permute.xlu1 %1449 }
 0x339   : > { %v1453_v40 = vsel %vm569_vm10, %v3843_v22, %v1450_v61  ;;  %v1454_v13 = vsel %vm569_vm10, %v1450_v61, %v1452_v46  ;;  %v1460_v3 = vadd.f32 %v1452_v46, %v1414_v28 }
 0x33a   : > { %v1458_v1 = vadd.f32 %v1453_v40, %v1412_v56  ;;  %v1459_v31 = vadd.f32 %v1454_v13, %v1413_v32 }
 0x33c   : > { %v1472_v35 = vpop.permute.xlu0 %1471  ;;  %v1474_v20 = vpop.permute.xlu1 %1473 }
 0x33d   : > { %v1475_v15 = vsel %vm569_vm10, %v3845_v55, %v1472_v35  ;;  %v1476_v30 = vsel %vm569_vm10, %v1472_v35, %v1474_v20  ;;  %v1482_v61 = vadd.f32 %v1474_v20, %v1436_v58 }
 0x33e   : > { %v1480_v46 = vadd.f32 %v1475_v15, %v1434_v44  ;;  %v1481_v9 = vadd.f32 %v1476_v30, %v1435_v26 }
 0x340   : > { %v1498_v53 = vpop.permute.xlu0 %1497  ;;  %v1496_v41 = vpop.permute.xlu1 %1495 }
 0x341   : > { %v1499_v33 = vsel %vm569_vm10, %v3847_v59, %v1496_v41  ;;  %v1500_v51 = vsel %vm569_vm10, %v1496_v41, %v1498_v53  ;;  %v1506_v25 = vadd.f32 %v1498_v53, %v1460_v3 }
 0x342   : > { %v1504_v55 = vadd.f32 %v1499_v33, %v1458_v1  ;;  %v1505_v0 = vadd.f32 %v1500_v51, %v1459_v31 }
 0x344   : > { %v1518_v14 = vpop.permute.xlu0 %1517  ;;  %v1520_v16 = vpop.permute.xlu1 %1519 }
 0x345   : > { %v1521_v59 = vsel %vm569_vm10, %v3849_v7, %v1518_v14  ;;  %v1522_v56 = vsel %vm569_vm10, %v1518_v14, %v1520_v16  ;;  %v1528_v35 = vadd.f32 %v1520_v16, %v1482_v61 }
 0x346   : > { %v1526_v7 = vadd.f32 %v1521_v59, %v1480_v46  ;;  %v1527_v31 = vadd.f32 %v1522_v56, %v1481_v9 }
 0x348   : > { %v1544_v54 = vpop.permute.xlu0 %1543  ;;  %v1542_v37 = vpop.permute.xlu1 %1541 }
 0x349   : > { %v1545_v22 = vsel %vm671_vm11, %v3851_v47, %v1542_v37  ;;  %v1546_v28 = vsel %vm671_vm11, %v1542_v37, %v1544_v54  ;;  %v1552_v32 = vadd.f32 %v1544_v54, %v1506_v25 }
 0x34a   : > { %v1550_v41 = vadd.f32 %v1545_v22, %v1504_v55  ;;  %v1551_v40 = vadd.f32 %v1546_v28, %v1505_v0 }
 0x34c   : > { %v1564_v34 = vpop.permute.xlu0 %1563  ;;  %v1566_v57 = vpop.permute.xlu1 %1565 }
 0x34d   : > { %v1567_v53 = vsel %vm671_vm11, %v3853_v49, %v1564_v34  ;;  %v1568_v44 = vsel %vm671_vm11, %v1564_v34, %v1566_v57  ;;  %v1574_v33 = vadd.f32 %v1566_v57, %v1528_v35 }
 0x34e   : > { %v1572_v0 = vadd.f32 %v1567_v53, %v1526_v7  ;;  %v1573_v20 = vadd.f32 %v1568_v44, %v1527_v31  ;;  %v1888_v7 = vsel %vm1036_vm14, %v4199_v23, %v3875_v2 }
 0x350   : > { %v1590_v47 = vpop.permute.xlu0 %1589  ;;  %v1588_v13 = vpop.permute.xlu1 %1587 }
 0x351   : > { %v1598_v58 = vadd.f32 %v1590_v47, %v1552_v32  ;;  %v1591_v51 = vsel %vm671_vm11, %v3855_v29, %v1588_v13  ;;  %v1592_v30 = vsel %vm671_vm11, %v1588_v13, %v1590_v47 }
 0x352   : > { %v1596_v1 = vadd.f32 %v1591_v51, %v1550_v41  ;;  %v1597_v25 = vadd.f32 %v1592_v30, %v1551_v40 }
 0x353   : > { %v1637_v26 = vadd.f32 %v4163_v11, %v1598_v58 }
 0x354   : > { %v1635_v49 = vadd.f32 %v4161_v17, %v1596_v1  ;;  %v1636_v14 = vadd.f32 %v4168_v24, %v1597_v25  ;;  %v1610_v34 = vpop.permute.xlu0 %1609  ;;  %v1612_v16 = vpop.permute.xlu1 %1611 }
 0x355   : > { %v1613_v29 = vsel %vm671_vm11, %v3857_v50, %v1610_v34  ;;  %v1614_v54 = vsel %vm671_vm11, %v1610_v34, %v1612_v16  ;;  %v1620_v37 = vadd.f32 %v1612_v16, %v1574_v33  ;;  %v1671_v9 = vadd.f32 %v4181_v8, %v1637_v26 }
 0x356   : > { %v1618_v3 = vadd.f32 %v1613_v29, %v1572_v0  ;;  %v1619_v57 = vadd.f32 %v1614_v54, %v1573_v20  ;;  %v1669_v11 = vadd.f32 %v4179_v12, %v1635_v49  ;;  %v1670_v15 = vadd.f32 %v4186_v45, %v1636_v14 }
 0x357   : > { %v1654_v17 = vadd.f32 %v4172_v63, %v1620_v37  ;;  %v1931_v54 = vsel %vm1036_vm14, %v4205_v39, %v4207_v5  ;;  %v1932_v37 = vsel %vm1036_vm14, %v4207_v5, %v3879_v60  ;;  %v4680_v60 = vld [vmem:[#allocation36_spill] sm:$0xff]  ;;  %v4681_v5 = vld [vmem:[#allocation71_spill] sm:$0xff] }
 0x358   : > { %v1652_v24 = vadd.f32 %v4170_v38, %v1618_v3  ;;  %v1653_v22 = vadd.f32 %v4177_v52, %v1619_v57  ;;  %v1700_v28 = vpop.permute.xlu0 %1699  ;;  %v1702_v46 = vpop.permute.xlu1 %1701 }
 0x359   : > { %v1688_v50 = vadd.f32 %v4190_v21, %v1654_v17  ;;  %v1705_v38 = vsel %vm842_vm12, %v1700_v28, %v1702_v46  ;;  %v1706_v52 = vsel %vm842_vm12, %v1702_v46, %v3859_v6  ;;  %v1887_v6 = vsel %vm1036_vm14, %v4197_v19, %v4199_v23 }
 0x35a   : > { %v1686_v61 = vadd.f32 %v4188_v18, %v1652_v24  ;;  %v1687_v8 = vadd.f32 %v4195_v42, %v1653_v22  ;;  %v1711_v21 = vadd.f32 %v1705_v38, %v1670_v15  ;;  %v1712_v42 = vadd.f32 %v1706_v52, %v1671_v9  ;;  %v4683_v52 = vld [vmem:[#allocation44_spill] sm:$0xff] }
 0x35b   : > { %v1710_v51 = vadd.f32 %v1700_v28, %v1669_v11 }
 0x35c   : > { %v1722_v55 = vpop.permute.xlu0 %1721  ;;  %v1724_v59 = vpop.permute.xlu1 %1723 }
 0x35d   : > { %v1727_v40 = vsel %vm842_vm12, %v1722_v55, %v1724_v59  ;;  %v1728_v13 = vsel %vm842_vm12, %v1724_v59, %v3861_v27  ;;  %v1732_v9 = vadd.f32 %v1722_v55, %v1686_v61  ;;  %v1909_v61 = vsel %vm1036_vm14, %v4681_v5, %v4680_v60  ;;  %v4682_v55 = vld [vmem:[#allocation78_spill] sm:$0xff] }
 0x35e   : > { %v1733_v31 = vadd.f32 %v1727_v40, %v1687_v8  ;;  %v1734_v25 = vadd.f32 %v1728_v13, %v1688_v50 }
 0x360   : > { %v1746_v56 = vpop.permute.xlu0 %1745  ;;  %v1748_v12 = vpop.permute.xlu1 %1747 }
 0x361   : > { %v1751_v41 = vsel %vm842_vm12, %v1746_v56, %v1748_v12  ;;  %v1752_v18 = vsel %vm842_vm12, %v1748_v12, %v3863_v48  ;;  %v1756_v33 = vadd.f32 %v1746_v56, %v1710_v51  ;;  %v1910_v12 = vsel %vm1036_vm14, %v4680_v60, %v4682_v55 }
 0x362   : > { %v1757_v48 = vadd.f32 %v1751_v41, %v1711_v21  ;;  %v1758_v30 = vadd.f32 %v1752_v18, %v1712_v42  ;;  %v4685_v18 = vld [vmem:[#allocation33_spill] sm:$0xff] }
 0x363   : > { %v1954_v21 = vsel %vm1036_vm14, %v4683_v52, %v4685_v18 }
 0x364   : > { %v1768_v32 = vpop.permute.xlu0 %1767  ;;  %v1770_v45 = vpop.permute.xlu1 %1769 }
 0x365   : > { %v1773_v1 = vsel %vm842_vm12, %v1768_v32, %v1770_v45  ;;  %v1774_v27 = vsel %vm842_vm12, %v1770_v45, %v3865_v43  ;;  %v1778_v24 = vadd.f32 %v1768_v32, %v1732_v9 }
 0x366   : > { %v1779_v23 = vadd.f32 %v1773_v1, %v1733_v31  ;;  %v1780_v16 = vadd.f32 %v1774_v27, %v1734_v25 }
 0x368   : > { %v1792_v35 = vpop.permute.xlu0 %1791  ;;  %v1794_v63 = vpop.permute.xlu1 %1793 }
 0x369   : > { %v1797_v44 = vsel %vm945_vm13, %v1792_v35, %v1794_v63  ;;  %v1798_v58 = vsel %vm945_vm13, %v1794_v63, %v3867_v4  ;;  %v1802_v3 = vadd.f32 %v1792_v35, %v1756_v33 }
 0x36a   : > { %v1803_v4 = vadd.f32 %v1797_v44, %v1757_v48  ;;  %v1804_v26 = vadd.f32 %v1798_v58, %v1758_v30 }
 0x36c   : > { %v1814_v53 = vpop.permute.xlu0 %1813  ;;  %v1816_v47 = vpop.permute.xlu1 %1815 }
 0x36d   : > { %v1819_v49 = vsel %vm945_vm13, %v1814_v53, %v1816_v47  ;;  %v1820_v14 = vsel %vm945_vm13, %v1816_v47, %v3869_v36  ;;  %v1824_v45 = vadd.f32 %v1814_v53, %v1778_v24 }
 0x36e   : > { %v1825_v36 = vadd.f32 %v1819_v49, %v1779_v23  ;;  %v1826_v57 = vadd.f32 %v1820_v14, %v1780_v16  ;;  %v4686_v49 = vld [vmem:[#allocation30_spill] sm:$0xff] }
 0x370   : > { %v1838_v0 = vpop.permute.xlu0 %1837  ;;  %v1840_v20 = vpop.permute.xlu1 %1839 }
 0x371   : > { %v1843_v34 = vsel %vm945_vm13, %v1838_v0, %v1840_v20  ;;  %v1844_v2 = vsel %vm945_vm13, %v1840_v20, %v3871_v10  ;;  %v1848_v22 = vadd.f32 %v1838_v0, %v1802_v3 }
 0x372   : > { %v1849_v29 = vadd.f32 %v1843_v34, %v1803_v4  ;;  %v1850_v43 = vadd.f32 %v1844_v2, %v1804_v26  ;;  %v2075_v4 = vstv %s2307_s30  ;;  %v2059_v2 = vstv %s2386_s19 }
 0x373   : > { %v1892_v42 = vadd.f32 %v4197_v19, %v1848_v22 }
 0x374   : > { %v1893_v11 = vadd.f32 %v1887_v6, %v1849_v29  ;;  %v1894_v15 = vadd.f32 %v1888_v7, %v1850_v43  ;;  %v1860_v17 = vpop.permute.xlu0 %1859  ;;  %v1862_v10 = vpop.permute.xlu1 %1861  ;;  %v2054_v7 = vstv %s2053_s7  ;;  %v4687_v29 = vld [vmem:[#allocation48_spill] sm:$0xff] }
 0x375   : > { %v1865_v28 = vsel %vm945_vm13, %v1860_v17, %v1862_v10  ;;  %v1866_v46 = vsel %vm945_vm13, %v1862_v10, %v3873_v62  ;;  %v4684_v62 = vld [vmem:[#allocation32_spill] sm:$0xff]  ;;  %v1870_v40 = vadd.f32 %v1860_v17, %v1824_v45  ;;  %v1936_v6 = vadd.f32 %v4205_v39, %v1892_v42 }
 0x376   : > { %v1871_v50 = vadd.f32 %v1865_v28, %v1825_v36  ;;  %v1872_v8 = vadd.f32 %v1866_v46, %v1826_v57  ;;  %v1938_v59 = vadd.f32 %v1932_v37, %v1894_v15  ;;  %v1937_v56 = vadd.f32 %v1931_v54, %v1893_v11  ;;  %v2538_v42 = vld [vmem:[%s2953_s26 + $0x3] ss:$4 sm:$0x3] }
 0x377   : > { %v1953_v41 = vsel %vm1036_vm14, %v4684_v62, %v4683_v52  ;;  %v1914_v58 = vadd.f32 %v4681_v5, %v1870_v40 }
 0x378   : > { %v1915_v32 = vadd.f32 %v1909_v61, %v1871_v50  ;;  %v1916_v35 = vadd.f32 %v1910_v12, %v1872_v8  ;;  %v1972_v63 = vpop.permute.xlu0 %1971  ;;  %v1974_v38 = vpop.permute.xlu1 %1973 }
 0x379   : > { %v1977_v51 = vsel %vm1137_vm15, %v1972_v63, %v1974_v38  ;;  %v1982_v48 = vadd.f32 %v1972_v63, %v1936_v6  ;;  %v1958_v19 = vadd.f32 %v4684_v62, %v1914_v58  ;;  %v1978_v39 = vsel %vm1137_vm15, %v1974_v38, %v4686_v49 }
 0x37a   : > { %v1960_v47 = vadd.f32 %v1954_v21, %v1916_v35  ;;  %v1959_v13 = vadd.f32 %v1953_v41, %v1915_v32  ;;  %v1983_v30 = vadd.f32 %v1977_v51, %v1937_v56  ;;  %v1984_v11 = vadd.f32 %v1978_v39, %v1938_v59  ;;  %v4688_v59 = vld [vmem:[#allocation37_spill] sm:$0xff] }
 0x37b   : > { %v2073_v21 = vstv %s2306_s12 }
 0x37c   : > { %v1994_v53 = vpop.permute.xlu0 %1993  ;;  %v1996_v44 = vpop.permute.xlu1 %1995  ;;  %v2113_v40 = vmul.f32 %v2538_v42, %v2073_v21 }
 0x37d   : > { %v1999_v27 = vsel %vm1137_vm15, %v1994_v53, %v1996_v44  ;;  %v2004_v0 = vadd.f32 %v1994_v53, %v1958_v19  ;;  %v2000_v43 = vsel %vm1137_vm15, %v1996_v44, %v4687_v29 }
 0x37e   : > { %v2005_v14 = vadd.f32 %v1999_v27, %v1959_v13  ;;  %v2006_v15 = vadd.f32 %v2000_v43, %v1960_v47  ;;  %v2539_v13 = vld [vmem:[%s2953_s26 + $0x2] ss:$4 sm:$0x3]  ;;  %s2645_s26 = scalar_lea.vmem %s4330_s25, 128 }
 0x37f   : > { %v2074_v53 = vmul.f32 %v2539_v13, %v2073_v21  ;;  %p2646_p13 = scmp.ne.s32.totalorder %s4330_s25, %s2645_s26  ;;  %p2653_p10 = scmp.lt.s32.totalorder %s2651_s15, %s2645_s26 }
 0x380   : > { %v2018_v31 = vpop.permute.xlu0 %2017  ;;  %v2020_v1 = vpop.permute.xlu1 %2019 }
 0x381   : > { %v2028_v25 = vadd.f32 %v2018_v31, %v1982_v48  ;;  %v2023_v33 = vsel %vm1137_vm15, %v2018_v31, %v2020_v1  ;;  %p2647_p4 = pnand %p2646_p13, %p4690_p2  ;;  %p2654_p11 = por %p2653_p10, %p2652_p9 }
 0x382   : > { %v2029_v26 = vadd.f32 %v2023_v33, %v1983_v30 }
 0x383   : > { %v2055_v20 = vadd.f32 %v2054_v7, %v2028_v25  ;;  %p2648_p5 = pneg %p2647_p4 }
 0x384   : > { %v2056_v34 = vadd.f32 %v2054_v7, %v2029_v26  ;;  %v2040_v23 = vpop.permute.xlu0 %2039  ;;  %v2042_v16 = vpop.permute.xlu1 %2041 }
 0x385   : > { %v2076_v54 = vmul.f32 %v2075_v4, %v2055_v20  ;;  %v2050_v37 = vadd.f32 %v2040_v23, %v2004_v0  ;;  %v2045_v9 = vsel %vm1137_vm15, %v2040_v23, %v2042_v16  ;;  %p2655_p7 = pnand %p2654_p11, %p2648_p5 }
 0x386   : > { %v2077_v3 = vmul.f32 %v2075_v4, %v2056_v34  ;;  %v2051_v36 = vadd.f32 %v2045_v9, %v2005_v14 }
 0x387   : > { %v2060_v57 = vadd.f32 %v2059_v2, %v2050_v37 }
 0x388   : > { %v2082_v17 = vcombine.low %v2076_v54, %v2077_v3  ;;  %v2061_v10 = vadd.f32 %v2059_v2, %v2051_v36  ;;  %v2022_v24 = vpop.permute.xlu0 %2021  ;;  %v2044_v22 = vpop.permute.xlu1 %2043 }
 0x389   : > { %v2114_v28 = vmul.f32 %v2075_v4, %v2060_v57  ;;  %v2024_v46 = vsel %vm1137_vm15, %v2020_v1, %v2022_v24  ;;  %v2046_v50 = vsel %vm1137_vm15, %v2042_v16, %v2044_v22 }
 0x38a   : > { %v2115_v8 = vmul.f32 %v2075_v4, %v2061_v10  ;;  %v2030_v56 = vadd.f32 %v2024_v46, %v1984_v11  ;;  %v2052_v60 = vadd.f32 %v2046_v50, %v2006_v15  ;;  %v2089_v32 = vrot.slane %v2082_v17, %v4688_v59 }
 0x38c   : > { %v2120_v5 = vcombine.low %v2114_v28, %v2115_v8  ;;  %v2057_v61 = vadd.f32 %v2054_v7, %v2030_v56  ;;  %v2062_v55 = vadd.f32 %v2059_v2, %v2052_v60 }
 0x38e   : > { %v2078_v12 = vmul.f32 %v2075_v4, %v2057_v61  ;;  %v2116_v45 = vmul.f32 %v2075_v4, %v2062_v55  ;;  %v2127_v35 = vrot.slane %v2120_v5, %v4688_v59 }
 0x390   : > { %v2096_v63 = vrot.slane %v2078_v12, %v4688_v59  ;;  %v2134_v38 = vrot.slane %v2116_v45, %v4688_v59 }
 0x392   : > { %v2135_v52 = vcombine.low %v2127_v35, %v2134_v38  ;;  %v2097_v62 = vcombine.low %v2089_v32, %v2096_v63 }
 0x394   : > { %v2142_v41 = vrot.slane %v2135_v52, %v4688_v59  ;;  %v2104_v18 = vrot.slane %v2097_v62, %v4688_v59 }
 0x396   : > { %2143 = vrot.lane.b32.xlu1 %v2142_v41, %s4619_s8  ;;  %2105 = vrot.lane.b32.xlu0 %v2104_v18, %s4619_s8 }
 0x408   : > { %v2144_v47 = vpop.permute.xlu1 %2143  ;;  %v2106_v44 = vpop.permute.xlu0 %2105 }
 0x409   : > { %v2145_v58 = vrot.slane %v2144_v47, 1  ;;  %v2107_v6 = vrot.slane %v2106_v44, 1 }
 0x40b   : > { %v2146_v51 = vsel %vm1115_vm8, %v2144_v47, %v2145_v58  ;;  %v2108_v48 = vsel %vm1115_vm8, %v2106_v44, %v2107_v6 }
 0x40c   : > { %v2148_v30 = vadd.f32 %v2146_v51, %v2113_v40  ;;  %v2110_v7 = vadd.f32 %v2108_v48, %v2074_v53 }
 0x40e   : > { %2389 = vst.msk [vmem:[%s3903_s9 + $0x3] ss:$4 sm:$0x3] %vm3890_vm0, %v2148_v30  ;;  %2388 = vst.msk [vmem:[%s3903_s9 + $0x2] ss:$4 sm:$0x3] %vm3890_vm0, %v2110_v7 }
 0x40f   : > { %2658 = shalt.err (!%p2655_p7)
}
 0x410   : > { %s2659_s13 = scalar_lea.hbm %s4328_s11, 128  ;;  %s2663_s30 = scalar_lea.hbm %s4384_s6, 256 }
 0x411   : > { %p2660_p6 = scmp.ne.s32.totalorder %s4328_s11, %s2659_s13  ;;  %p2664_p8 = scmp.lt.u32.totalorder %s4328_s11, %s4384_s6 }
 0x412   : > { %p2665_p12 = scmp.lt.u32.totalorder %s2663_s30, %s2659_s13  ;;  %p2667_p13 = scmp.lt.u32.totalorder %s2659_s13, %s4328_s11 }
 0x413   : > { %p2661_p1 = pnand %p2660_p6, %p4690_p2 }
 0x414   : > { %p2666_p0 = por %p2665_p12, %p2664_p8 }
 0x415   : > { %p2662_p3 = pneg %p2661_p1 }
 0x416   : > { %p2668_p4 = por %p2667_p13, %p2666_p0 }
 0x418   : > { %p2669_p5 = pnand %p2668_p4, %p2662_p3 }
 0x41a   : > { %2672 = shalt.err (!%p2669_p5)
}
 0x41b   : > { %2419 = dma.vmem_to_hbm [thread:$0]  (%p4690_p2), %s4330_s25, 128, %s4328_s11, %s2152_s28  }
 0x41c PF: > { %s2178_s17 = sand.u32 1, %s2711_s21   ;;  %p4691_p9 = scmp.ne.s32.totalorder %s4518_s20, 0 }
 0x41d   : > { %p4692_p10 = scmp.ge.s32.totalorder %s2723_s24, 2  ;;  %s2179_s8 = scalar_lea.sflag [#allocation4], %s2178_s17 }
 0x41f   : > { %p2442_p11 = pnand %p4692_p10, %p4691_p9 }
 0x421   : > { %2706 = dma.done.wait (!%p2442_p11), %s2179_s8, 128  }
 0x422   : > { %2708 = vsyncadd (!%p2442_p11), %s2179_s8, 4294967168  ;;  %p22_p7 = scmp.ge.s32.totalorder %s2877_s14, 4   ;;  %s4693_s21 = smov %s2715_s22 }
 0x423   : > { %s4694_s22 = smov %s2719_s23  ;;  %s4695_s23 = smov %s2889_s16 }
 0x424   : > { %s4696_s24 = smov %s2877_s14  ;;  %24 = sbr.rel (!%p22_p7) target bundleno = 8 (0x8), region = 116 }
 0x42b   :  { %2184 = vsyncpa [#allocation3], 1 }
 0x42c   :  { %2186 = vsyncpa [#allocation3 + $0x1], 1 }
 0x42d   :  { %2187 = vsyncpa [#allocation4], 1 }
 0x42e   :  { %2189 = vsyncpa [#allocation4 + $0x1], 1 }
 0x42f   :  { %2190 = vsyncpa [#allocation5], 1 }
 0x430   :  { %2192 = vsyncpa [#allocation5 + $0x1], 1 }
 0x431   :  { %2193 = vsyncpa [#allocation8], 1 }
 0x432   :  { %2194 = vsyncpa [#allocation11], 1 }

</bundles_post_ra>
